<compile_context>
chip_gen: v5e
topology: v5e:2x2
jax: 0.10.0
libtpu: 0.0.40
codegen_flags: <defaults>
</compile_context>

<pallas_src>
import functools

import numpy as np
import jax
import jax.numpy as jnp
from jax import lax
from jax.experimental import pallas as pl
from jax.experimental.pallas import tpu as pltpu

N_QUBITS = 4  # fixed by the reference module


# ----------------------------------------------------------------------------
# Shared math
# ----------------------------------------------------------------------------
def _layernorm(x, gamma, beta, eps=1e-5):
    mu = jnp.mean(x, axis=-1, keepdims=True)
    var = jnp.mean((x - mu) ** 2, axis=-1, keepdims=True)
    return (x - mu) * lax.rsqrt(var + eps) * gamma + beta


# ----------------------------------------------------------------------------
# Fused whole-model Pallas kernel (one grid step = one batch element)
# ----------------------------------------------------------------------------
def _qtransformer_kernel(x_ref, wqkv_ref, bqkv_ref, wo_ref, w1_ref, b1_ref,
                         w2_ref, vecs_ref, trig_ref, wfc_ref, bfc_ref,
                         o_ref, score_scr, attn_scr,
                         *, num_layers, nhead, seq, d_model):
    H, S, D = nhead, seq, d_model
    NQ = N_QUBITS
    NA = H * NQ                       # number of angle columns per side (q / k)
    d_k = D // H
    PI = jnp.float32(np.pi)

    x = x_ref[0]                      # (S, D) — activations stay VMEM/vreg resident

    # TODO(synk): replace the static layer unroll with a layer grid axis when num_layers grows.
    for l in range(num_layers):
        # ---- fused projection: [q_angles | k_angles | V] in one MXU matmul ----
        qkv = jnp.dot(x, wqkv_ref[l], preferred_element_type=jnp.float32) + bqkv_ref[l]
        qa = qkv[:, :NA]              # (S, H*NQ), qubit-major columns: col m*H + h
        ka = qkv[:, NA:2 * NA]        # (S, H*NQ)
        v = qkv[:, 2 * NA:]           # (S, D)

        # ---- per-(row, head) min/max over the 4 qubits: pure VPU block min/max ----
        qb = [qa[:, m * H:(m + 1) * H] for m in range(NQ)]   # each (S, H)
        kb = [ka[:, m * H:(m + 1) * H] for m in range(NQ)]
        qmin = jnp.minimum(jnp.minimum(qb[0], qb[1]), jnp.minimum(qb[2], qb[3]))
        qmax = jnp.maximum(jnp.maximum(qb[0], qb[1]), jnp.maximum(qb[2], qb[3]))
        kmin = jnp.minimum(jnp.minimum(kb[0], kb[1]), jnp.minimum(kb[2], kb[3]))
        kmax = jnp.maximum(jnp.maximum(kb[0], kb[1]), jnp.maximum(kb[2], kb[3]))
        qsc = PI / (qmax - qmin + 1e-8)                       # (S, H)
        ksc = PI / (kmax - kmin + 1e-8)

        # ---- quantum-score factors for qubits 1..3, batched over all heads ----
        tg = trig_ref[l]              # (2, H*NQ): row 0 = cos(p) (scale folded at qubit 1), row 1 = sin(p)
        A, Bq, CT = [], [], []
        for m in range(1, NQ):
            qn_m = (qb[m] - qmin) * qsc                       # (S, H) angles in [0, pi]
            kn_m = (kb[m] - kmin) * ksc
            A.append(tg[0:1, m * H:(m + 1) * H] * jnp.cos(qn_m))     # cos(p_m) cos(qn)
            Bq.append(-tg[1:2, m * H:(m + 1) * H] * jnp.sin(qn_m))   # -sin(p_m) sin(qn)
            CT.append(jnp.cos(kn_m).T)                               # (H, S): key side, seq on lanes

        # ---- rank-1 broadcast product per head (pure VPU); slice-write into VMEM scratch ----
        # score[h*S + i, j] = prod_{m=1..3} (A_m[i,h] + B_m[i,h] * C_m[h,j]),  1/sqrt(d_k) folded at m=1
        for h in range(H):
            f = A[0][:, h:h + 1] + Bq[0][:, h:h + 1] * CT[0][h:h + 1, :]
            f = f * (A[1][:, h:h + 1] + Bq[1][:, h:h + 1] * CT[1][h:h + 1, :])
            f = f * (A[2][:, h:h + 1] + Bq[2][:, h:h + 1] * CT[2][h:h + 1, :])
            score_scr[h * S:(h + 1) * S, :] = f

        # ---- softmax over keys, all (head, query) rows at once ----
        # |score| <= 1/sqrt(d_k) (3 factors each in [-1,1] times the folded scale),
        # so the max-subtraction is unnecessary and exp is safe.
        e = jnp.exp(score_scr[...])                                   # (H*S, S)
        p = e * pl.reciprocal(jnp.sum(e, axis=-1, keepdims=True), approx=True)

        # ---- P @ V per head, written directly into the concat position (no in-kernel concat) ----
        for h in range(H):
            attn_scr[:, h * d_k:(h + 1) * d_k] = jnp.dot(
                p[h * S:(h + 1) * S, :], v[:, h * d_k:(h + 1) * d_k],
                preferred_element_type=jnp.float32)

        vec = vecs_ref[l]             # (6, D): bo, b2, g1, be1, g2, be2
        bo, b2, g1, be1, g2, be2 = (vec[i:i + 1, :] for i in range(6))

        attn = jnp.dot(attn_scr[...], wo_ref[l], preferred_element_type=jnp.float32) + bo
        # dropout layers are identity (inference)
        src = _layernorm(x + attn, g1, be1)
        # feed-forward: NO activation between linear1/linear2 (matches the PyTorch module)
        ff = jnp.dot(src, w1_ref[l], preferred_element_type=jnp.float32) + b1_ref[l]
        ff = jnp.dot(ff, w2_ref[l], preferred_element_type=jnp.float32) + b2
        x = _layernorm(src + ff, g2, be2)

    # ---- final classifier: lane-dense (padded to 128 output columns) ----
    o_ref[0] = jnp.dot(x, wfc_ref[...], preferred_element_type=jnp.float32) + bfc_ref[...]


def quantum_transformer_forward(tokens, params, *, nhead):
    """Whole QuantumTransformer forward: embedding/pos in plain JAX, the rest in one pallas_call."""
    emb = params['embedding']
    D = emb.shape[1]
    B, S = tokens.shape
    layers = params['layers']
    L = len(layers)
    C = params['wfc'].shape[1]
    H = nhead
    d_k = D // H
    NQ = N_QUBITS
    scale = float(1.0 / np.sqrt(d_k))
    CP = max(128, ((C + 127) // 128) * 128)   # lane-dense padded classifier width

    # Embedding gather + positional add (token gather has no clean tiny-Pallas win).
    x = jnp.take(emb, tokens, axis=0) * jnp.sqrt(jnp.float32(D))
    x = x + params['pos'][:, :S, :]                          # (B, S, D)

    # Only the first NQ columns of each head of W_q / W_k feed the quantum angles.
    # Re-permute them to QUBIT-MAJOR order (col m*H + h) so per-head qubit min/max becomes
    # an elementwise min/max of lane blocks inside the kernel.
    perm = np.array([h * d_k + m for m in range(NQ) for h in range(H)], dtype=np.int32)

    wqkv = jnp.stack([jnp.concatenate([lp['wq'][:, perm], lp['wk'][:, perm], lp['wv']], axis=1)
                      for lp in layers])                     # (L, D, 2*H*NQ + D)
    bqkv = jnp.stack([jnp.concatenate([lp['bq'][:, perm], lp['bk'][:, perm], lp['bv']], axis=1)
                      for lp in layers])                     # (L, 1, 2*H*NQ + D)
    wo = jnp.stack([lp['wo'] for lp in layers])
    w1 = jnp.stack([lp['w1'] for lp in layers])
    b1 = jnp.stack([lp['b1'] for lp in layers])
    w2 = jnp.stack([lp['w2'] for lp in layers])
    vecs = jnp.stack([jnp.concatenate([lp['bo'], lp['b2'], lp['g1'], lp['be1'],
                                       lp['g2'], lp['be2']], axis=0) for lp in layers])  # (L, 6, D)

    # cos/sin(attn_params), 1/sqrt(d_k) folded into the qubit-1 factor, each value repeated
    # H times so the kernel applies them as (1, H) broadcast rows (qubit-major blocks).
    fold = jnp.array([[1.0, scale, 1.0, 1.0]], jnp.float32)
    _rep = lambda row: jnp.repeat(row * fold, H, axis=1)[0]            # (H*NQ,)
    trig = jnp.stack([jnp.stack([_rep(lp['cos_p']), _rep(lp['sin_p'])], axis=0)
                      for lp in layers])                               # (L, 2, H*NQ)

    # Lane-dense classifier weights (pad output columns to CP=128; slice back after the kernel).
    wfc_pad = jnp.zeros((D, CP), jnp.float32).at[:, :C].set(params['wfc'])
    bfc_pad = jnp.zeros((1, CP), jnp.float32).at[:, :C].set(params['bfc'])

    kernel = functools.partial(_qtransformer_kernel,
                               num_layers=L, nhead=H, seq=S, d_model=D)

    grid_spec = pltpu.PrefetchScalarGridSpec(
        num_scalar_prefetch=0,
        grid=(B,),                                           # one batch element per step; parallel -> both TCs on v7x
        in_specs=[
            pl.BlockSpec((1, S, D), lambda b: (b, 0, 0)),    # x
            pl.BlockSpec(wqkv.shape, lambda b: (0, 0, 0)),   # stacked weights stay VMEM-resident
            pl.BlockSpec(bqkv.shape, lambda b: (0, 0, 0)),
            pl.BlockSpec(wo.shape, lambda b: (0, 0, 0)),
            pl.BlockSpec(w1.shape, lambda b: (0, 0, 0)),
            pl.BlockSpec(b1.shape, lambda b: (0, 0, 0)),
            pl.BlockSpec(w2.shape, lambda b: (0, 0, 0)),
            pl.BlockSpec(vecs.shape, lambda b: (0, 0, 0)),
            pl.BlockSpec(trig.shape, lambda b: (0, 0, 0)),
            pl.BlockSpec(wfc_pad.shape, lambda b: (0, 0)),
            pl.BlockSpec(bfc_pad.shape, lambda b: (0, 0)),
        ],
        out_specs=pl.BlockSpec((1, S, CP), lambda b: (b, 0, 0)),
        scratch_shapes=[
            pltpu.VMEM((H * S, S), jnp.float32),             # "tall" score slab for all heads
            pltpu.VMEM((S, D), jnp.float32),                 # concatenated per-head attention output
        ])

    out = pl.pallas_call(
        kernel,
        out_shape=jax.ShapeDtypeStruct((B, S, CP), jnp.float32),
        grid_spec=grid_spec,
        compiler_params=pltpu.CompilerParams(dimension_semantics=("parallel",)),
    )(x, wqkv, bqkv, wo, w1, b1, w2, vecs, trig, wfc_pad, bfc_pad)
    return out[:, :, :C]


# ----------------------------------------------------------------------------
# Pure-JAX reference (independent formulation: explicit scale, explicit division)
# ----------------------------------------------------------------------------
def _minmax_to_pi(v):
    vmin = jnp.min(v, axis=-1, keepdims=True)
    vmax = jnp.max(v, axis=-1, keepdims=True)
    return (v - vmin) / (vmax - vmin + 1e-8) * jnp.float32(np.pi)


def _ref_encoder_layer(x, lp, nhead):
    S, D = x.shape
    d_k = D // nhead
    scale = jnp.float32(1.0 / np.sqrt(d_k))
    q = jnp.dot(x, lp['wq']) + lp['bq']
    k = jnp.dot(x, lp['wk']) + lp['bk']
    v = jnp.dot(x, lp['wv']) + lp['bv']
    heads = []
    for h in range(nhead):
        sl = slice(h * d_k, (h + 1) * d_k)
        qn = _minmax_to_pi(q[:, sl][:, :N_QUBITS])
        kn = _minmax_to_pi(k[:, sl][:, :N_QUBITS])
        score = jnp.ones((S, S), jnp.float32)
        for m in range(1, N_QUBITS):
            term = (lp['cos_p'][0, m] * jnp.cos(qn[:, m])[:, None]
                    - lp['sin_p'][0, m] * jnp.sin(qn[:, m])[:, None] * jnp.cos(kn[:, m])[None, :])
            score = score * term
        w = jax.nn.softmax(score * scale, axis=-1)
        heads.append(jnp.dot(w, v[:, sl]))
    attn = jnp.dot(jnp.concatenate(heads, axis=-1), lp['wo']) + lp['bo']
    src = _layernorm(x + attn, lp['g1'], lp['be1'])
    ff = jnp.dot(src, lp['w1']) + lp['b1']
    ff = jnp.dot(ff, lp['w2']) + lp['b2']     # no activation, as in the PyTorch module
    return _layernorm(src + ff, lp['g2'], lp['be2'])


def quantum_transformer_reference(tokens, params, *, nhead):
    D = params['embedding'].shape[1]
    S = tokens.shape[1]
    out = jnp.take(params['embedding'], tokens, axis=0) * jnp.sqrt(jnp.float32(D))
    out = out + params['pos'][:, :S, :]
    for lp in params['layers']:
        out = jax.vmap(functools.partial(_ref_encoder_layer, lp=lp, nhead=nhead))(out)
    return jnp.dot(out, params['wfc']) + params['bfc']


# ----------------------------------------------------------------------------
# Closed-form <Z_0> validation against an exact statevector simulation (NumPy)
# ----------------------------------------------------------------------------
def _analytic_expval_z0(q, k, p):
    val = 1.0
    for m in range(1, N_QUBITS):
        val *= np.cos(p[m]) * np.cos(q[m]) - np.sin(p[m]) * np.cos(k[m]) * np.sin(q[m])
    return float(val)


def _statevector_expval_z0(q, k, p):
    """Exact simulation of quantum_attention_circuit (wire 0 = most significant bit)."""
    I2 = np.eye(2, dtype=np.complex128)

    def RX(t):
        c, s = np.cos(t / 2), np.sin(t / 2)
        return np.array([[c, -1j * s], [-1j * s, c]], dtype=np.complex128)

    def RZ(t):
        return np.array([[np.exp(-1j * t / 2), 0], [0, np.exp(1j * t / 2)]], dtype=np.complex128)

    def on_wire(w, U):
        mats = [I2] * N_QUBITS
        mats[w] = U
        out = mats[0]
        for m in mats[1:]:
            out = np.kron(out, m)
        return out

    def cnot(c, t):
        M = np.zeros((16, 16), dtype=np.complex128)
        for b in range(16):
            bits = [(b >> (3 - w)) & 1 for w in range(4)]
            if bits[c] == 1:
                bits[t] ^= 1
            b2 = sum(bit << (3 - w) for w, bit in enumerate(bits))
            M[b2, b] = 1.0
        return M

    psi = np.zeros(16, dtype=np.complex128)
    psi[0] = 1.0
    for i in range(N_QUBITS):
        psi = on_wire(i, RX(q[i])) @ psi
        psi = on_wire(i, RZ(k[i])) @ psi
    for i in range(N_QUBITS):
        psi = on_wire(i, RX(p[i])) @ psi
        psi = cnot(i, (i + 1) % N_QUBITS) @ psi
    Z0 = on_wire(0, np.array([[1, 0], [0, -1]], dtype=np.complex128))
    return float(np.real(psi.conj() @ (Z0 @ psi)))


# ----------------------------------------------------------------------------
# Deterministic parameter init (mimics the module's __init__ shapes)
# ----------------------------------------------------------------------------
def init_params(key, vocab_size, d_model, nhead, num_layers, dim_ff,
                max_len, num_classes):
    def linear(k, fan_in, fan_out):
        kw, kb = jax.random.split(k)
        bound = 1.0 / np.sqrt(fan_in)
        w = jax.random.uniform(kw, (fan_in, fan_out), jnp.float32, -bound, bound)
        b = jax.random.uniform(kb, (1, fan_out), jnp.float32, -bound, bound)
        return w, b

    keys = jax.random.split(key, 3 + num_layers)
    params = {
        'embedding': jax.random.normal(keys[0], (vocab_size, d_model), jnp.float32),
        'pos': jax.random.normal(keys[1], (1, max_len, d_model), jnp.float32),
    }
    layers = []
    for li in range(num_layers):
        ks = jax.random.split(keys[2 + li], 8)
        wq, bq = linear(ks[0], d_model, d_model)
        wk, bk = linear(ks[1], d_model, d_model)
        wv, bv = linear(ks[2], d_model, d_model)
        wo, bo = linear(ks[3], d_model, d_model)
        w1, b1 = linear(ks[4], d_model, dim_ff)
        w2, b2 = linear(ks[5], dim_ff, d_model)
        attn_p = 0.1 * jax.random.normal(ks[6], (1, N_QUBITS), jnp.float32)
        layers.append(dict(
            wq=wq, bq=bq, wk=wk, bk=bk, wv=wv, bv=bv, wo=wo, bo=bo,
            cos_p=jnp.cos(attn_p), sin_p=jnp.sin(attn_p),
            g1=jnp.ones((1, d_model), jnp.float32),
            be1=jnp.zeros((1, d_model), jnp.float32),
            w1=w1, b1=b1, w2=w2, b2=b2,
            g2=jnp.ones((1, d_model), jnp.float32),
            be2=jnp.zeros((1, d_model), jnp.float32)))
    params['layers'] = layers
    wfc, bfc = linear(keys[2 + num_layers], d_model, num_classes)
    params['wfc'] = wfc
    params['bfc'] = bfc
    return params


if __name__ == "__main__":
    # 0) One-off cross-check: analytic <Z_0> formula vs exact circuit simulation.
    rng = np.random.RandomState(0)
    for _ in range(5):
        qv = rng.uniform(0.0, np.pi, N_QUBITS)
        kv = rng.uniform(0.0, np.pi, N_QUBITS)
        pv = rng.normal(0.0, 0.3, N_QUBITS)
        assert abs(_statevector_expval_z0(qv, kv, pv) - _analytic_expval_z0(qv, kv, pv)) < 1e-9

    # Small shapes consistent with the module: batch=2, seq=8, d_model=32,
    # nhead=4 (d_k=8 >= n_qubits=4), 2 encoder layers, dim_ff=64, 3 classes.
    vocab_size, d_model, nhead, num_layers = 50, 32, 4, 2
    max_len, num_classes, dim_ff = 16, 3, 64
    B, S = 2, 8

    key = jax.random.PRNGKey(0)
    pkey, tkey = jax.random.split(key)
    params = init_params(pkey, vocab_size, d_model, nhead, num_layers,
                         dim_ff, max_len, num_classes)
    tokens = jax.random.randint(tkey, (B, S), 0, vocab_size, dtype=jnp.int32)

    fwd = jax.jit(functools.partial(quantum_transformer_forward, nhead=nhead))
    out = jax.block_until_ready(fwd(tokens, params))
    assert out.shape == (B, S, num_classes)

    with jax.default_matmul_precision('highest'):
        ref = jax.block_until_ready(
            quantum_transformer_reference(tokens, params, nhead=nhead))
    err = float(jnp.max(jnp.abs(out - ref)))
    assert err < 2e-2, f"max abs error vs reference: {err}"

    print("KERNEL_OK")
</pallas_src>

<mosaic_0001>
module attributes {stable_mosaic.version = 11 : i64} {
  func.func @_qtransformer_kernel(%arg0: i32, %arg1: memref<1x8x32xf32, #tpu.memory_space<vmem>>, %arg2: memref<2x32x64xf32, #tpu.memory_space<vmem>>, %arg3: memref<2x1x64xf32, #tpu.memory_space<vmem>>, %arg4: memref<2x32x32xf32, #tpu.memory_space<vmem>>, %arg5: memref<2x32x64xf32, #tpu.memory_space<vmem>>, %arg6: memref<2x1x64xf32, #tpu.memory_space<vmem>>, %arg7: memref<2x64x32xf32, #tpu.memory_space<vmem>>, %arg8: memref<2x6x32xf32, #tpu.memory_space<vmem>>, %arg9: memref<2x2x16xf32, #tpu.memory_space<vmem>>, %arg10: memref<32x128xf32, #tpu.memory_space<vmem>>, %arg11: memref<1x128xf32, #tpu.memory_space<vmem>>, %arg12: memref<1x8x128xf32, #tpu.memory_space<vmem>>, %arg13: memref<32x8xf32, #tpu.memory_space<vmem>>, %arg14: memref<8x32xf32, #tpu.memory_space<vmem>>) attributes {dimension_semantics = [#tpu.dimension_semantics<parallel>], iteration_bounds = array<i64: 2>, scalar_prefetch = 0 : i64, scratch_operands = 2 : i64, tpu.core_type = #tpu.core_type<tc>, window_params = [{transform_indices = @transform_0, window_bounds = array<i64: 1, 8, 32>}, {pipeline_mode = #tpu.pipeline_mode<synchronous>, transform_indices = @transform_1, window_bounds = array<i64: 2, 32, 64>}, {pipeline_mode = #tpu.pipeline_mode<synchronous>, transform_indices = @transform_2, window_bounds = array<i64: 2, 1, 64>}, {pipeline_mode = #tpu.pipeline_mode<synchronous>, transform_indices = @transform_3, window_bounds = array<i64: 2, 32, 32>}, {pipeline_mode = #tpu.pipeline_mode<synchronous>, transform_indices = @transform_4, window_bounds = array<i64: 2, 32, 64>}, {pipeline_mode = #tpu.pipeline_mode<synchronous>, transform_indices = @transform_5, window_bounds = array<i64: 2, 1, 64>}, {pipeline_mode = #tpu.pipeline_mode<synchronous>, transform_indices = @transform_6, window_bounds = array<i64: 2, 64, 32>}, {pipeline_mode = #tpu.pipeline_mode<synchronous>, transform_indices = @transform_7, window_bounds = array<i64: 2, 6, 32>}, {pipeline_mode = #tpu.pipeline_mode<synchronous>, transform_indices = @transform_8, window_bounds = array<i64: 2, 2, 16>}, {pipeline_mode = #tpu.pipeline_mode<synchronous>, transform_indices = @transform_9, window_bounds = array<i64: 32, 128>}, {pipeline_mode = #tpu.pipeline_mode<synchronous>, transform_indices = @transform_10, window_bounds = array<i64: 1, 128>}, {transform_indices = @transform_11, window_bounds = array<i64: 1, 8, 128>}]} {
    %c0 = arith.constant 0 : index
    %c0_0 = arith.constant 0 : index
    %c0_1 = arith.constant 0 : index
    %0 = vector.load %arg1[%c0, %c0_0, %c0_1] : memref<1x8x32xf32, #tpu.memory_space<vmem>>, vector<1x8x32xf32>
    %1 = vector.shape_cast %0 : vector<1x8x32xf32> to vector<8x32xf32>
    %c0_2 = arith.constant 0 : index
    %c0_3 = arith.constant 0 : index
    %c0_4 = arith.constant 0 : index
    %2 = vector.load %arg2[%c0_2, %c0_3, %c0_4] : memref<2x32x64xf32, #tpu.memory_space<vmem>>, vector<1x32x64xf32>
    %3 = vector.shape_cast %2 : vector<1x32x64xf32> to vector<32x64xf32>
    %cst = arith.constant dense<0.000000e+00> : vector<8x64xf32>
    %4 = tpu.matmul %1, %3, %cst {dimension_numbers = #tpu.dot_dimension_numbers<[1], [0], [0], [1], [0, 0, 1, 1], [], []>} : vector<8x32xf32>, vector<32x64xf32>, vector<8x64xf32> -> vector<8x64xf32>
    %c0_5 = arith.constant 0 : index
    %c0_6 = arith.constant 0 : index
    %c0_7 = arith.constant 0 : index
    %5 = vector.load %arg3[%c0_5, %c0_6, %c0_7] : memref<2x1x64xf32, #tpu.memory_space<vmem>>, vector<1x1x64xf32>
    %6 = vector.shape_cast %5 : vector<1x1x64xf32> to vector<1x64xf32>
    %7 = vector.broadcast %6 : vector<1x64xf32> to vector<8x64xf32>
    %8 = arith.addf %4, %7 : vector<8x64xf32>
    %9 = vector.extract_strided_slice %8 {offsets = [0, 0], sizes = [8, 16], strides = [1, 1]} : vector<8x64xf32> to vector<8x16xf32>
    %10 = vector.extract_strided_slice %8 {offsets = [0, 16], sizes = [8, 16], strides = [1, 1]} : vector<8x64xf32> to vector<8x16xf32>
    %11 = vector.extract_strided_slice %8 {offsets = [0, 32], sizes = [8, 32], strides = [1, 1]} : vector<8x64xf32> to vector<8x32xf32>
    %12 = vector.extract_strided_slice %9 {offsets = [0, 0], sizes = [8, 4], strides = [1, 1]} : vector<8x16xf32> to vector<8x4xf32>
    %13 = vector.extract_strided_slice %9 {offsets = [0, 4], sizes = [8, 4], strides = [1, 1]} : vector<8x16xf32> to vector<8x4xf32>
    %14 = vector.extract_strided_slice %9 {offsets = [0, 8], sizes = [8, 4], strides = [1, 1]} : vector<8x16xf32> to vector<8x4xf32>
    %15 = vector.extract_strided_slice %9 {offsets = [0, 12], sizes = [8, 4], strides = [1, 1]} : vector<8x16xf32> to vector<8x4xf32>
    %16 = vector.extract_strided_slice %10 {offsets = [0, 0], sizes = [8, 4], strides = [1, 1]} : vector<8x16xf32> to vector<8x4xf32>
    %17 = vector.extract_strided_slice %10 {offsets = [0, 4], sizes = [8, 4], strides = [1, 1]} : vector<8x16xf32> to vector<8x4xf32>
    %18 = vector.extract_strided_slice %10 {offsets = [0, 8], sizes = [8, 4], strides = [1, 1]} : vector<8x16xf32> to vector<8x4xf32>
    %19 = vector.extract_strided_slice %10 {offsets = [0, 12], sizes = [8, 4], strides = [1, 1]} : vector<8x16xf32> to vector<8x4xf32>
    %20 = arith.minimumf %12, %13 : vector<8x4xf32>
    %21 = arith.minimumf %14, %15 : vector<8x4xf32>
    %22 = arith.minimumf %20, %21 : vector<8x4xf32>
    %23 = arith.maximumf %12, %13 : vector<8x4xf32>
    %24 = arith.maximumf %14, %15 : vector<8x4xf32>
    %25 = arith.maximumf %23, %24 : vector<8x4xf32>
    %26 = arith.minimumf %16, %17 : vector<8x4xf32>
    %27 = arith.minimumf %18, %19 : vector<8x4xf32>
    %28 = arith.minimumf %26, %27 : vector<8x4xf32>
    %29 = arith.maximumf %16, %17 : vector<8x4xf32>
    %30 = arith.maximumf %18, %19 : vector<8x4xf32>
    %31 = arith.maximumf %29, %30 : vector<8x4xf32>
    %32 = arith.subf %25, %22 : vector<8x4xf32>
    %cst_8 = arith.constant 9.99999993E-9 : f32
    %33 = vector.broadcast %cst_8 : f32 to vector<8x4xf32>
    %34 = arith.addf %32, %33 : vector<8x4xf32>
    %cst_9 = arith.constant 3.14159274 : f32
    %35 = vector.broadcast %cst_9 : f32 to vector<8x4xf32>
    %36 = arith.divf %35, %34 : vector<8x4xf32>
    %37 = arith.subf %31, %28 : vector<8x4xf32>
    %cst_10 = arith.constant 9.99999993E-9 : f32
    %38 = vector.broadcast %cst_10 : f32 to vector<8x4xf32>
    %39 = arith.addf %37, %38 : vector<8x4xf32>
    %cst_11 = arith.constant 3.14159274 : f32
    %40 = vector.broadcast %cst_11 : f32 to vector<8x4xf32>
    %41 = arith.divf %40, %39 : vector<8x4xf32>
    %c0_12 = arith.constant 0 : index
    %c0_13 = arith.constant 0 : index
    %c0_14 = arith.constant 0 : index
    %42 = vector.load %arg9[%c0_12, %c0_13, %c0_14] : memref<2x2x16xf32, #tpu.memory_space<vmem>>, vector<1x2x16xf32>
    %43 = vector.shape_cast %42 : vector<1x2x16xf32> to vector<2x16xf32>
    %44 = arith.subf %13, %22 : vector<8x4xf32>
    %45 = arith.mulf %44, %36 : vector<8x4xf32>
    %46 = arith.subf %17, %28 : vector<8x4xf32>
    %47 = arith.mulf %46, %41 : vector<8x4xf32>
    %48 = vector.extract_strided_slice %43 {offsets = [0, 4], sizes = [1, 4], strides = [1, 1]} : vector<2x16xf32> to vector<1x4xf32>
    %49 = math.cos %45 : vector<8x4xf32>
    %50 = vector.broadcast %48 : vector<1x4xf32> to vector<8x4xf32>
    %51 = arith.mulf %50, %49 : vector<8x4xf32>
    %52 = vector.extract_strided_slice %43 {offsets = [1, 4], sizes = [1, 4], strides = [1, 1]} : vector<2x16xf32> to vector<1x4xf32>
    %cst_15 = arith.constant 0.000000e+00 : f32
    %53 = vector.broadcast %cst_15 : f32 to vector<1x4xf32>
    %54 = arith.subf %53, %52 : vector<1x4xf32>
    %55 = math.sin %45 : vector<8x4xf32>
    %56 = vector.broadcast %54 : vector<1x4xf32> to vector<8x4xf32>
    %57 = arith.mulf %56, %55 : vector<8x4xf32>
    %58 = math.cos %47 : vector<8x4xf32>
    %59 = tpu.transpose %58, [1, 0] : vector<8x4xf32> -> vector<4x8xf32>
    %60 = arith.subf %14, %22 : vector<8x4xf32>
    %61 = arith.mulf %60, %36 : vector<8x4xf32>
    %62 = arith.subf %18, %28 : vector<8x4xf32>
    %63 = arith.mulf %62, %41 : vector<8x4xf32>
    %64 = vector.extract_strided_slice %43 {offsets = [0, 8], sizes = [1, 4], strides = [1, 1]} : vector<2x16xf32> to vector<1x4xf32>
    %65 = math.cos %61 : vector<8x4xf32>
    %66 = vector.broadcast %64 : vector<1x4xf32> to vector<8x4xf32>
    %67 = arith.mulf %66, %65 : vector<8x4xf32>
    %68 = vector.extract_strided_slice %43 {offsets = [1, 8], sizes = [1, 4], strides = [1, 1]} : vector<2x16xf32> to vector<1x4xf32>
    %cst_16 = arith.constant 0.000000e+00 : f32
    %69 = vector.broadcast %cst_16 : f32 to vector<1x4xf32>
    %70 = arith.subf %69, %68 : vector<1x4xf32>
    %71 = math.sin %61 : vector<8x4xf32>
    %72 = vector.broadcast %70 : vector<1x4xf32> to vector<8x4xf32>
    %73 = arith.mulf %72, %71 : vector<8x4xf32>
    %74 = math.cos %63 : vector<8x4xf32>
    %75 = tpu.transpose %74, [1, 0] : vector<8x4xf32> -> vector<4x8xf32>
    %76 = arith.subf %15, %22 : vector<8x4xf32>
    %77 = arith.mulf %76, %36 : vector<8x4xf32>
    %78 = arith.subf %19, %28 : vector<8x4xf32>
    %79 = arith.mulf %78, %41 : vector<8x4xf32>
    %80 = vector.extract_strided_slice %43 {offsets = [0, 12], sizes = [1, 4], strides = [1, 1]} : vector<2x16xf32> to vector<1x4xf32>
    %81 = math.cos %77 : vector<8x4xf32>
    %82 = vector.broadcast %80 : vector<1x4xf32> to vector<8x4xf32>
    %83 = arith.mulf %82, %81 : vector<8x4xf32>
    %84 = vector.extract_strided_slice %43 {offsets = [1, 12], sizes = [1, 4], strides = [1, 1]} : vector<2x16xf32> to vector<1x4xf32>
    %cst_17 = arith.constant 0.000000e+00 : f32
    %85 = vector.broadcast %cst_17 : f32 to vector<1x4xf32>
    %86 = arith.subf %85, %84 : vector<1x4xf32>
    %87 = math.sin %77 : vector<8x4xf32>
    %88 = vector.broadcast %86 : vector<1x4xf32> to vector<8x4xf32>
    %89 = arith.mulf %88, %87 : vector<8x4xf32>
    %90 = math.cos %79 : vector<8x4xf32>
    %91 = tpu.transpose %90, [1, 0] : vector<8x4xf32> -> vector<4x8xf32>
    %92 = vector.extract_strided_slice %51 {offsets = [0, 0], sizes = [8, 1], strides = [1, 1]} : vector<8x4xf32> to vector<8x1xf32>
    %93 = vector.extract_strided_slice %57 {offsets = [0, 0], sizes = [8, 1], strides = [1, 1]} : vector<8x4xf32> to vector<8x1xf32>
    %94 = vector.extract_strided_slice %59 {offsets = [0, 0], sizes = [1, 8], strides = [1, 1]} : vector<4x8xf32> to vector<1x8xf32>
    %95 = vector.broadcast %93 : vector<8x1xf32> to vector<8x8xf32>
    %96 = vector.broadcast %94 : vector<1x8xf32> to vector<8x8xf32>
    %97 = arith.mulf %95, %96 : vector<8x8xf32>
    %98 = vector.broadcast %92 : vector<8x1xf32> to vector<8x8xf32>
    %99 = arith.addf %98, %97 : vector<8x8xf32>
    %100 = vector.extract_strided_slice %67 {offsets = [0, 0], sizes = [8, 1], strides = [1, 1]} : vector<8x4xf32> to vector<8x1xf32>
    %101 = vector.extract_strided_slice %73 {offsets = [0, 0], sizes = [8, 1], strides = [1, 1]} : vector<8x4xf32> to vector<8x1xf32>
    %102 = vector.extract_strided_slice %75 {offsets = [0, 0], sizes = [1, 8], strides = [1, 1]} : vector<4x8xf32> to vector<1x8xf32>
    %103 = vector.broadcast %101 : vector<8x1xf32> to vector<8x8xf32>
    %104 = vector.broadcast %102 : vector<1x8xf32> to vector<8x8xf32>
    %105 = arith.mulf %103, %104 : vector<8x8xf32>
    %106 = vector.broadcast %100 : vector<8x1xf32> to vector<8x8xf32>
    %107 = arith.addf %106, %105 : vector<8x8xf32>
    %108 = arith.mulf %99, %107 : vector<8x8xf32>
    %109 = vector.extract_strided_slice %83 {offsets = [0, 0], sizes = [8, 1], strides = [1, 1]} : vector<8x4xf32> to vector<8x1xf32>
    %110 = vector.extract_strided_slice %89 {offsets = [0, 0], sizes = [8, 1], strides = [1, 1]} : vector<8x4xf32> to vector<8x1xf32>
    %111 = vector.extract_strided_slice %91 {offsets = [0, 0], sizes = [1, 8], strides = [1, 1]} : vector<4x8xf32> to vector<1x8xf32>
    %112 = vector.broadcast %110 : vector<8x1xf32> to vector<8x8xf32>
    %113 = vector.broadcast %111 : vector<1x8xf32> to vector<8x8xf32>
    %114 = arith.mulf %112, %113 : vector<8x8xf32>
    %115 = vector.broadcast %109 : vector<8x1xf32> to vector<8x8xf32>
    %116 = arith.addf %115, %114 : vector<8x8xf32>
    %117 = arith.mulf %108, %116 : vector<8x8xf32>
    %c0_18 = arith.constant 0 : index
    %c0_19 = arith.constant 0 : index
    %118 = vector.load %arg13[%c0_18, %c0_19] : memref<32x8xf32, #tpu.memory_space<vmem>>, vector<8x8xf32>
    tpu.vector_store %arg13[%c0_18, %c0_19], %117 {strides = array<i32>} : memref<32x8xf32, #tpu.memory_space<vmem>>, vector<8x8xf32>,
    %119 = vector.extract_strided_slice %51 {offsets = [0, 1], sizes = [8, 1], strides = [1, 1]} : vector<8x4xf32> to vector<8x1xf32>
    %120 = vector.extract_strided_slice %57 {offsets = [0, 1], sizes = [8, 1], strides = [1, 1]} : vector<8x4xf32> to vector<8x1xf32>
    %121 = vector.extract_strided_slice %59 {offsets = [1, 0], sizes = [1, 8], strides = [1, 1]} : vector<4x8xf32> to vector<1x8xf32>
    %122 = vector.broadcast %120 : vector<8x1xf32> to vector<8x8xf32>
    %123 = vector.broadcast %121 : vector<1x8xf32> to vector<8x8xf32>
    %124 = arith.mulf %122, %123 : vector<8x8xf32>
    %125 = vector.broadcast %119 : vector<8x1xf32> to vector<8x8xf32>
    %126 = arith.addf %125, %124 : vector<8x8xf32>
    %127 = vector.extract_strided_slice %67 {offsets = [0, 1], sizes = [8, 1], strides = [1, 1]} : vector<8x4xf32> to vector<8x1xf32>
    %128 = vector.extract_strided_slice %73 {offsets = [0, 1], sizes = [8, 1], strides = [1, 1]} : vector<8x4xf32> to vector<8x1xf32>
    %129 = vector.extract_strided_slice %75 {offsets = [1, 0], sizes = [1, 8], strides = [1, 1]} : vector<4x8xf32> to vector<1x8xf32>
    %130 = vector.broadcast %128 : vector<8x1xf32> to vector<8x8xf32>
    %131 = vector.broadcast %129 : vector<1x8xf32> to vector<8x8xf32>
    %132 = arith.mulf %130, %131 : vector<8x8xf32>
    %133 = vector.broadcast %127 : vector<8x1xf32> to vector<8x8xf32>
    %134 = arith.addf %133, %132 : vector<8x8xf32>
    %135 = arith.mulf %126, %134 : vector<8x8xf32>
    %136 = vector.extract_strided_slice %83 {offsets = [0, 1], sizes = [8, 1], strides = [1, 1]} : vector<8x4xf32> to vector<8x1xf32>
    %137 = vector.extract_strided_slice %89 {offsets = [0, 1], sizes = [8, 1], strides = [1, 1]} : vector<8x4xf32> to vector<8x1xf32>
    %138 = vector.extract_strided_slice %91 {offsets = [1, 0], sizes = [1, 8], strides = [1, 1]} : vector<4x8xf32> to vector<1x8xf32>
    %139 = vector.broadcast %137 : vector<8x1xf32> to vector<8x8xf32>
    %140 = vector.broadcast %138 : vector<1x8xf32> to vector<8x8xf32>
    %141 = arith.mulf %139, %140 : vector<8x8xf32>
    %142 = vector.broadcast %136 : vector<8x1xf32> to vector<8x8xf32>
    %143 = arith.addf %142, %141 : vector<8x8xf32>
    %144 = arith.mulf %135, %143 : vector<8x8xf32>
    %c8 = arith.constant 8 : index
    %c0_20 = arith.constant 0 : index
    %145 = vector.load %arg13[%c8, %c0_20] : memref<32x8xf32, #tpu.memory_space<vmem>>, vector<8x8xf32>
    tpu.vector_store %arg13[%c8, %c0_20], %144 {strides = array<i32>} : memref<32x8xf32, #tpu.memory_space<vmem>>, vector<8x8xf32>,
    %146 = vector.extract_strided_slice %51 {offsets = [0, 2], sizes = [8, 1], strides = [1, 1]} : vector<8x4xf32> to vector<8x1xf32>
    %147 = vector.extract_strided_slice %57 {offsets = [0, 2], sizes = [8, 1], strides = [1, 1]} : vector<8x4xf32> to vector<8x1xf32>
    %148 = vector.extract_strided_slice %59 {offsets = [2, 0], sizes = [1, 8], strides = [1, 1]} : vector<4x8xf32> to vector<1x8xf32>
    %149 = vector.broadcast %147 : vector<8x1xf32> to vector<8x8xf32>
    %150 = vector.broadcast %148 : vector<1x8xf32> to vector<8x8xf32>
    %151 = arith.mulf %149, %150 : vector<8x8xf32>
    %152 = vector.broadcast %146 : vector<8x1xf32> to vector<8x8xf32>
    %153 = arith.addf %152, %151 : vector<8x8xf32>
    %154 = vector.extract_strided_slice %67 {offsets = [0, 2], sizes = [8, 1], strides = [1, 1]} : vector<8x4xf32> to vector<8x1xf32>
    %155 = vector.extract_strided_slice %73 {offsets = [0, 2], sizes = [8, 1], strides = [1, 1]} : vector<8x4xf32> to vector<8x1xf32>
    %156 = vector.extract_strided_slice %75 {offsets = [2, 0], sizes = [1, 8], strides = [1, 1]} : vector<4x8xf32> to vector<1x8xf32>
    %157 = vector.broadcast %155 : vector<8x1xf32> to vector<8x8xf32>
    %158 = vector.broadcast %156 : vector<1x8xf32> to vector<8x8xf32>
    %159 = arith.mulf %157, %158 : vector<8x8xf32>
    %160 = vector.broadcast %154 : vector<8x1xf32> to vector<8x8xf32>
    %161 = arith.addf %160, %159 : vector<8x8xf32>
    %162 = arith.mulf %153, %161 : vector<8x8xf32>
    %163 = vector.extract_strided_slice %83 {offsets = [0, 2], sizes = [8, 1], strides = [1, 1]} : vector<8x4xf32> to vector<8x1xf32>
    %164 = vector.extract_strided_slice %89 {offsets = [0, 2], sizes = [8, 1], strides = [1, 1]} : vector<8x4xf32> to vector<8x1xf32>
    %165 = vector.extract_strided_slice %91 {offsets = [2, 0], sizes = [1, 8], strides = [1, 1]} : vector<4x8xf32> to vector<1x8xf32>
    %166 = vector.broadcast %164 : vector<8x1xf32> to vector<8x8xf32>
    %167 = vector.broadcast %165 : vector<1x8xf32> to vector<8x8xf32>
    %168 = arith.mulf %166, %167 : vector<8x8xf32>
    %169 = vector.broadcast %163 : vector<8x1xf32> to vector<8x8xf32>
    %170 = arith.addf %169, %168 : vector<8x8xf32>
    %171 = arith.mulf %162, %170 : vector<8x8xf32>
    %c16 = arith.constant 16 : index
    %c0_21 = arith.constant 0 : index
    %172 = vector.load %arg13[%c16, %c0_21] : memref<32x8xf32, #tpu.memory_space<vmem>>, vector<8x8xf32>
    tpu.vector_store %arg13[%c16, %c0_21], %171 {strides = array<i32>} : memref<32x8xf32, #tpu.memory_space<vmem>>, vector<8x8xf32>,
    %173 = vector.extract_strided_slice %51 {offsets = [0, 3], sizes = [8, 1], strides = [1, 1]} : vector<8x4xf32> to vector<8x1xf32>
    %174 = vector.extract_strided_slice %57 {offsets = [0, 3], sizes = [8, 1], strides = [1, 1]} : vector<8x4xf32> to vector<8x1xf32>
    %175 = vector.extract_strided_slice %59 {offsets = [3, 0], sizes = [1, 8], strides = [1, 1]} : vector<4x8xf32> to vector<1x8xf32>
    %176 = vector.broadcast %174 : vector<8x1xf32> to vector<8x8xf32>
    %177 = vector.broadcast %175 : vector<1x8xf32> to vector<8x8xf32>
    %178 = arith.mulf %176, %177 : vector<8x8xf32>
    %179 = vector.broadcast %173 : vector<8x1xf32> to vector<8x8xf32>
    %180 = arith.addf %179, %178 : vector<8x8xf32>
    %181 = vector.extract_strided_slice %67 {offsets = [0, 3], sizes = [8, 1], strides = [1, 1]} : vector<8x4xf32> to vector<8x1xf32>
    %182 = vector.extract_strided_slice %73 {offsets = [0, 3], sizes = [8, 1], strides = [1, 1]} : vector<8x4xf32> to vector<8x1xf32>
    %183 = vector.extract_strided_slice %75 {offsets = [3, 0], sizes = [1, 8], strides = [1, 1]} : vector<4x8xf32> to vector<1x8xf32>
    %184 = vector.broadcast %182 : vector<8x1xf32> to vector<8x8xf32>
    %185 = vector.broadcast %183 : vector<1x8xf32> to vector<8x8xf32>
    %186 = arith.mulf %184, %185 : vector<8x8xf32>
    %187 = vector.broadcast %181 : vector<8x1xf32> to vector<8x8xf32>
    %188 = arith.addf %187, %186 : vector<8x8xf32>
    %189 = arith.mulf %180, %188 : vector<8x8xf32>
    %190 = vector.extract_strided_slice %83 {offsets = [0, 3], sizes = [8, 1], strides = [1, 1]} : vector<8x4xf32> to vector<8x1xf32>
    %191 = vector.extract_strided_slice %89 {offsets = [0, 3], sizes = [8, 1], strides = [1, 1]} : vector<8x4xf32> to vector<8x1xf32>
    %192 = vector.extract_strided_slice %91 {offsets = [3, 0], sizes = [1, 8], strides = [1, 1]} : vector<4x8xf32> to vector<1x8xf32>
    %193 = vector.broadcast %191 : vector<8x1xf32> to vector<8x8xf32>
    %194 = vector.broadcast %192 : vector<1x8xf32> to vector<8x8xf32>
    %195 = arith.mulf %193, %194 : vector<8x8xf32>
    %196 = vector.broadcast %190 : vector<8x1xf32> to vector<8x8xf32>
    %197 = arith.addf %196, %195 : vector<8x8xf32>
    %198 = arith.mulf %189, %197 : vector<8x8xf32>
    %c24 = arith.constant 24 : index
    %c0_22 = arith.constant 0 : index
    %199 = vector.load %arg13[%c24, %c0_22] : memref<32x8xf32, #tpu.memory_space<vmem>>, vector<8x8xf32>
    tpu.vector_store %arg13[%c24, %c0_22], %198 {strides = array<i32>} : memref<32x8xf32, #tpu.memory_space<vmem>>, vector<8x8xf32>,
    %c0_23 = arith.constant 0 : index
    %c0_24 = arith.constant 0 : index
    %200 = vector.load %arg13[%c0_23, %c0_24] : memref<32x8xf32, #tpu.memory_space<vmem>>, vector<32x8xf32>
    %201 = math.exp %200 : vector<32x8xf32>
    %cst_25 = arith.constant dense<0.000000e+00> : vector<32xf32>
    %202 = vector.multi_reduction <add>, %201, %cst_25 [1] : vector<32x8xf32> to vector<32xf32>
    %203 = vector.shape_cast %202 : vector<32xf32> to vector<32x1xf32>
    %204 = tpu.reciprocal %203 {approx = true} : vector<32x1xf32> -> vector<32x1xf32>
    %205 = vector.broadcast %204 : vector<32x1xf32> to vector<32x8xf32>
    %206 = arith.mulf %201, %205 : vector<32x8xf32>
    %207 = vector.extract_strided_slice %206 {offsets = [0, 0], sizes = [8, 8], strides = [1, 1]} : vector<32x8xf32> to vector<8x8xf32>
    %208 = vector.extract_strided_slice %11 {offsets = [0, 0], sizes = [8, 8], strides = [1, 1]} : vector<8x32xf32> to vector<8x8xf32>
    %cst_26 = arith.constant dense<0.000000e+00> : vector<8x8xf32>
    %209 = tpu.matmul %207, %208, %cst_26 {dimension_numbers = #tpu.dot_dimension_numbers<[1], [0], [0], [1], [0, 0, 1, 1], [], []>} : vector<8x8xf32>, vector<8x8xf32>, vector<8x8xf32> -> vector<8x8xf32>
    %c0_27 = arith.constant 0 : index
    %c0_28 = arith.constant 0 : index
    %210 = vector.load %arg14[%c0_27, %c0_28] : memref<8x32xf32, #tpu.memory_space<vmem>>, vector<8x8xf32>
    tpu.vector_store %arg14[%c0_27, %c0_28], %209 {strides = array<i32>} : memref<8x32xf32, #tpu.memory_space<vmem>>, vector<8x8xf32>,
    %211 = vector.extract_strided_slice %206 {offsets = [8, 0], sizes = [8, 8], strides = [1, 1]} : vector<32x8xf32> to vector<8x8xf32>
    %212 = vector.extract_strided_slice %11 {offsets = [0, 8], sizes = [8, 8], strides = [1, 1]} : vector<8x32xf32> to vector<8x8xf32>
    %cst_29 = arith.constant dense<0.000000e+00> : vector<8x8xf32>
    %213 = tpu.matmul %211, %212, %cst_29 {dimension_numbers = #tpu.dot_dimension_numbers<[1], [0], [0], [1], [0, 0, 1, 1], [], []>} : vector<8x8xf32>, vector<8x8xf32>, vector<8x8xf32> -> vector<8x8xf32>
    %c0_30 = arith.constant 0 : index
    %c8_31 = arith.constant 8 : index
    %214 = vector.load %arg14[%c0_30, %c8_31] : memref<8x32xf32, #tpu.memory_space<vmem>>, vector<8x8xf32>
    tpu.vector_store %arg14[%c0_30, %c8_31], %213 {strides = array<i32>} : memref<8x32xf32, #tpu.memory_space<vmem>>, vector<8x8xf32>,
    %215 = vector.extract_strided_slice %206 {offsets = [16, 0], sizes = [8, 8], strides = [1, 1]} : vector<32x8xf32> to vector<8x8xf32>
    %216 = vector.extract_strided_slice %11 {offsets = [0, 16], sizes = [8, 8], strides = [1, 1]} : vector<8x32xf32> to vector<8x8xf32>
    %cst_32 = arith.constant dense<0.000000e+00> : vector<8x8xf32>
    %217 = tpu.matmul %215, %216, %cst_32 {dimension_numbers = #tpu.dot_dimension_numbers<[1], [0], [0], [1], [0, 0, 1, 1], [], []>} : vector<8x8xf32>, vector<8x8xf32>, vector<8x8xf32> -> vector<8x8xf32>
    %c0_33 = arith.constant 0 : index
    %c16_34 = arith.constant 16 : index
    %218 = vector.load %arg14[%c0_33, %c16_34] : memref<8x32xf32, #tpu.memory_space<vmem>>, vector<8x8xf32>
    tpu.vector_store %arg14[%c0_33, %c16_34], %217 {strides = array<i32>} : memref<8x32xf32, #tpu.memory_space<vmem>>, vector<8x8xf32>,
    %219 = vector.extract_strided_slice %206 {offsets = [24, 0], sizes = [8, 8], strides = [1, 1]} : vector<32x8xf32> to vector<8x8xf32>
    %220 = vector.extract_strided_slice %11 {offsets = [0, 24], sizes = [8, 8], strides = [1, 1]} : vector<8x32xf32> to vector<8x8xf32>
    %cst_35 = arith.constant dense<0.000000e+00> : vector<8x8xf32>
    %221 = tpu.matmul %219, %220, %cst_35 {dimension_numbers = #tpu.dot_dimension_numbers<[1], [0], [0], [1], [0, 0, 1, 1], [], []>} : vector<8x8xf32>, vector<8x8xf32>, vector<8x8xf32> -> vector<8x8xf32>
    %c0_36 = arith.constant 0 : index
    %c24_37 = arith.constant 24 : index
    %222 = vector.load %arg14[%c0_36, %c24_37] : memref<8x32xf32, #tpu.memory_space<vmem>>, vector<8x8xf32>
    tpu.vector_store %arg14[%c0_36, %c24_37], %221 {strides = array<i32>} : memref<8x32xf32, #tpu.memory_space<vmem>>, vector<8x8xf32>,
    %c0_38 = arith.constant 0 : index
    %c0_39 = arith.constant 0 : index
    %c0_40 = arith.constant 0 : index
    %223 = vector.load %arg8[%c0_38, %c0_39, %c0_40] : memref<2x6x32xf32, #tpu.memory_space<vmem>>, vector<1x6x32xf32>
    %224 = vector.shape_cast %223 : vector<1x6x32xf32> to vector<6x32xf32>
    %225 = vector.extract_strided_slice %224 {offsets = [0, 0], sizes = [1, 32], strides = [1, 1]} : vector<6x32xf32> to vector<1x32xf32>
    %226 = vector.extract_strided_slice %224 {offsets = [1, 0], sizes = [1, 32], strides = [1, 1]} : vector<6x32xf32> to vector<1x32xf32>
    %227 = vector.extract_strided_slice %224 {offsets = [2, 0], sizes = [1, 32], strides = [1, 1]} : vector<6x32xf32> to vector<1x32xf32>
    %228 = vector.extract_strided_slice %224 {offsets = [3, 0], sizes = [1, 32], strides = [1, 1]} : vector<6x32xf32> to vector<1x32xf32>
    %229 = vector.extract_strided_slice %224 {offsets = [4, 0], sizes = [1, 32], strides = [1, 1]} : vector<6x32xf32> to vector<1x32xf32>
    %230 = vector.extract_strided_slice %224 {offsets = [5, 0], sizes = [1, 32], strides = [1, 1]} : vector<6x32xf32> to vector<1x32xf32>
    %c0_41 = arith.constant 0 : index
    %c0_42 = arith.constant 0 : index
    %231 = vector.load %arg14[%c0_41, %c0_42] : memref<8x32xf32, #tpu.memory_space<vmem>>, vector<8x32xf32>
    %c0_43 = arith.constant 0 : index
    %c0_44 = arith.constant 0 : index
    %c0_45 = arith.constant 0 : index
    %232 = vector.load %arg4[%c0_43, %c0_44, %c0_45] : memref<2x32x32xf32, #tpu.memory_space<vmem>>, vector<1x32x32xf32>
    %233 = vector.shape_cast %232 : vector<1x32x32xf32> to vector<32x32xf32>
    %cst_46 = arith.constant dense<0.000000e+00> : vector<8x32xf32>
    %234 = tpu.matmul %231, %233, %cst_46 {dimension_numbers = #tpu.dot_dimension_numbers<[1], [0], [0], [1], [0, 0, 1, 1], [], []>} : vector<8x32xf32>, vector<32x32xf32>, vector<8x32xf32> -> vector<8x32xf32>
    %235 = vector.broadcast %225 : vector<1x32xf32> to vector<8x32xf32>
    %236 = arith.addf %234, %235 : vector<8x32xf32>
    %237 = arith.addf %1, %236 : vector<8x32xf32>
    %cst_47 = arith.constant dense<0.000000e+00> : vector<8xf32>
    %238 = vector.multi_reduction <add>, %237, %cst_47 [1] : vector<8x32xf32> to vector<8xf32>
    %239 = vector.shape_cast %238 : vector<8xf32> to vector<8x1xf32>
    %cst_48 = arith.constant 3.200000e+01 : f32
    %240 = vector.broadcast %cst_48 : f32 to vector<8x1xf32>
    %241 = arith.divf %239, %240 : vector<8x1xf32>
    %242 = vector.broadcast %241 : vector<8x1xf32> to vector<8x32xf32>
    %243 = arith.subf %237, %242 : vector<8x32xf32>
    %244 = arith.mulf %243, %243 : vector<8x32xf32>
    %cst_49 = arith.constant dense<0.000000e+00> : vector<8xf32>
    %245 = vector.multi_reduction <add>, %244, %cst_49 [1] : vector<8x32xf32> to vector<8xf32>
    %246 = vector.shape_cast %245 : vector<8xf32> to vector<8x1xf32>
    %cst_50 = arith.constant 3.200000e+01 : f32
    %247 = vector.broadcast %cst_50 : f32 to vector<8x1xf32>
    %248 = arith.divf %246, %247 : vector<8x1xf32>
    %249 = vector.broadcast %241 : vector<8x1xf32> to vector<8x32xf32>
    %250 = arith.subf %237, %249 : vector<8x32xf32>
    %cst_51 = arith.constant 9.99999974E-6 : f32
    %251 = vector.broadcast %cst_51 : f32 to vector<8x1xf32>
    %252 = arith.addf %248, %251 : vector<8x1xf32>
    %253 = math.rsqrt %252 : vector<8x1xf32>
    %254 = vector.broadcast %253 : vector<8x1xf32> to vector<8x32xf32>
    %255 = arith.mulf %250, %254 : vector<8x32xf32>
    %256 = vector.broadcast %227 : vector<1x32xf32> to vector<8x32xf32>
    %257 = arith.mulf %255, %256 : vector<8x32xf32>
    %258 = vector.broadcast %228 : vector<1x32xf32> to vector<8x32xf32>
    %259 = arith.addf %257, %258 : vector<8x32xf32>
    %c0_52 = arith.constant 0 : index
    %c0_53 = arith.constant 0 : index
    %c0_54 = arith.constant 0 : index
    %260 = vector.load %arg5[%c0_52, %c0_53, %c0_54] : memref<2x32x64xf32, #tpu.memory_space<vmem>>, vector<1x32x64xf32>
    %261 = vector.shape_cast %260 : vector<1x32x64xf32> to vector<32x64xf32>
    %cst_55 = arith.constant dense<0.000000e+00> : vector<8x64xf32>
    %262 = tpu.matmul %259, %261, %cst_55 {dimension_numbers = #tpu.dot_dimension_numbers<[1], [0], [0], [1], [0, 0, 1, 1], [], []>} : vector<8x32xf32>, vector<32x64xf32>, vector<8x64xf32> -> vector<8x64xf32>
    %c0_56 = arith.constant 0 : index
    %c0_57 = arith.constant 0 : index
    %c0_58 = arith.constant 0 : index
    %263 = vector.load %arg6[%c0_56, %c0_57, %c0_58] : memref<2x1x64xf32, #tpu.memory_space<vmem>>, vector<1x1x64xf32>
    %264 = vector.shape_cast %263 : vector<1x1x64xf32> to vector<1x64xf32>
    %265 = vector.broadcast %264 : vector<1x64xf32> to vector<8x64xf32>
    %266 = arith.addf %262, %265 : vector<8x64xf32>
    %c0_59 = arith.constant 0 : index
    %c0_60 = arith.constant 0 : index
    %c0_61 = arith.constant 0 : index
    %267 = vector.load %arg7[%c0_59, %c0_60, %c0_61] : memref<2x64x32xf32, #tpu.memory_space<vmem>>, vector<1x64x32xf32>
    %268 = vector.shape_cast %267 : vector<1x64x32xf32> to vector<64x32xf32>
    %cst_62 = arith.constant dense<0.000000e+00> : vector<8x32xf32>
    %269 = tpu.matmul %266, %268, %cst_62 {dimension_numbers = #tpu.dot_dimension_numbers<[1], [0], [0], [1], [0, 0, 1, 1], [], []>} : vector<8x64xf32>, vector<64x32xf32>, vector<8x32xf32> -> vector<8x32xf32>
    %270 = vector.broadcast %226 : vector<1x32xf32> to vector<8x32xf32>
    %271 = arith.addf %269, %270 : vector<8x32xf32>
    %272 = arith.addf %259, %271 : vector<8x32xf32>
    %cst_63 = arith.constant dense<0.000000e+00> : vector<8xf32>
    %273 = vector.multi_reduction <add>, %272, %cst_63 [1] : vector<8x32xf32> to vector<8xf32>
    %274 = vector.shape_cast %273 : vector<8xf32> to vector<8x1xf32>
    %cst_64 = arith.constant 3.200000e+01 : f32
    %275 = vector.broadcast %cst_64 : f32 to vector<8x1xf32>
    %276 = arith.divf %274, %275 : vector<8x1xf32>
    %277 = vector.broadcast %276 : vector<8x1xf32> to vector<8x32xf32>
    %278 = arith.subf %272, %277 : vector<8x32xf32>
    %279 = arith.mulf %278, %278 : vector<8x32xf32>
    %cst_65 = arith.constant dense<0.000000e+00> : vector<8xf32>
    %280 = vector.multi_reduction <add>, %279, %cst_65 [1] : vector<8x32xf32> to vector<8xf32>
    %281 = vector.shape_cast %280 : vector<8xf32> to vector<8x1xf32>
    %cst_66 = arith.constant 3.200000e+01 : f32
    %282 = vector.broadcast %cst_66 : f32 to vector<8x1xf32>
    %283 = arith.divf %281, %282 : vector<8x1xf32>
    %284 = vector.broadcast %276 : vector<8x1xf32> to vector<8x32xf32>
    %285 = arith.subf %272, %284 : vector<8x32xf32>
    %cst_67 = arith.constant 9.99999974E-6 : f32
    %286 = vector.broadcast %cst_67 : f32 to vector<8x1xf32>
    %287 = arith.addf %283, %286 : vector<8x1xf32>
    %288 = math.rsqrt %287 : vector<8x1xf32>
    %289 = vector.broadcast %288 : vector<8x1xf32> to vector<8x32xf32>
    %290 = arith.mulf %285, %289 : vector<8x32xf32>
    %291 = vector.broadcast %229 : vector<1x32xf32> to vector<8x32xf32>
    %292 = arith.mulf %290, %291 : vector<8x32xf32>
    %293 = vector.broadcast %230 : vector<1x32xf32> to vector<8x32xf32>
    %294 = arith.addf %292, %293 : vector<8x32xf32>
    %c1 = arith.constant 1 : index
    %c0_68 = arith.constant 0 : index
    %c0_69 = arith.constant 0 : index
    %295 = vector.load %arg2[%c1, %c0_68, %c0_69] : memref<2x32x64xf32, #tpu.memory_space<vmem>>, vector<1x32x64xf32>
    %296 = vector.shape_cast %295 : vector<1x32x64xf32> to vector<32x64xf32>
    %cst_70 = arith.constant dense<0.000000e+00> : vector<8x64xf32>
    %297 = tpu.matmul %294, %296, %cst_70 {dimension_numbers = #tpu.dot_dimension_numbers<[1], [0], [0], [1], [0, 0, 1, 1], [], []>} : vector<8x32xf32>, vector<32x64xf32>, vector<8x64xf32> -> vector<8x64xf32>
    %c1_71 = arith.constant 1 : index
    %c0_72 = arith.constant 0 : index
    %c0_73 = arith.constant 0 : index
    %298 = vector.load %arg3[%c1_71, %c0_72, %c0_73] : memref<2x1x64xf32, #tpu.memory_space<vmem>>, vector<1x1x64xf32>
    %299 = vector.shape_cast %298 : vector<1x1x64xf32> to vector<1x64xf32>
    %300 = vector.broadcast %299 : vector<1x64xf32> to vector<8x64xf32>
    %301 = arith.addf %297, %300 : vector<8x64xf32>
    %302 = vector.extract_strided_slice %301 {offsets = [0, 0], sizes = [8, 16], strides = [1, 1]} : vector<8x64xf32> to vector<8x16xf32>
    %303 = vector.extract_strided_slice %301 {offsets = [0, 16], sizes = [8, 16], strides = [1, 1]} : vector<8x64xf32> to vector<8x16xf32>
    %304 = vector.extract_strided_slice %301 {offsets = [0, 32], sizes = [8, 32], strides = [1, 1]} : vector<8x64xf32> to vector<8x32xf32>
    %305 = vector.extract_strided_slice %302 {offsets = [0, 0], sizes = [8, 4], strides = [1, 1]} : vector<8x16xf32> to vector<8x4xf32>
    %306 = vector.extract_strided_slice %302 {offsets = [0, 4], sizes = [8, 4], strides = [1, 1]} : vector<8x16xf32> to vector<8x4xf32>
    %307 = vector.extract_strided_slice %302 {offsets = [0, 8], sizes = [8, 4], strides = [1, 1]} : vector<8x16xf32> to vector<8x4xf32>
    %308 = vector.extract_strided_slice %302 {offsets = [0, 12], sizes = [8, 4], strides = [1, 1]} : vector<8x16xf32> to vector<8x4xf32>
    %309 = vector.extract_strided_slice %303 {offsets = [0, 0], sizes = [8, 4], strides = [1, 1]} : vector<8x16xf32> to vector<8x4xf32>
    %310 = vector.extract_strided_slice %303 {offsets = [0, 4], sizes = [8, 4], strides = [1, 1]} : vector<8x16xf32> to vector<8x4xf32>
    %311 = vector.extract_strided_slice %303 {offsets = [0, 8], sizes = [8, 4], strides = [1, 1]} : vector<8x16xf32> to vector<8x4xf32>
    %312 = vector.extract_strided_slice %303 {offsets = [0, 12], sizes = [8, 4], strides = [1, 1]} : vector<8x16xf32> to vector<8x4xf32>
    %313 = arith.minimumf %305, %306 : vector<8x4xf32>
    %314 = arith.minimumf %307, %308 : vector<8x4xf32>
    %315 = arith.minimumf %313, %314 : vector<8x4xf32>
    %316 = arith.maximumf %305, %306 : vector<8x4xf32>
    %317 = arith.maximumf %307, %308 : vector<8x4xf32>
    %318 = arith.maximumf %316, %317 : vector<8x4xf32>
    %319 = arith.minimumf %309, %310 : vector<8x4xf32>
    %320 = arith.minimumf %311, %312 : vector<8x4xf32>
    %321 = arith.minimumf %319, %320 : vector<8x4xf32>
    %322 = arith.maximumf %309, %310 : vector<8x4xf32>
    %323 = arith.maximumf %311, %312 : vector<8x4xf32>
    %324 = arith.maximumf %322, %323 : vector<8x4xf32>
    %325 = arith.subf %318, %315 : vector<8x4xf32>
    %cst_74 = arith.constant 9.99999993E-9 : f32
    %326 = vector.broadcast %cst_74 : f32 to vector<8x4xf32>
    %327 = arith.addf %325, %326 : vector<8x4xf32>
    %cst_75 = arith.constant 3.14159274 : f32
    %328 = vector.broadcast %cst_75 : f32 to vector<8x4xf32>
    %329 = arith.divf %328, %327 : vector<8x4xf32>
    %330 = arith.subf %324, %321 : vector<8x4xf32>
    %cst_76 = arith.constant 9.99999993E-9 : f32
    %331 = vector.broadcast %cst_76 : f32 to vector<8x4xf32>
    %332 = arith.addf %330, %331 : vector<8x4xf32>
    %cst_77 = arith.constant 3.14159274 : f32
    %333 = vector.broadcast %cst_77 : f32 to vector<8x4xf32>
    %334 = arith.divf %333, %332 : vector<8x4xf32>
    %c1_78 = arith.constant 1 : index
    %c0_79 = arith.constant 0 : index
    %c0_80 = arith.constant 0 : index
    %335 = vector.load %arg9[%c1_78, %c0_79, %c0_80] : memref<2x2x16xf32, #tpu.memory_space<vmem>>, vector<1x2x16xf32>
    %336 = vector.shape_cast %335 : vector<1x2x16xf32> to vector<2x16xf32>
    %337 = arith.subf %306, %315 : vector<8x4xf32>
    %338 = arith.mulf %337, %329 : vector<8x4xf32>
    %339 = arith.subf %310, %321 : vector<8x4xf32>
    %340 = arith.mulf %339, %334 : vector<8x4xf32>
    %341 = vector.extract_strided_slice %336 {offsets = [0, 4], sizes = [1, 4], strides = [1, 1]} : vector<2x16xf32> to vector<1x4xf32>
    %342 = math.cos %338 : vector<8x4xf32>
    %343 = vector.broadcast %341 : vector<1x4xf32> to vector<8x4xf32>
    %344 = arith.mulf %343, %342 : vector<8x4xf32>
    %345 = vector.extract_strided_slice %336 {offsets = [1, 4], sizes = [1, 4], strides = [1, 1]} : vector<2x16xf32> to vector<1x4xf32>
    %cst_81 = arith.constant 0.000000e+00 : f32
    %346 = vector.broadcast %cst_81 : f32 to vector<1x4xf32>
    %347 = arith.subf %346, %345 : vector<1x4xf32>
    %348 = math.sin %338 : vector<8x4xf32>
    %349 = vector.broadcast %347 : vector<1x4xf32> to vector<8x4xf32>
    %350 = arith.mulf %349, %348 : vector<8x4xf32>
    %351 = math.cos %340 : vector<8x4xf32>
    %352 = tpu.transpose %351, [1, 0] : vector<8x4xf32> -> vector<4x8xf32>
    %353 = arith.subf %307, %315 : vector<8x4xf32>
    %354 = arith.mulf %353, %329 : vector<8x4xf32>
    %355 = arith.subf %311, %321 : vector<8x4xf32>
    %356 = arith.mulf %355, %334 : vector<8x4xf32>
    %357 = vector.extract_strided_slice %336 {offsets = [0, 8], sizes = [1, 4], strides = [1, 1]} : vector<2x16xf32> to vector<1x4xf32>
    %358 = math.cos %354 : vector<8x4xf32>
    %359 = vector.broadcast %357 : vector<1x4xf32> to vector<8x4xf32>
    %360 = arith.mulf %359, %358 : vector<8x4xf32>
    %361 = vector.extract_strided_slice %336 {offsets = [1, 8], sizes = [1, 4], strides = [1, 1]} : vector<2x16xf32> to vector<1x4xf32>
    %cst_82 = arith.constant 0.000000e+00 : f32
    %362 = vector.broadcast %cst_82 : f32 to vector<1x4xf32>
    %363 = arith.subf %362, %361 : vector<1x4xf32>
    %364 = math.sin %354 : vector<8x4xf32>
    %365 = vector.broadcast %363 : vector<1x4xf32> to vector<8x4xf32>
    %366 = arith.mulf %365, %364 : vector<8x4xf32>
    %367 = math.cos %356 : vector<8x4xf32>
    %368 = tpu.transpose %367, [1, 0] : vector<8x4xf32> -> vector<4x8xf32>
    %369 = arith.subf %308, %315 : vector<8x4xf32>
    %370 = arith.mulf %369, %329 : vector<8x4xf32>
    %371 = arith.subf %312, %321 : vector<8x4xf32>
    %372 = arith.mulf %371, %334 : vector<8x4xf32>
    %373 = vector.extract_strided_slice %336 {offsets = [0, 12], sizes = [1, 4], strides = [1, 1]} : vector<2x16xf32> to vector<1x4xf32>
    %374 = math.cos %370 : vector<8x4xf32>
    %375 = vector.broadcast %373 : vector<1x4xf32> to vector<8x4xf32>
    %376 = arith.mulf %375, %374 : vector<8x4xf32>
    %377 = vector.extract_strided_slice %336 {offsets = [1, 12], sizes = [1, 4], strides = [1, 1]} : vector<2x16xf32> to vector<1x4xf32>
    %cst_83 = arith.constant 0.000000e+00 : f32
    %378 = vector.broadcast %cst_83 : f32 to vector<1x4xf32>
    %379 = arith.subf %378, %377 : vector<1x4xf32>
    %380 = math.sin %370 : vector<8x4xf32>
    %381 = vector.broadcast %379 : vector<1x4xf32> to vector<8x4xf32>
    %382 = arith.mulf %381, %380 : vector<8x4xf32>
    %383 = math.cos %372 : vector<8x4xf32>
    %384 = tpu.transpose %383, [1, 0] : vector<8x4xf32> -> vector<4x8xf32>
    %385 = vector.extract_strided_slice %344 {offsets = [0, 0], sizes = [8, 1], strides = [1, 1]} : vector<8x4xf32> to vector<8x1xf32>
    %386 = vector.extract_strided_slice %350 {offsets = [0, 0], sizes = [8, 1], strides = [1, 1]} : vector<8x4xf32> to vector<8x1xf32>
    %387 = vector.extract_strided_slice %352 {offsets = [0, 0], sizes = [1, 8], strides = [1, 1]} : vector<4x8xf32> to vector<1x8xf32>
    %388 = vector.broadcast %386 : vector<8x1xf32> to vector<8x8xf32>
    %389 = vector.broadcast %387 : vector<1x8xf32> to vector<8x8xf32>
    %390 = arith.mulf %388, %389 : vector<8x8xf32>
    %391 = vector.broadcast %385 : vector<8x1xf32> to vector<8x8xf32>
    %392 = arith.addf %391, %390 : vector<8x8xf32>
    %393 = vector.extract_strided_slice %360 {offsets = [0, 0], sizes = [8, 1], strides = [1, 1]} : vector<8x4xf32> to vector<8x1xf32>
    %394 = vector.extract_strided_slice %366 {offsets = [0, 0], sizes = [8, 1], strides = [1, 1]} : vector<8x4xf32> to vector<8x1xf32>
    %395 = vector.extract_strided_slice %368 {offsets = [0, 0], sizes = [1, 8], strides = [1, 1]} : vector<4x8xf32> to vector<1x8xf32>
    %396 = vector.broadcast %394 : vector<8x1xf32> to vector<8x8xf32>
    %397 = vector.broadcast %395 : vector<1x8xf32> to vector<8x8xf32>
    %398 = arith.mulf %396, %397 : vector<8x8xf32>
    %399 = vector.broadcast %393 : vector<8x1xf32> to vector<8x8xf32>
    %400 = arith.addf %399, %398 : vector<8x8xf32>
    %401 = arith.mulf %392, %400 : vector<8x8xf32>
    %402 = vector.extract_strided_slice %376 {offsets = [0, 0], sizes = [8, 1], strides = [1, 1]} : vector<8x4xf32> to vector<8x1xf32>
    %403 = vector.extract_strided_slice %382 {offsets = [0, 0], sizes = [8, 1], strides = [1, 1]} : vector<8x4xf32> to vector<8x1xf32>
    %404 = vector.extract_strided_slice %384 {offsets = [0, 0], sizes = [1, 8], strides = [1, 1]} : vector<4x8xf32> to vector<1x8xf32>
    %405 = vector.broadcast %403 : vector<8x1xf32> to vector<8x8xf32>
    %406 = vector.broadcast %404 : vector<1x8xf32> to vector<8x8xf32>
    %407 = arith.mulf %405, %406 : vector<8x8xf32>
    %408 = vector.broadcast %402 : vector<8x1xf32> to vector<8x8xf32>
    %409 = arith.addf %408, %407 : vector<8x8xf32>
    %410 = arith.mulf %401, %409 : vector<8x8xf32>
    %c0_84 = arith.constant 0 : index
    %c0_85 = arith.constant 0 : index
    %411 = vector.load %arg13[%c0_84, %c0_85] : memref<32x8xf32, #tpu.memory_space<vmem>>, vector<8x8xf32>
    tpu.vector_store %arg13[%c0_84, %c0_85], %410 {strides = array<i32>} : memref<32x8xf32, #tpu.memory_space<vmem>>, vector<8x8xf32>,
    %412 = vector.extract_strided_slice %344 {offsets = [0, 1], sizes = [8, 1], strides = [1, 1]} : vector<8x4xf32> to vector<8x1xf32>
    %413 = vector.extract_strided_slice %350 {offsets = [0, 1], sizes = [8, 1], strides = [1, 1]} : vector<8x4xf32> to vector<8x1xf32>
    %414 = vector.extract_strided_slice %352 {offsets = [1, 0], sizes = [1, 8], strides = [1, 1]} : vector<4x8xf32> to vector<1x8xf32>
    %415 = vector.broadcast %413 : vector<8x1xf32> to vector<8x8xf32>
    %416 = vector.broadcast %414 : vector<1x8xf32> to vector<8x8xf32>
    %417 = arith.mulf %415, %416 : vector<8x8xf32>
    %418 = vector.broadcast %412 : vector<8x1xf32> to vector<8x8xf32>
    %419 = arith.addf %418, %417 : vector<8x8xf32>
    %420 = vector.extract_strided_slice %360 {offsets = [0, 1], sizes = [8, 1], strides = [1, 1]} : vector<8x4xf32> to vector<8x1xf32>
    %421 = vector.extract_strided_slice %366 {offsets = [0, 1], sizes = [8, 1], strides = [1, 1]} : vector<8x4xf32> to vector<8x1xf32>
    %422 = vector.extract_strided_slice %368 {offsets = [1, 0], sizes = [1, 8], strides = [1, 1]} : vector<4x8xf32> to vector<1x8xf32>
    %423 = vector.broadcast %421 : vector<8x1xf32> to vector<8x8xf32>
    %424 = vector.broadcast %422 : vector<1x8xf32> to vector<8x8xf32>
    %425 = arith.mulf %423, %424 : vector<8x8xf32>
    %426 = vector.broadcast %420 : vector<8x1xf32> to vector<8x8xf32>
    %427 = arith.addf %426, %425 : vector<8x8xf32>
    %428 = arith.mulf %419, %427 : vector<8x8xf32>
    %429 = vector.extract_strided_slice %376 {offsets = [0, 1], sizes = [8, 1], strides = [1, 1]} : vector<8x4xf32> to vector<8x1xf32>
    %430 = vector.extract_strided_slice %382 {offsets = [0, 1], sizes = [8, 1], strides = [1, 1]} : vector<8x4xf32> to vector<8x1xf32>
    %431 = vector.extract_strided_slice %384 {offsets = [1, 0], sizes = [1, 8], strides = [1, 1]} : vector<4x8xf32> to vector<1x8xf32>
    %432 = vector.broadcast %430 : vector<8x1xf32> to vector<8x8xf32>
    %433 = vector.broadcast %431 : vector<1x8xf32> to vector<8x8xf32>
    %434 = arith.mulf %432, %433 : vector<8x8xf32>
    %435 = vector.broadcast %429 : vector<8x1xf32> to vector<8x8xf32>
    %436 = arith.addf %435, %434 : vector<8x8xf32>
    %437 = arith.mulf %428, %436 : vector<8x8xf32>
    %c8_86 = arith.constant 8 : index
    %c0_87 = arith.constant 0 : index
    %438 = vector.load %arg13[%c8_86, %c0_87] : memref<32x8xf32, #tpu.memory_space<vmem>>, vector<8x8xf32>
    tpu.vector_store %arg13[%c8_86, %c0_87], %437 {strides = array<i32>} : memref<32x8xf32, #tpu.memory_space<vmem>>, vector<8x8xf32>,
    %439 = vector.extract_strided_slice %344 {offsets = [0, 2], sizes = [8, 1], strides = [1, 1]} : vector<8x4xf32> to vector<8x1xf32>
    %440 = vector.extract_strided_slice %350 {offsets = [0, 2], sizes = [8, 1], strides = [1, 1]} : vector<8x4xf32> to vector<8x1xf32>
    %441 = vector.extract_strided_slice %352 {offsets = [2, 0], sizes = [1, 8], strides = [1, 1]} : vector<4x8xf32> to vector<1x8xf32>
    %442 = vector.broadcast %440 : vector<8x1xf32> to vector<8x8xf32>
    %443 = vector.broadcast %441 : vector<1x8xf32> to vector<8x8xf32>
    %444 = arith.mulf %442, %443 : vector<8x8xf32>
    %445 = vector.broadcast %439 : vector<8x1xf32> to vector<8x8xf32>
    %446 = arith.addf %445, %444 : vector<8x8xf32>
    %447 = vector.extract_strided_slice %360 {offsets = [0, 2], sizes = [8, 1], strides = [1, 1]} : vector<8x4xf32> to vector<8x1xf32>
    %448 = vector.extract_strided_slice %366 {offsets = [0, 2], sizes = [8, 1], strides = [1, 1]} : vector<8x4xf32> to vector<8x1xf32>
    %449 = vector.extract_strided_slice %368 {offsets = [2, 0], sizes = [1, 8], strides = [1, 1]} : vector<4x8xf32> to vector<1x8xf32>
    %450 = vector.broadcast %448 : vector<8x1xf32> to vector<8x8xf32>
    %451 = vector.broadcast %449 : vector<1x8xf32> to vector<8x8xf32>
    %452 = arith.mulf %450, %451 : vector<8x8xf32>
    %453 = vector.broadcast %447 : vector<8x1xf32> to vector<8x8xf32>
    %454 = arith.addf %453, %452 : vector<8x8xf32>
    %455 = arith.mulf %446, %454 : vector<8x8xf32>
    %456 = vector.extract_strided_slice %376 {offsets = [0, 2], sizes = [8, 1], strides = [1, 1]} : vector<8x4xf32> to vector<8x1xf32>
    %457 = vector.extract_strided_slice %382 {offsets = [0, 2], sizes = [8, 1], strides = [1, 1]} : vector<8x4xf32> to vector<8x1xf32>
    %458 = vector.extract_strided_slice %384 {offsets = [2, 0], sizes = [1, 8], strides = [1, 1]} : vector<4x8xf32> to vector<1x8xf32>
    %459 = vector.broadcast %457 : vector<8x1xf32> to vector<8x8xf32>
    %460 = vector.broadcast %458 : vector<1x8xf32> to vector<8x8xf32>
    %461 = arith.mulf %459, %460 : vector<8x8xf32>
    %462 = vector.broadcast %456 : vector<8x1xf32> to vector<8x8xf32>
    %463 = arith.addf %462, %461 : vector<8x8xf32>
    %464 = arith.mulf %455, %463 : vector<8x8xf32>
    %c16_88 = arith.constant 16 : index
    %c0_89 = arith.constant 0 : index
    %465 = vector.load %arg13[%c16_88, %c0_89] : memref<32x8xf32, #tpu.memory_space<vmem>>, vector<8x8xf32>
    tpu.vector_store %arg13[%c16_88, %c0_89], %464 {strides = array<i32>} : memref<32x8xf32, #tpu.memory_space<vmem>>, vector<8x8xf32>,
    %466 = vector.extract_strided_slice %344 {offsets = [0, 3], sizes = [8, 1], strides = [1, 1]} : vector<8x4xf32> to vector<8x1xf32>
    %467 = vector.extract_strided_slice %350 {offsets = [0, 3], sizes = [8, 1], strides = [1, 1]} : vector<8x4xf32> to vector<8x1xf32>
    %468 = vector.extract_strided_slice %352 {offsets = [3, 0], sizes = [1, 8], strides = [1, 1]} : vector<4x8xf32> to vector<1x8xf32>
    %469 = vector.broadcast %467 : vector<8x1xf32> to vector<8x8xf32>
    %470 = vector.broadcast %468 : vector<1x8xf32> to vector<8x8xf32>
    %471 = arith.mulf %469, %470 : vector<8x8xf32>
    %472 = vector.broadcast %466 : vector<8x1xf32> to vector<8x8xf32>
    %473 = arith.addf %472, %471 : vector<8x8xf32>
    %474 = vector.extract_strided_slice %360 {offsets = [0, 3], sizes = [8, 1], strides = [1, 1]} : vector<8x4xf32> to vector<8x1xf32>
    %475 = vector.extract_strided_slice %366 {offsets = [0, 3], sizes = [8, 1], strides = [1, 1]} : vector<8x4xf32> to vector<8x1xf32>
    %476 = vector.extract_strided_slice %368 {offsets = [3, 0], sizes = [1, 8], strides = [1, 1]} : vector<4x8xf32> to vector<1x8xf32>
    %477 = vector.broadcast %475 : vector<8x1xf32> to vector<8x8xf32>
    %478 = vector.broadcast %476 : vector<1x8xf32> to vector<8x8xf32>
    %479 = arith.mulf %477, %478 : vector<8x8xf32>
    %480 = vector.broadcast %474 : vector<8x1xf32> to vector<8x8xf32>
    %481 = arith.addf %480, %479 : vector<8x8xf32>
    %482 = arith.mulf %473, %481 : vector<8x8xf32>
    %483 = vector.extract_strided_slice %376 {offsets = [0, 3], sizes = [8, 1], strides = [1, 1]} : vector<8x4xf32> to vector<8x1xf32>
    %484 = vector.extract_strided_slice %382 {offsets = [0, 3], sizes = [8, 1], strides = [1, 1]} : vector<8x4xf32> to vector<8x1xf32>
    %485 = vector.extract_strided_slice %384 {offsets = [3, 0], sizes = [1, 8], strides = [1, 1]} : vector<4x8xf32> to vector<1x8xf32>
    %486 = vector.broadcast %484 : vector<8x1xf32> to vector<8x8xf32>
    %487 = vector.broadcast %485 : vector<1x8xf32> to vector<8x8xf32>
    %488 = arith.mulf %486, %487 : vector<8x8xf32>
    %489 = vector.broadcast %483 : vector<8x1xf32> to vector<8x8xf32>
    %490 = arith.addf %489, %488 : vector<8x8xf32>
    %491 = arith.mulf %482, %490 : vector<8x8xf32>
    %c24_90 = arith.constant 24 : index
    %c0_91 = arith.constant 0 : index
    %492 = vector.load %arg13[%c24_90, %c0_91] : memref<32x8xf32, #tpu.memory_space<vmem>>, vector<8x8xf32>
    tpu.vector_store %arg13[%c24_90, %c0_91], %491 {strides = array<i32>} : memref<32x8xf32, #tpu.memory_space<vmem>>, vector<8x8xf32>,
    %c0_92 = arith.constant 0 : index
    %c0_93 = arith.constant 0 : index
    %493 = vector.load %arg13[%c0_92, %c0_93] : memref<32x8xf32, #tpu.memory_space<vmem>>, vector<32x8xf32>
    %494 = math.exp %493 : vector<32x8xf32>
    %cst_94 = arith.constant dense<0.000000e+00> : vector<32xf32>
    %495 = vector.multi_reduction <add>, %494, %cst_94 [1] : vector<32x8xf32> to vector<32xf32>
    %496 = vector.shape_cast %495 : vector<32xf32> to vector<32x1xf32>
    %497 = tpu.reciprocal %496 {approx = true} : vector<32x1xf32> -> vector<32x1xf32>
    %498 = vector.broadcast %497 : vector<32x1xf32> to vector<32x8xf32>
    %499 = arith.mulf %494, %498 : vector<32x8xf32>
    %500 = vector.extract_strided_slice %499 {offsets = [0, 0], sizes = [8, 8], strides = [1, 1]} : vector<32x8xf32> to vector<8x8xf32>
    %501 = vector.extract_strided_slice %304 {offsets = [0, 0], sizes = [8, 8], strides = [1, 1]} : vector<8x32xf32> to vector<8x8xf32>
    %cst_95 = arith.constant dense<0.000000e+00> : vector<8x8xf32>
    %502 = tpu.matmul %500, %501, %cst_95 {dimension_numbers = #tpu.dot_dimension_numbers<[1], [0], [0], [1], [0, 0, 1, 1], [], []>} : vector<8x8xf32>, vector<8x8xf32>, vector<8x8xf32> -> vector<8x8xf32>
    %c0_96 = arith.constant 0 : index
    %c0_97 = arith.constant 0 : index
    %503 = vector.load %arg14[%c0_96, %c0_97] : memref<8x32xf32, #tpu.memory_space<vmem>>, vector<8x8xf32>
    tpu.vector_store %arg14[%c0_96, %c0_97], %502 {strides = array<i32>} : memref<8x32xf32, #tpu.memory_space<vmem>>, vector<8x8xf32>,
    %504 = vector.extract_strided_slice %499 {offsets = [8, 0], sizes = [8, 8], strides = [1, 1]} : vector<32x8xf32> to vector<8x8xf32>
    %505 = vector.extract_strided_slice %304 {offsets = [0, 8], sizes = [8, 8], strides = [1, 1]} : vector<8x32xf32> to vector<8x8xf32>
    %cst_98 = arith.constant dense<0.000000e+00> : vector<8x8xf32>
    %506 = tpu.matmul %504, %505, %cst_98 {dimension_numbers = #tpu.dot_dimension_numbers<[1], [0], [0], [1], [0, 0, 1, 1], [], []>} : vector<8x8xf32>, vector<8x8xf32>, vector<8x8xf32> -> vector<8x8xf32>
    %c0_99 = arith.constant 0 : index
    %c8_100 = arith.constant 8 : index
    %507 = vector.load %arg14[%c0_99, %c8_100] : memref<8x32xf32, #tpu.memory_space<vmem>>, vector<8x8xf32>
    tpu.vector_store %arg14[%c0_99, %c8_100], %506 {strides = array<i32>} : memref<8x32xf32, #tpu.memory_space<vmem>>, vector<8x8xf32>,
    %508 = vector.extract_strided_slice %499 {offsets = [16, 0], sizes = [8, 8], strides = [1, 1]} : vector<32x8xf32> to vector<8x8xf32>
    %509 = vector.extract_strided_slice %304 {offsets = [0, 16], sizes = [8, 8], strides = [1, 1]} : vector<8x32xf32> to vector<8x8xf32>
    %cst_101 = arith.constant dense<0.000000e+00> : vector<8x8xf32>
    %510 = tpu.matmul %508, %509, %cst_101 {dimension_numbers = #tpu.dot_dimension_numbers<[1], [0], [0], [1], [0, 0, 1, 1], [], []>} : vector<8x8xf32>, vector<8x8xf32>, vector<8x8xf32> -> vector<8x8xf32>
    %c0_102 = arith.constant 0 : index
    %c16_103 = arith.constant 16 : index
    %511 = vector.load %arg14[%c0_102, %c16_103] : memref<8x32xf32, #tpu.memory_space<vmem>>, vector<8x8xf32>
    tpu.vector_store %arg14[%c0_102, %c16_103], %510 {strides = array<i32>} : memref<8x32xf32, #tpu.memory_space<vmem>>, vector<8x8xf32>,
    %512 = vector.extract_strided_slice %499 {offsets = [24, 0], sizes = [8, 8], strides = [1, 1]} : vector<32x8xf32> to vector<8x8xf32>
    %513 = vector.extract_strided_slice %304 {offsets = [0, 24], sizes = [8, 8], strides = [1, 1]} : vector<8x32xf32> to vector<8x8xf32>
    %cst_104 = arith.constant dense<0.000000e+00> : vector<8x8xf32>
    %514 = tpu.matmul %512, %513, %cst_104 {dimension_numbers = #tpu.dot_dimension_numbers<[1], [0], [0], [1], [0, 0, 1, 1], [], []>} : vector<8x8xf32>, vector<8x8xf32>, vector<8x8xf32> -> vector<8x8xf32>
    %c0_105 = arith.constant 0 : index
    %c24_106 = arith.constant 24 : index
    %515 = vector.load %arg14[%c0_105, %c24_106] : memref<8x32xf32, #tpu.memory_space<vmem>>, vector<8x8xf32>
    tpu.vector_store %arg14[%c0_105, %c24_106], %514 {strides = array<i32>} : memref<8x32xf32, #tpu.memory_space<vmem>>, vector<8x8xf32>,
    %c1_107 = arith.constant 1 : index
    %c0_108 = arith.constant 0 : index
    %c0_109 = arith.constant 0 : index
    %516 = vector.load %arg8[%c1_107, %c0_108, %c0_109] : memref<2x6x32xf32, #tpu.memory_space<vmem>>, vector<1x6x32xf32>
    %517 = vector.shape_cast %516 : vector<1x6x32xf32> to vector<6x32xf32>
    %518 = vector.extract_strided_slice %517 {offsets = [0, 0], sizes = [1, 32], strides = [1, 1]} : vector<6x32xf32> to vector<1x32xf32>
    %519 = vector.extract_strided_slice %517 {offsets = [1, 0], sizes = [1, 32], strides = [1, 1]} : vector<6x32xf32> to vector<1x32xf32>
    %520 = vector.extract_strided_slice %517 {offsets = [2, 0], sizes = [1, 32], strides = [1, 1]} : vector<6x32xf32> to vector<1x32xf32>
    %521 = vector.extract_strided_slice %517 {offsets = [3, 0], sizes = [1, 32], strides = [1, 1]} : vector<6x32xf32> to vector<1x32xf32>
    %522 = vector.extract_strided_slice %517 {offsets = [4, 0], sizes = [1, 32], strides = [1, 1]} : vector<6x32xf32> to vector<1x32xf32>
    %523 = vector.extract_strided_slice %517 {offsets = [5, 0], sizes = [1, 32], strides = [1, 1]} : vector<6x32xf32> to vector<1x32xf32>
    %c0_110 = arith.constant 0 : index
    %c0_111 = arith.constant 0 : index
    %524 = vector.load %arg14[%c0_110, %c0_111] : memref<8x32xf32, #tpu.memory_space<vmem>>, vector<8x32xf32>
    %c1_112 = arith.constant 1 : index
    %c0_113 = arith.constant 0 : index
    %c0_114 = arith.constant 0 : index
    %525 = vector.load %arg4[%c1_112, %c0_113, %c0_114] : memref<2x32x32xf32, #tpu.memory_space<vmem>>, vector<1x32x32xf32>
    %526 = vector.shape_cast %525 : vector<1x32x32xf32> to vector<32x32xf32>
    %cst_115 = arith.constant dense<0.000000e+00> : vector<8x32xf32>
    %527 = tpu.matmul %524, %526, %cst_115 {dimension_numbers = #tpu.dot_dimension_numbers<[1], [0], [0], [1], [0, 0, 1, 1], [], []>} : vector<8x32xf32>, vector<32x32xf32>, vector<8x32xf32> -> vector<8x32xf32>
    %528 = vector.broadcast %518 : vector<1x32xf32> to vector<8x32xf32>
    %529 = arith.addf %527, %528 : vector<8x32xf32>
    %530 = arith.addf %294, %529 : vector<8x32xf32>
    %cst_116 = arith.constant dense<0.000000e+00> : vector<8xf32>
    %531 = vector.multi_reduction <add>, %530, %cst_116 [1] : vector<8x32xf32> to vector<8xf32>
    %532 = vector.shape_cast %531 : vector<8xf32> to vector<8x1xf32>
    %cst_117 = arith.constant 3.200000e+01 : f32
    %533 = vector.broadcast %cst_117 : f32 to vector<8x1xf32>
    %534 = arith.divf %532, %533 : vector<8x1xf32>
    %535 = vector.broadcast %534 : vector<8x1xf32> to vector<8x32xf32>
    %536 = arith.subf %530, %535 : vector<8x32xf32>
    %537 = arith.mulf %536, %536 : vector<8x32xf32>
    %cst_118 = arith.constant dense<0.000000e+00> : vector<8xf32>
    %538 = vector.multi_reduction <add>, %537, %cst_118 [1] : vector<8x32xf32> to vector<8xf32>
    %539 = vector.shape_cast %538 : vector<8xf32> to vector<8x1xf32>
    %cst_119 = arith.constant 3.200000e+01 : f32
    %540 = vector.broadcast %cst_119 : f32 to vector<8x1xf32>
    %541 = arith.divf %539, %540 : vector<8x1xf32>
    %542 = vector.broadcast %534 : vector<8x1xf32> to vector<8x32xf32>
    %543 = arith.subf %530, %542 : vector<8x32xf32>
    %cst_120 = arith.constant 9.99999974E-6 : f32
    %544 = vector.broadcast %cst_120 : f32 to vector<8x1xf32>
    %545 = arith.addf %541, %544 : vector<8x1xf32>
    %546 = math.rsqrt %545 : vector<8x1xf32>
    %547 = vector.broadcast %546 : vector<8x1xf32> to vector<8x32xf32>
    %548 = arith.mulf %543, %547 : vector<8x32xf32>
    %549 = vector.broadcast %520 : vector<1x32xf32> to vector<8x32xf32>
    %550 = arith.mulf %548, %549 : vector<8x32xf32>
    %551 = vector.broadcast %521 : vector<1x32xf32> to vector<8x32xf32>
    %552 = arith.addf %550, %551 : vector<8x32xf32>
    %c1_121 = arith.constant 1 : index
    %c0_122 = arith.constant 0 : index
    %c0_123 = arith.constant 0 : index
    %553 = vector.load %arg5[%c1_121, %c0_122, %c0_123] : memref<2x32x64xf32, #tpu.memory_space<vmem>>, vector<1x32x64xf32>
    %554 = vector.shape_cast %553 : vector<1x32x64xf32> to vector<32x64xf32>
    %cst_124 = arith.constant dense<0.000000e+00> : vector<8x64xf32>
    %555 = tpu.matmul %552, %554, %cst_124 {dimension_numbers = #tpu.dot_dimension_numbers<[1], [0], [0], [1], [0, 0, 1, 1], [], []>} : vector<8x32xf32>, vector<32x64xf32>, vector<8x64xf32> -> vector<8x64xf32>
    %c1_125 = arith.constant 1 : index
    %c0_126 = arith.constant 0 : index
    %c0_127 = arith.constant 0 : index
    %556 = vector.load %arg6[%c1_125, %c0_126, %c0_127] : memref<2x1x64xf32, #tpu.memory_space<vmem>>, vector<1x1x64xf32>
    %557 = vector.shape_cast %556 : vector<1x1x64xf32> to vector<1x64xf32>
    %558 = vector.broadcast %557 : vector<1x64xf32> to vector<8x64xf32>
    %559 = arith.addf %555, %558 : vector<8x64xf32>
    %c1_128 = arith.constant 1 : index
    %c0_129 = arith.constant 0 : index
    %c0_130 = arith.constant 0 : index
    %560 = vector.load %arg7[%c1_128, %c0_129, %c0_130] : memref<2x64x32xf32, #tpu.memory_space<vmem>>, vector<1x64x32xf32>
    %561 = vector.shape_cast %560 : vector<1x64x32xf32> to vector<64x32xf32>
    %cst_131 = arith.constant dense<0.000000e+00> : vector<8x32xf32>
    %562 = tpu.matmul %559, %561, %cst_131 {dimension_numbers = #tpu.dot_dimension_numbers<[1], [0], [0], [1], [0, 0, 1, 1], [], []>} : vector<8x64xf32>, vector<64x32xf32>, vector<8x32xf32> -> vector<8x32xf32>
    %563 = vector.broadcast %519 : vector<1x32xf32> to vector<8x32xf32>
    %564 = arith.addf %562, %563 : vector<8x32xf32>
    %565 = arith.addf %552, %564 : vector<8x32xf32>
    %cst_132 = arith.constant dense<0.000000e+00> : vector<8xf32>
    %566 = vector.multi_reduction <add>, %565, %cst_132 [1] : vector<8x32xf32> to vector<8xf32>
    %567 = vector.shape_cast %566 : vector<8xf32> to vector<8x1xf32>
    %cst_133 = arith.constant 3.200000e+01 : f32
    %568 = vector.broadcast %cst_133 : f32 to vector<8x1xf32>
    %569 = arith.divf %567, %568 : vector<8x1xf32>
    %570 = vector.broadcast %569 : vector<8x1xf32> to vector<8x32xf32>
    %571 = arith.subf %565, %570 : vector<8x32xf32>
    %572 = arith.mulf %571, %571 : vector<8x32xf32>
    %cst_134 = arith.constant dense<0.000000e+00> : vector<8xf32>
    %573 = vector.multi_reduction <add>, %572, %cst_134 [1] : vector<8x32xf32> to vector<8xf32>
    %574 = vector.shape_cast %573 : vector<8xf32> to vector<8x1xf32>
    %cst_135 = arith.constant 3.200000e+01 : f32
    %575 = vector.broadcast %cst_135 : f32 to vector<8x1xf32>
    %576 = arith.divf %574, %575 : vector<8x1xf32>
    %577 = vector.broadcast %569 : vector<8x1xf32> to vector<8x32xf32>
    %578 = arith.subf %565, %577 : vector<8x32xf32>
    %cst_136 = arith.constant 9.99999974E-6 : f32
    %579 = vector.broadcast %cst_136 : f32 to vector<8x1xf32>
    %580 = arith.addf %576, %579 : vector<8x1xf32>
    %581 = math.rsqrt %580 : vector<8x1xf32>
    %582 = vector.broadcast %581 : vector<8x1xf32> to vector<8x32xf32>
    %583 = arith.mulf %578, %582 : vector<8x32xf32>
    %584 = vector.broadcast %522 : vector<1x32xf32> to vector<8x32xf32>
    %585 = arith.mulf %583, %584 : vector<8x32xf32>
    %586 = vector.broadcast %523 : vector<1x32xf32> to vector<8x32xf32>
    %587 = arith.addf %585, %586 : vector<8x32xf32>
    %c0_137 = arith.constant 0 : index
    %c0_138 = arith.constant 0 : index
    %588 = vector.load %arg10[%c0_137, %c0_138] : memref<32x128xf32, #tpu.memory_space<vmem>>, vector<32x128xf32>
    %cst_139 = arith.constant dense<0.000000e+00> : vector<8x128xf32>
    %589 = tpu.matmul %587, %588, %cst_139 {dimension_numbers = #tpu.dot_dimension_numbers<[1], [0], [0], [1], [0, 0, 1, 1], [], []>} : vector<8x32xf32>, vector<32x128xf32>, vector<8x128xf32> -> vector<8x128xf32>
    %c0_140 = arith.constant 0 : index
    %c0_141 = arith.constant 0 : index
    %590 = vector.load %arg11[%c0_140, %c0_141] : memref<1x128xf32, #tpu.memory_space<vmem>>, vector<1x128xf32>
    %591 = vector.broadcast %590 : vector<1x128xf32> to vector<8x128xf32>
    %592 = arith.addf %589, %591 : vector<8x128xf32>
    %c0_142 = arith.constant 0 : index
    %c0_143 = arith.constant 0 : index
    %c0_144 = arith.constant 0 : index
    %593 = vector.load %arg12[%c0_142, %c0_143, %c0_144] : memref<1x8x128xf32, #tpu.memory_space<vmem>>, vector<1x8x128xf32>
    %594 = vector.shape_cast %593 : vector<1x8x128xf32> to vector<8x128xf32>
    %595 = vector.shape_cast %592 : vector<8x128xf32> to vector<1x8x128xf32>
    tpu.vector_store %arg12[%c0_142, %c0_143, %c0_144], %595 {strides = array<i32>} : memref<1x8x128xf32, #tpu.memory_space<vmem>>, vector<1x8x128xf32>,
    return
  }
  func.func @transform_0(%arg0: i32) -> (i32, i32, i32) {
    %c0_i32 = arith.constant 0 : i32
    %c0_i32_0 = arith.constant 0 : i32
    %c0_i32_1 = arith.constant 0 : i32
    return %arg0, %c0_i32, %c0_i32_0 : i32, i32, i32
  }
  func.func @transform_1(%arg0: i32) -> (i32, i32, i32) {
    %c0_i32 = arith.constant 0 : i32
    %c0_i32_0 = arith.constant 0 : i32
    %c0_i32_1 = arith.constant 0 : i32
    %c0_i32_2 = arith.constant 0 : i32
    return %c0_i32, %c0_i32_0, %c0_i32_1 : i32, i32, i32
  }
  func.func @transform_2(%arg0: i32) -> (i32, i32, i32) {
    %c0_i32 = arith.constant 0 : i32
    %c0_i32_0 = arith.constant 0 : i32
    %c0_i32_1 = arith.constant 0 : i32
    %c0_i32_2 = arith.constant 0 : i32
    return %c0_i32, %c0_i32_0, %c0_i32_1 : i32, i32, i32
  }
  func.func @transform_3(%arg0: i32) -> (i32, i32, i32) {
    %c0_i32 = arith.constant 0 : i32
    %c0_i32_0 = arith.constant 0 : i32
    %c0_i32_1 = arith.constant 0 : i32
    %c0_i32_2 = arith.constant 0 : i32
    return %c0_i32, %c0_i32_0, %c0_i32_1 : i32, i32, i32
  }
  func.func @transform_4(%arg0: i32) -> (i32, i32, i32) {
    %c0_i32 = arith.constant 0 : i32
    %c0_i32_0 = arith.constant 0 : i32
    %c0_i32_1 = arith.constant 0 : i32
    %c0_i32_2 = arith.constant 0 : i32
    return %c0_i32, %c0_i32_0, %c0_i32_1 : i32, i32, i32
  }
  func.func @transform_5(%arg0: i32) -> (i32, i32, i32) {
    %c0_i32 = arith.constant 0 : i32
    %c0_i32_0 = arith.constant 0 : i32
    %c0_i32_1 = arith.constant 0 : i32
    %c0_i32_2 = arith.constant 0 : i32
    return %c0_i32, %c0_i32_0, %c0_i32_1 : i32, i32, i32
  }
  func.func @transform_6(%arg0: i32) -> (i32, i32, i32) {
    %c0_i32 = arith.constant 0 : i32
    %c0_i32_0 = arith.constant 0 : i32
    %c0_i32_1 = arith.constant 0 : i32
    %c0_i32_2 = arith.constant 0 : i32
    return %c0_i32, %c0_i32_0, %c0_i32_1 : i32, i32, i32
  }
  func.func @transform_7(%arg0: i32) -> (i32, i32, i32) {
    %c0_i32 = arith.constant 0 : i32
    %c0_i32_0 = arith.constant 0 : i32
    %c0_i32_1 = arith.constant 0 : i32
    %c0_i32_2 = arith.constant 0 : i32
    return %c0_i32, %c0_i32_0, %c0_i32_1 : i32, i32, i32
  }
  func.func @transform_8(%arg0: i32) -> (i32, i32, i32) {
    %c0_i32 = arith.constant 0 : i32
    %c0_i32_0 = arith.constant 0 : i32
    %c0_i32_1 = arith.constant 0 : i32
    %c0_i32_2 = arith.constant 0 : i32
    return %c0_i32, %c0_i32_0, %c0_i32_1 : i32, i32, i32
  }
  func.func @transform_9(%arg0: i32) -> (i32, i32) {
    %c0_i32 = arith.constant 0 : i32
    %c0_i32_0 = arith.constant 0 : i32
    %c0_i32_1 = arith.constant 0 : i32
    return %c0_i32, %c0_i32_0 : i32, i32
  }
  func.func @transform_10(%arg0: i32) -> (i32, i32) {
    %c0_i32 = arith.constant 0 : i32
    %c0_i32_0 = arith.constant 0 : i32
    %c0_i32_1 = arith.constant 0 : i32
    return %c0_i32, %c0_i32_0 : i32, i32
  }
  func.func @transform_11(%arg0: i32) -> (i32, i32, i32) {
    %c0_i32 = arith.constant 0 : i32
    %c0_i32_0 = arith.constant 0 : i32
    %c0_i32_1 = arith.constant 0 : i32
    return %arg0, %c0_i32, %c0_i32_0 : i32, i32, i32
  }
}

</mosaic_0001>

<bundles_post_ra>
// kernel: quantum_transformer_forward.1
= control target key start
LH: loop header
LB: loop body
LE: loop exit
PB: predicated region body
PF: predicated region fallthrough
CT: control target
= control target key end

     0   :  { %s3984_s17 = smov 0   ;;  %s5077_s0 = inlined_call_operand.vmem [shape: f32[2,8,32], index: 0, kind: input, shape index: {}]   ;;  %s5078_s1 = inlined_call_operand.vmem [shape: f32[2,32,64], index: 1, kind: input, shape index: {}]   ;;  %s5079_s2 = inlined_call_operand.vmem [shape: f32[2,1,64], index: 2, kind: input, shape index: {}]   ;;  %s5080_s3 = inlined_call_operand.vmem [shape: f32[2,32,32], index: 3, kind: input, shape index: {}]   ;;  %s5081_s4 = inlined_call_operand.vmem [shape: f32[2,32,64], index: 4, kind: input, shape index: {}]   ;;  %s5082_s5 = inlined_call_operand.vmem [shape: f32[2,1,64], index: 5, kind: input, shape index: {}]   ;;  %s5083_s6 = inlined_call_operand.vmem [shape: f32[2,64,32], index: 6, kind: input, shape index: {}]   ;;  %s5084_s7 = inlined_call_operand.vmem [shape: f32[2,6,32], index: 7, kind: input, shape index: {}]   ;;  %s5085_s8 = inlined_call_operand.vmem [shape: f32[2,2,16], index: 8, kind: input, shape index: {}]   ;;  %s5086_s9 = inlined_call_operand.vmem [shape: f32[32,128], index: 9, kind: input, shape index: {}]   ;;  %s5087_s10 = inlined_call_operand.vmem [shape: f32[1,128], index: 10, kind: input, shape index: {}]   ;;  %s5088_s11 = inlined_call_operand.vmem [shape: f32[2,8,128], index: 11, kind: output, shape index: {}]  }
   0x1 LB: > { %s3657_s18 = sadd.s32 4294967295, %s3888_s17   ;;  %p3661_p0 = scmp.ge.s32.totalorder %s3888_s17, 1  ;;  %s3888_s17 = sphi %s3984_s17, %s21_s17  }
   0x2   : > { %p336_p1 = scmp.lt.s32.totalorder %s3888_s17, 3 }
   0x4   : > { %p337_p2 = pnand %p3661_p0, %p336_p1 }
   0x5   : > { %p374_p3 = scmp.lt.s32.totalorder (!%p337_p2), %s3657_s18, 1  ;;  %s3890_s14 = smov (!%p337_p2), 96  }
   0x6   : > { %340 = sbr.rel (%p337_p2) target bundleno = 4695 (0x1257), region = 64  ;;  %s3891_s15 = smov (!%p337_p2), 124  }
   0x7   : > { %s3892_s16 = smov (!%p337_p2), 120   ;;  %s3893_s19 = smov (!%p337_p2), 8  }
   0x8   : > { %s3894_s20 = smov (!%p337_p2), 4   ;;  %s3895_s21 = smov (!%p337_p2), 12  }
   0x9   : > { %s5105_s24 = smov (!%p337_p2), 108   ;;  %s5103_s25 = smov (!%p337_p2), 100  }
   0xa   : > { %s3910_s26 = smov (!%p337_p2), 104   ;;  %s5100_s28 = smov (!%p337_p2), 72  }
   0xb   : > { %v386_v0 = vld [vmem:[%s5078_s1 + $0x18] sm:$0xff]  ;;  %v385_v1 = vld [vmem:[%s5078_s1 + $0x10] sm:$0xff]  ;;  %v384_v2 = vld [vmem:[%s5078_s1 + $0x8] sm:$0xff]  ;;  %s5135_s18 = smov (!%p374_p3, %s3657_s18), 1  ;;  %vm391_vm0 = vcmask 261120   ;;  %s5102_s29 = smov 88  }
   0xc   : > { %407 = vmatpush.msra.mxu0 %v386_v0  ;;  %v383_v3 = vld [vmem:[%s5078_s1] sm:$0xff]  ;;  %s5099_s27 = sshll.u32 %s5135_s18, 3  ;;  %v3896_v51 = vmov 2102212464   ;;  %v3897_v53 = vmov 920167782  }
   0xd   : > { %s4012_s30 = scalar_lea.vmem %s5077_s0, %s5099_s27  ;;  %v3830_v5 = vld [vmem:[%s5079_s2] ss:$0 sm:$0xff]  ;;  %v3898_v56 = vmov 683565275   ;;  %v3899_v59 = vmov 1326507024  }
   0xe   : > { %408 = vmatpush.msra.mxu0 %v385_v1  ;;  %v382_v4 = vld [vmem:[%s4012_s30] sm:$0xff]  ;;  %v3900_v61 = vmov 2475754826   ;;  %v3901_v1 = vmov 2131351028   ;;  %s5101_s12 = smov 80  }
   0xf   : > { %s5104_s13 = smov 24   ;;  %s5106_s22 = smov 16  }
  0x10   : > { %409 = vmatpush.msra.mxu0 %v384_v2  ;;  %s5131_s23 = smov 16   ;;  %s5132_s27 = smov 24  }
  0x12   : > { %410 = vmatpush.msra.mxu0 %v383_v3 }
  0x13   : > { %3664 = vmatmul.msk.f32.vlgmr.msra.gmra.mxu0 %vm391_vm0, %v382_v4 }
  0x90   : > { %v412_v6 = vpop.f32.mrf.mxu0 }
  0x91   : > { %v4019_v7 = vadd.f32 %v3830_v5, %v412_v6 }
  0x93   : > { %1702 = vrot.lane.b32.xlu2 %v4019_v7, %s3890_s14  ;;  %416 = vrot.lane.b32.xlu0 %v4019_v7, %s3891_s15 }
  0xed   : > { %v1703_v8 = vpop.permute.xlu2 %1702 }
  0xee   : > { %1723 = vmatpush.msra.mxu3 %v1703_v8 }
 0x105   : > { %v417_v9 = vpop.permute.xlu0 %416 }
 0x106   : > { %v419_v10 = vmin.f32 %v4019_v7, %v417_v9  ;;  %v425_v11 = vmax.f32 %v4019_v7, %v417_v9 }
 0x108   : > { %427 = vrot.lane.b32.xlu1 %v425_v11, %s3892_s16  ;;  %421 = vrot.lane.b32.xlu0 %v419_v10, %s3892_s16 }
 0x17a   : > { %v428_v12 = vpop.permute.xlu1 %427  ;;  %v422_v13 = vpop.permute.xlu0 %421 }
 0x17b   : > { %v430_v14 = vmax.f32 %v425_v11, %v428_v12  ;;  %v424_v15 = vmin.f32 %v419_v10, %v422_v13 }
 0x17d   : > { %v431_v16 = vsub.f32 %v430_v14, %v424_v15  ;;  %809 = vrot.lane.b32.xlu2 %v424_v15, %s3893_s19  ;;  %450 = vrot.lane.b32.xlu1 %v424_v15, %s3894_s20 }
 0x17f   : > { %v432_v17 = vadd.f32 1e-08, %v431_v16 }
 0x181   : > { %3835 = vrcp.f32 %v432_v17  ;;  %v444_v21 = vand.u32 2147483648, %v432_v17  ;;  %v442_v23 = vand.u32 2147483647, %v432_v17  ;;  %vm438_vm2 = vweird.f32 %v432_v17 }
 0x183   : > { %v445_v25 = vor.u32 1.1754944e-38, %v444_v21  ;;  %vm443_vm4 = vcmp.eq.f32.partialorder %v442_v23, 8.507059e+37 }
 0x185   : > { %1164 = vrot.lane.b32.xlu1 %v424_v15, %s3895_s21 }
 0x187   : > { %v3836_v18 = vpop.eup %3835 }
 0x188   : > { %v434_v19 = vmul.f32 %v3836_v18, %v432_v17  ;;  %vm439_vm1 = vweird.f32 %v3836_v18 }
 0x189   : > { %vm440_vm3 = vmor %vm438_vm2, %vm439_vm1 }
 0x18a   : > { %v435_v20 = vsub.f32 1.0, %v434_v19 }
 0x18c   : > { %v436_v22 = vmul.f32 %v3836_v18, %v435_v20 }
 0x18e   : > { %v437_v24 = vadd.f32 %v3836_v18, %v436_v22 }
 0x190   : > { %v441_v26 = vsel %vm440_vm3, %v3836_v18, %v437_v24 }
 0x191   : > { %v446_v27 = vsel %vm443_vm4, %v445_v25, %v441_v26 }
 0x192   : > { %v447_v28 = vmul.f32 3.1415927, %v446_v27 }
 0x194   : > { %813 = vrot.lane.b32.xlu0 %v447_v28, %s3893_s19  ;;  %455 = vrot.lane.b32.xlu2 %v447_v28, %s3894_s20 }
 0x19c   : > { %1168 = vrot.lane.b32.xlu2 %v447_v28, %s3895_s21 }
 0x1d7   : > { %v810_v29 = vpop.permute.xlu2 %809 }
 0x1d8   : > { %v812_v47 = vsub.f32 %v4019_v7, %v810_v29 }
 0x1ee   : > { %v456_v30 = vpop.permute.xlu2 %455 }
 0x1ef   : > { %v451_v31 = vpop.permute.xlu1 %450 }
 0x1f0   : > { %v453_v32 = vsub.f32 %v4019_v7, %v451_v31 }
 0x1f2   : > { %v4036_v33 = vmul.f32 %v456_v30, %v453_v32 }
 0x1f4   : > { %v462_v34 = vand.u32 2139095040, %v4036_v33  ;;  %v459_v43 = vand.u32 2147483647, %v4036_v33 }
 0x1f6   : > { %v463_v35 = vshrl.u32 %v462_v34, 23  ;;  %v1169_v39 = vpop.permute.xlu2 %1168  ;;  %v466_v50 = vand.u32 8388607, %v459_v43 }
 0x1f7   : > { %v1165_v36 = vpop.permute.xlu1 %1164 }
 0x1f8   : > { %v3665_v37 = vadd.s32 4294967169, %v463_v35  ;;  %v1167_v38 = vsub.f32 %v4019_v7, %v1165_v36  ;;  %v467_v8 = vor.u32 8388608, %v466_v50 }
 0x1fa   : > { %v469_v40 = vadd.s32 1, %v3665_v37  ;;  %v4040_v41 = vmul.f32 %v1169_v39, %v1167_v38  ;;  %v4074_v20 = vshll.u32 %v467_v8, 8 }
 0x1fc   : > { %vm470_vm5 = vcmp.gt.s32.totalorder %v469_v40, 0  ;;  %v1175_v42 = vand.u32 2139095040, %v4040_v41  ;;  %v508_v27 = vand.u32 65535, %v4074_v20  ;;  %v509_v34 = vshrl.u32 %v4074_v20, 16 }
 0x1fd   : > { %v471_v44 = vsel %vm470_vm5, %v469_v40, 0  ;;  %v1172_v40 = vand.u32 2147483647, %v4040_v41 }
 0x1fe   : > { %v473_v45 = vand.u32 31, %v471_v44  ;;  %v1176_v46 = vshrl.u32 %v1175_v42, 23  ;;  %v4045_v48 = vshrl.u32 %v471_v44, 5 }
 0x200   : > { %v474_v49 = vsub.s32 32, %v473_v45  ;;  %v485_v52 = vshll.u32 %v3896_v51, %v473_v45  ;;  %v488_v54 = vshll.u32 %v3897_v53, %v473_v45  ;;  %v3677_v55 = vadd.s32 4294967169, %v1176_v46 }
 0x201   : > { %v476_v57 = vshll.u32 %v3898_v56, %v473_v45  ;;  %v479_v63 = vshll.u32 %v3900_v61, %v473_v45  ;;  %v482_v3 = vshll.u32 %v3901_v1, %v473_v45  ;;  %vm494_vm6 = vcmp.lt.s32.totalorder %v4045_v48, 4 }
 0x202   : > { %v486_v58 = vshrl.u32 %v3897_v53, %v474_v49  ;;  %v489_v60 = vshrl.u32 %v3899_v59, %v474_v49  ;;  %v477_v62 = vshrl.u32 %v3900_v61, %v474_v49  ;;  %v1182_v0 = vadd.s32 1, %v3677_v55 }
 0x203   : > { %v480_v2 = vshrl.u32 %v3901_v1, %v474_v49  ;;  %v483_v4 = vshrl.u32 %v3896_v51, %v474_v49  ;;  %vm491_vm8 = vcmp.lt.s32.totalorder %v4045_v48, 1  ;;  %vm493_vm9 = vcmp.lt.s32.totalorder %v4045_v48, 3 }
 0x204   : > { %v487_v5 = vor.u32 %v486_v58, %v485_v52  ;;  %v490_v6 = vor.u32 %v489_v60, %v488_v54  ;;  %vm1183_vm7 = vcmp.gt.s32.totalorder %v1182_v0, 0  ;;  %v478_v9 = vor.u32 %v477_v62, %v476_v57 }
 0x205   : > { %v481_v10 = vor.u32 %v480_v2, %v479_v63  ;;  %v484_v11 = vor.u32 %v483_v4, %v482_v3  ;;  %v1184_v14 = vsel %vm1183_vm7, %v1182_v0, 0  ;;  %vm492_vm10 = vcmp.lt.s32.totalorder %v4045_v48, 2 }
 0x206   : > { %v500_v12 = vsel %vm494_vm6, %v487_v5, 920167782  ;;  %v814_v13 = vpop.permute.xlu0 %813  ;;  %v504_v16 = vsel %vm494_vm6, %v490_v6, 1326507024  ;;  %v4076_v21 = vand.u32 31, %v1184_v14  ;;  %v475_v38 = vshrl.u32 %v3898_v56, %v474_v49 }
 0x207   : > { %v4062_v15 = vmul.f32 %v814_v13, %v812_v47  ;;  %v499_v17 = vsel %vm491_vm8, %v478_v9, %v481_v10  ;;  %v501_v18 = vsel %vm493_vm9, %v484_v11, %v500_v12  ;;  %v503_v19 = vsel %vm491_vm8, %v481_v10, %v484_v11 }
 0x208   : > { %v505_v23 = vsel %vm493_vm9, %v487_v5, %v504_v16  ;;  %v502_v25 = vsel %vm492_vm10, %v499_v17, %v501_v18  ;;  %v4088_v30 = vsub.s32 32, %v4076_v21  ;;  %v4096_v42 = vshrl.u32 %v1184_v14, 5 }
 0x209   : > { %v820_v22 = vand.u32 2139095040, %v4062_v15  ;;  %v506_v26 = vsel %vm492_vm10, %v503_v19, %v505_v23  ;;  %v817_v31 = vand.u32 2147483647, %v4062_v15  ;;  %v533_v36 = vshrl.u32 %v502_v25, 16 }
 0x20a   : > { %v510_v28 = vand.u32 65535, %v506_v26  ;;  %v511_v29 = vshrl.u32 %v506_v26, 16  ;;  %v496_v44 = vsel %vm494_vm6, %v484_v11, 2102212464  ;;  %v1199_v47 = vshrl.u32 %v3897_v53, %v4088_v30 }
 0x20b   : > { %v821_v24 = vshrl.u32 %v820_v22, 23  ;;  %v1202_v50 = vshrl.u32 %v3899_v59, %v4088_v30  ;;  %v824_v49 = vand.u32 8388607, %v817_v31  ;;  %v1198_v52 = vshll.u32 %v3896_v51, %v4076_v21 }
 0x20c   : > { %v513_v35 = vmul.u32 %v511_v29, %v508_v27  ;;  %v4093_v39 = vmul.u32 %v510_v28, %v509_v34  ;;  %v512_v45 = vmul.u32 %v510_v28, %v508_v27  ;;  %v535_v55 = vmul.u32 %v533_v36, %v508_v27 }
 0x20d   : > { %v3671_v32 = vadd.s32 4294967169, %v821_v24  ;;  %v1201_v57 = vshll.u32 %v3897_v53, %v4076_v21  ;;  %v3902_v62 = vmov 0   ;;  %v495_v0 = vsel %vm491_vm8, %v475_v38, %v478_v9 }
 0x20e   : > { %v516_v46 = vshll.u32 %v513_v35, 16  ;;  %v518_v60 = vshll.u32 %v4093_v39, 16  ;;  %v497_v2 = vsel %vm493_vm9, %v481_v10, %v496_v44  ;;  %v515_v3 = vmul.u32 %v511_v29, %v509_v34 }
 0x20f   : > { %v827_v37 = vadd.s32 1, %v3671_v32  ;;  %v532_v4 = vand.u32 65535, %v502_v25  ;;  %v1200_v5 = vor.u32 %v1199_v47, %v1198_v52  ;;  %v1203_v6 = vor.u32 %v1202_v50, %v1201_v57 }
 0x210   : > { %vm520_vm12 = vc.u32 %v512_v45, %v516_v46  ;;  %v522_v54 = vadd.s32 %v516_v46, %v512_v45  ;;  %v825_v8 = vor.u32 8388608, %v824_v49  ;;  %v538_v13 = vshll.u32 %v535_v55, 16 }
 0x211   : > { %vm828_vm11 = vcmp.gt.s32.totalorder %v827_v37, 0  ;;  %v521_v63 = vsel %vm520_vm12, 1, %v3902_v62  ;;  %vm1207_vm14 = vcmp.lt.s32.totalorder %v4096_v42, 4  ;;  %v1179_v14 = vand.u32 8388607, %v1172_v40 }
 0x212   : > { %v829_v58 = vsel %vm828_vm11, %v827_v37, 0  ;;  %vm524_vm13 = vc.u32 %v522_v54, %v518_v60  ;;  %v523_v12 = vadd.s32 %v521_v63, %v515_v3  ;;  %v4121_v9 = vsel %vm492_vm10, %v495_v0, %v497_v2 }
 0x213   : > { %v831_v11 = vand.u32 31, %v829_v58  ;;  %v525_v10 = vsel %vm524_vm13, 1, %v3902_v62  ;;  %v534_v16 = vmul.u32 %v532_v4, %v508_v27  ;;  %v536_v17 = vmul.u32 %v532_v4, %v509_v34 }
 0x214   : > { %v1213_v18 = vsel %vm1207_vm14, %v1200_v5, 920167782  ;;  %v1217_v19 = vsel %vm1207_vm14, %v1203_v6, 1326507024  ;;  %v4128_v22 = vshll.u32 %v825_v8, 8  ;;  %v517_v23 = vshrl.u32 %v513_v35, 16 }
 0x215   : > { %v4130_v24 = vsub.s32 32, %v831_v11  ;;  %v519_v25 = vshrl.u32 %v4093_v39, 16  ;;  %v527_v48 = vadd.s32 %v525_v10, %v523_v12  ;;  %vm542_vm15 = vc.u32 %v534_v16, %v538_v13 }
 0x216   : > { %v4133_v26 = vshrl.u32 %v829_v58, 5  ;;  %v537_v28 = vmul.u32 %v533_v36, %v509_v34  ;;  %v539_v27 = vshrl.u32 %v535_v55, 16  ;;  %v543_v29 = vsel %vm542_vm15, 1, %v3902_v62 }
 0x217   : > { %v4137_v32 = vshll.u32 %v3898_v56, %v831_v11  ;;  %v837_v37 = vshll.u32 %v3900_v61, %v831_v11  ;;  %v540_v38 = vshll.u32 %v536_v17, 16  ;;  %v544_v44 = vadd.s32 %v538_v13, %v534_v16 }
 0x218   : > { %v840_v35 = vshll.u32 %v3901_v1, %v831_v11  ;;  %v843_v45 = vshll.u32 %v3896_v51, %v831_v11  ;;  %v528_v39 = vadd.s32 %v527_v48, %v517_v23  ;;  %v545_v46 = vadd.s32 %v543_v29, %v537_v28 }
 0x219   : > { %v4144_v47 = vshrl.u32 %v3900_v61, %v4130_v24  ;;  %v838_v34 = vshrl.u32 %v3901_v1, %v4130_v24  ;;  %v4149_v36 = vshll.u32 %v3897_v53, %v831_v11  ;;  %vm546_vm1 = vc.u32 %v544_v44, %v540_v38 }
 0x21a   : > { %v547_v50 = vsel %vm546_vm1, 1, %v3902_v62  ;;  %v1180_v49 = vor.u32 8388608, %v1179_v14  ;;  %v1189_v52 = vshll.u32 %v3898_v56, %v4076_v21  ;;  %v1190_v54 = vshrl.u32 %v3900_v61, %v4088_v30 }
 0x21b   : > { %v541_v55 = vshrl.u32 %v536_v17, 16  ;;  %v549_v57 = vadd.s32 %v547_v50, %v545_v46  ;;  %v1192_v58 = vshll.u32 %v3900_v61, %v4076_v21  ;;  %v1193_v60 = vshrl.u32 %v3901_v1, %v4088_v30 }
 0x21c   : > { %v4160_v63 = vadd.s32 %v528_v39, %v519_v25  ;;  %v4162_v0 = vor.u32 %v1190_v54, %v1189_v52  ;;  %v1195_v2 = vshll.u32 %v3901_v1, %v4076_v21  ;;  %v1196_v3 = vshrl.u32 %v3896_v51, %v4088_v30 }
 0x21d   : > { %v4168_v4 = vadd.s32 %v544_v44, %v540_v38  ;;  %v550_v6 = vadd.s32 %v549_v57, %v539_v27  ;;  %v4170_v8 = vor.u32 %v1193_v60, %v1192_v58  ;;  %vm1206_vm2 = vcmp.lt.s32.totalorder %v4096_v42, 3 }
 0x21e   : > { %v4173_v11 = vor.u32 %v1196_v3, %v1195_v2  ;;  %vm1204_vm3 = vcmp.lt.s32.totalorder %v4096_v42, 1  ;;  %v1218_v12 = vsel %vm1206_vm2, %v1200_v5, %v1217_v19  ;;  %v4178_v13 = vshll.u32 %v1180_v49, 8 }
 0x21f   : > { %v841_v21 = vshrl.u32 %v3896_v51, %v4130_v24  ;;  %v844_v14 = vshrl.u32 %v3897_v53, %v4130_v24  ;;  %v551_v10 = vadd.s32 %v550_v6, %v541_v55  ;;  %v1212_v16 = vsel %vm1204_vm3, %v4162_v0, %v4170_v8 }
 0x220   : > { %vm554_vm4 = vc.u32 %v4160_v63, %v4168_v4  ;;  %vm1205_vm5 = vcmp.lt.s32.totalorder %v4096_v42, 2  ;;  %v1214_v5 = vsel %vm1206_vm2, %v4173_v11, %v1213_v18  ;;  %v1216_v17 = vsel %vm1204_vm3, %v4170_v8, %v4173_v11 }
 0x221   : > { %v552_v19 = vmul.u32 %v4074_v20, %v4121_v9  ;;  %v555_v23 = vadd.s32 1, %v551_v10  ;;  %v1215_v25 = vsel %vm1205_vm5, %v1212_v16, %v1214_v5  ;;  %v1219_v48 = vsel %vm1205_vm5, %v1216_v17, %v1218_v12 }
 0x222   : > { %v1221_v28 = vand.u32 65535, %v4178_v13  ;;  %v1222_v27 = vshrl.u32 %v4178_v13, 16  ;;  %v1223_v18 = vand.u32 65535, %v1219_v48  ;;  %v1224_v29 = vshrl.u32 %v1219_v48, 16 }
 0x223   : > { %v847_v38 = vshrl.u32 %v3899_v59, %v4130_v24  ;;  %v556_v44 = vsel %vm554_vm4, %v555_v23, %v551_v10  ;;  %v1245_v39 = vand.u32 65535, %v1215_v25  ;;  %v1246_v46 = vshrl.u32 %v1215_v25, 16 }
 0x224   : > { %vm849_vm6 = vcmp.lt.s32.totalorder %v4133_v26, 1  ;;  %vm852_vm7 = vcmp.lt.s32.totalorder %v4133_v26, 4  ;;  %v557_v20 = vadd.s32 %v556_v44, %v552_v19  ;;  %v1226_v9 = vmul.u32 %v1224_v29, %v1221_v28 }
 0x225   : > { %v1227_v50 = vmul.u32 %v1223_v18, %v1222_v27  ;;  %v4210_v49 = vor.u32 %v838_v34, %v837_v37  ;;  %v4212_v52 = vor.u32 %v841_v21, %v840_v35  ;;  %vm851_vm8 = vcmp.lt.s32.totalorder %v4133_v26, 3 }
 0x226   : > { %v1248_v54 = vmul.u32 %v1246_v46, %v1221_v28  ;;  %v1249_v55 = vmul.u32 %v1245_v39, %v1222_v27  ;;  %v845_v57 = vor.u32 %v844_v14, %v843_v45  ;;  %v558_v58 = vadd.s32 536870912, %v557_v20 }
 0x227   : > { %v1225_v60 = vmul.u32 %v1223_v18, %v1221_v28  ;;  %v1229_v2 = vshll.u32 %v1226_v9, 16  ;;  %v848_v3 = vor.u32 %v847_v38, %v4149_v36  ;;  %v1228_v6 = vmul.u32 %v1224_v29, %v1222_v27 }
 0x228   : > { %v1247_v12 = vmul.u32 %v1245_v39, %v1221_v28  ;;  %v1251_v10 = vshll.u32 %v1248_v54, 16  ;;  %v4216_v16 = vshrl.u32 %v558_v58, 30  ;;  %v1231_v5 = vshll.u32 %v1227_v50, 16 }
 0x229   : > { %vm1233_vm9 = vc.u32 %v1225_v60, %v1229_v2  ;;  %v1235_v37 = vadd.s32 %v1229_v2, %v1225_v60  ;;  %v1253_v34 = vshll.u32 %v1249_v55, 16  ;;  %v1250_v17 = vmul.u32 %v1246_v46, %v1222_v27 }
 0x22a   : > { %v1234_v35 = vsel %vm1233_vm9, 1, %v3902_v62  ;;  %vm1255_vm10 = vc.u32 %v1247_v12, %v1251_v10  ;;  %v1257_v21 = vadd.s32 %v1251_v10, %v1247_v12  ;;  %v560_v45 = vshll.u32 %v4216_v16, 30 }
 0x22b   : > { %v1236_v14 = vadd.s32 %v1234_v35, %v1228_v6  ;;  %vm1237_vm11 = vc.u32 %v1235_v37, %v1231_v5  ;;  %v862_v36 = vsel %vm852_vm7, %v848_v3, 1326507024  ;;  %v1256_v23 = vsel %vm1255_vm10, 1, %v3902_v62 }
 0x22c   : > { %v1238_v19 = vsel %vm1237_vm11, 1, %v3902_v62  ;;  %vm1259_vm12 = vc.u32 %v1257_v21, %v1253_v34  ;;  %v4226_v25 = vor.u32 %v4144_v47, %v4137_v32  ;;  %v561_v48 = vsub.s32 %v557_v20, %v560_v45 }
 0x22d   : > { %v1240_v28 = vadd.s32 %v1238_v19, %v1236_v14  ;;  %v1258_v18 = vadd.s32 %v1256_v23, %v1250_v17  ;;  %v861_v27 = vsel %vm849_vm6, %v4210_v49, %v4212_v52  ;;  %v1209_v29 = vsel %vm1207_vm14, %v4173_v11, 2102212464 }
 0x22e   : > { %v1230_v38 = vshrl.u32 %v1226_v9, 16  ;;  %v1260_v44 = vsel %vm1259_vm12, 1, %v3902_v62  ;;  %v863_v39 = vsel %vm851_vm8, %v845_v57, %v862_v36  ;;  %vm562_vm13 = vcmp.lt.s32.totalorder %v561_v48, 0 }
 0x22f   : > { %v563_v32 = vsub.s32 0, %v561_v48  ;;  %v1188_v47 = vshrl.u32 %v3898_v56, %v4088_v30  ;;  %v1232_v46 = vshrl.u32 %v1227_v50, 16  ;;  %v1252_v58 = vshrl.u32 %v1248_v54, 16 }
 0x230   : > { %v1241_v20 = vadd.s32 %v1240_v28, %v1230_v38  ;;  %v1262_v60 = vadd.s32 %v1260_v44, %v1258_v18  ;;  %v858_v2 = vsel %vm852_vm7, %v845_v57, 920167782  ;;  %v1210_v9 = vsel %vm1206_vm2, %v4170_v8, %v1209_v29 }
 0x231   : > { %v564_v3 = vsel %vm562_vm13, %v563_v32, %v561_v48  ;;  %v1208_v11 = vsel %vm1204_vm3, %v1188_v47, %v4162_v0  ;;  %vm850_vm14 = vcmp.lt.s32.totalorder %v4133_v26, 2  ;;  %v1254_v50 = vshrl.u32 %v1249_v55, 16 }
 0x232   : > { %v565_v6 = vclz %v564_v3  ;;  %v4248_v12 = vadd.s32 %v1241_v20, %v1232_v46  ;;  %v1263_v30 = vadd.s32 %v1262_v60, %v1252_v58  ;;  %v864_v54 = vsel %vm850_vm14, %v861_v27, %v863_v39 }
 0x233   : > { %v866_v57 = vand.u32 65535, %v4128_v22  ;;  %v4254_v5 = vadd.s32 %v1257_v21, %v1253_v34  ;;  %v857_v0 = vsel %vm849_vm6, %v4226_v25, %v4210_v49  ;;  %v859_v8 = vsel %vm851_vm8, %v4212_v52, %v858_v2 }
 0x234   : > { %v3666_v10 = vadd.s32 4294967294, %v565_v6  ;;  %v1211_v55 = vsel %vm1205_vm5, %v1208_v11, %v1210_v9  ;;  %v1264_v37 = vadd.s32 %v1263_v30, %v1254_v50  ;;  %v868_v35 = vand.u32 65535, %v864_v54 }
 0x235   : > { %vm1267_vm1 = vc.u32 %v4248_v12, %v4254_v5  ;;  %v869_v34 = vshrl.u32 %v864_v54, 16  ;;  %v867_v21 = vshrl.u32 %v4128_v22, 16  ;;  %v553_v45 = vadd.s32 %v4168_v4, %v4160_v63 }
 0x236   : > { %vm3667_vm15 = vcmp.lt.s32.totalorder %v3666_v10, 0  ;;  %v1268_v17 = vadd.s32 1, %v1264_v37  ;;  %v1265_v23 = vmul.u32 %v4178_v13, %v1211_v55  ;;  %v860_v42 = vsel %vm850_vm14, %v857_v0, %v859_v8 }
 0x237   : > { %v568_v14 = vsel %vm3667_vm15, 0, %v3666_v10  ;;  %v871_v18 = vmul.u32 %v869_v34, %v866_v57  ;;  %v4273_v27 = vmul.u32 %v868_v35, %v867_v21  ;;  %v870_v32 = vmul.u32 %v868_v35, %v866_v57 }
 0x238   : > { %v569_v36 = vsub.s32 32, %v568_v14  ;;  %v573_v19 = vsub.s32 4294967266, %v568_v14  ;;  %v1269_v28 = vsel %vm1267_vm1, %v1268_v17, %v1264_v37  ;;  %v570_v29 = vshll.u32 %v561_v48, %v568_v14 }
 0x239   : > { %v1270_v39 = vadd.s32 %v1269_v28, %v1265_v23  ;;  %v874_v47 = vshll.u32 %v871_v18, 16  ;;  %v890_v63 = vand.u32 65535, %v860_v42  ;;  %v891_v4 = vshrl.u32 %v860_v42, 16 }
 0x23a   : > { %v571_v38 = vshrl.u32 %v553_v45, %v569_v36  ;;  %v574_v44 = vadd.s32 127, %v573_v19  ;;  %v873_v58 = vmul.u32 %v869_v34, %v867_v21  ;;  %v876_v13 = vshll.u32 %v4273_v27, 16 }
 0x23b   : > { %v1271_v60 = vadd.s32 536870912, %v1270_v39  ;;  %vm878_vm2 = vc.u32 %v870_v32, %v874_v47  ;;  %v880_v2 = vadd.s32 %v874_v47, %v870_v32  ;;  %v3903_v11 = vmov 4  }
 0x23c   : > { %v572_v46 = vor.u32 %v571_v38, %v570_v29  ;;  %v575_v20 = vshll.u32 %v574_v44, 23  ;;  %3786 = vset.pattern.permute.xlu0 %v3903_v11  ;;  %3788 = vset.pattern.permute.xlu2 %v3903_v11  ;;  %v879_v48 = vsel %vm878_vm2, 1, %v3902_v62  ;;  %v893_v30 = vmul.u32 %v891_v4, %v866_v57 }
 0x23d   : > { %v4279_v9 = vshrl.u32 %v1271_v60, 30  ;;  %v881_v6 = vadd.s32 %v879_v48, %v873_v58  ;;  %vm882_vm3 = vc.u32 %v880_v2, %v876_v13  ;;  %v894_v0 = vmul.u32 %v890_v63, %v867_v21 }
 0x23e   : > { %v576_v3 = vor.u32 4788187, %v575_v20  ;;  %v579_v54 = vcvt.s32.f32 %v572_v46  ;;  %v883_v10 = vsel %vm882_vm3, 1, %v3902_v62  ;;  %v892_v55 = vmul.u32 %v890_v63, %v866_v57 }
 0x23f   : > { %v1273_v8 = vshll.u32 %v4279_v9, 30  ;;  %v896_v37 = vshll.u32 %v893_v30, 16  ;;  %v583_v34 = vsub.s32 4, %v4216_v16  ;;  %vm461_vm4 = vcmp.lt.s32.totalorder %v4036_v33, 0 }
 0x240   : > { %v577_v50 = vand.u32 2147483647, %v576_v3  ;;  %v885_v14 = vadd.s32 %v883_v10, %v881_v6  ;;  %v898_v36 = vshll.u32 %v894_v0, 16  ;;  %vm460_vm9 = vcmp.le.f32.partialorder %v459_v43, 0.7853982 }
 0x241   : > { %v1274_v45 = vsub.s32 %v1270_v39, %v1273_v8  ;;  %vm900_vm5 = vc.u32 %v892_v55, %v896_v37  ;;  %v902_v23 = vadd.s32 %v896_v37, %v892_v55  ;;  %v895_v57 = vmul.u32 %v891_v4, %v867_v21 }
 0x242   : > { %v580_v35 = vmul.f32 %v579_v54, %v577_v50  ;;  %v901_v19 = vsel %vm900_vm5, 1, %v3902_v62  ;;  %v584_v29 = vsel %vm461_vm4, %v583_v34, %v4216_v16  ;;  %v875_v38 = vshrl.u32 %v871_v18, 16 }
 0x243   : > { %vm1275_vm10 = vcmp.lt.s32.totalorder %v1274_v45, 0  ;;  %v1276_v42 = vsub.s32 0, %v1274_v45  ;;  %vm904_vm11 = vc.u32 %v902_v23, %v898_v36  ;;  %v903_v32 = vadd.s32 %v901_v19, %v895_v57 }
 0x244   : > { %v581_v17 = vxor.u32 2147483648, %v580_v35  ;;  %v854_v46 = vsel %vm852_vm7, %v4212_v52, 2102212464  ;;  %v886_v20 = vadd.s32 %v885_v14, %v875_v38  ;;  %v586_v43 = vsel %vm460_vm9, 0, %v584_v29 }
 0x245   : > { %v1277_v39 = vsel %vm1275_vm10, %v1276_v42, %v1274_v45  ;;  %v833_v21 = vshrl.u32 %v3898_v56, %v4130_v24  ;;  %v905_v4 = vsel %vm904_vm11, 1, %v3902_v62  ;;  %v877_v13 = vshrl.u32 %v4273_v27, 16 }
 0x246   : > { %v582_v28 = vsel %vm461_vm4, %v581_v17, %v580_v35  ;;  %v1278_v63 = vclz %v1277_v39  ;;  %v855_v52 = vsel %vm851_vm8, %v4210_v49, %v854_v46  ;;  %v897_v2 = vshrl.u32 %v893_v30, 16 }
 0x247   : > { %v585_v44 = vsel %vm460_vm9, %v4036_v33, %v582_v28  ;;  %v853_v60 = vsel %vm849_vm6, %v833_v21, %v4226_v25  ;;  %v907_v3 = vadd.s32 %v905_v4, %v903_v32  ;;  %v4303_v24 = vadd.s32 %v886_v20, %v877_v13 }
 0x248   : > { %v587_v47 = vmul.f32 %v585_v44, %v585_v44  ;;  %v3678_v58 = vadd.s32 4294967294, %v1278_v63  ;;  %v1266_v50 = vadd.s32 %v4254_v5, %v4248_v12  ;;  %v899_v27 = vshrl.u32 %v894_v0, 16 }
 0x249   : > { %v908_v10 = vadd.s32 %v907_v3, %v897_v2  ;;  %v4307_v37 = vadd.s32 %v902_v23, %v898_v36  ;;  %v856_v49 = vsel %vm850_vm14, %v853_v60, %v855_v52  ;;  %v760_v12 = vadd.s32 3, %v586_v43 }
 0x24a   : > { %v588_v16 = vmul.f32 -0.001358992, %v587_v47  ;;  %v595_v18 = vmul.f32 -0.00019511016, %v587_v47  ;;  %vm3679_vm7 = vcmp.lt.s32.totalorder %v3678_v58, 0  ;;  %v910_v23 = vmul.u32 %v4128_v22, %v856_v49 }
 0x24b   : > { %v1281_v54 = vsel %vm3679_vm7, 0, %v3678_v58  ;;  %v909_v30 = vadd.s32 %v908_v10, %v899_v27  ;;  %vm912_vm6 = vc.u32 %v4303_v24, %v4307_v37  ;;  %v603_v39 = vand.u32 3, %v586_v43 }
 0x24c   : > { %v589_v48 = vadd.f32 0.041655596, %v588_v16  ;;  %v596_v6 = vadd.f32 0.008332121, %v595_v18  ;;  %v1282_v25 = vsub.s32 32, %v1281_v54  ;;  %v1286_v35 = vsub.s32 4294967266, %v1281_v54 }
 0x24d   : > { %v1283_v5 = vshll.u32 %v1274_v45, %v1281_v54  ;;  %v913_v19 = vadd.s32 1, %v909_v30  ;;  %v761_v32 = vand.u32 3, %v760_v12  ;;  %vm602_vm8 = vweird.f32 %v4036_v33 }
 0x24e   : > { %v590_v8 = vmul.f32 %v589_v48, %v587_v47  ;;  %v597_v55 = vmul.f32 %v596_v6, %v587_v47  ;;  %v1284_v17 = vshrl.u32 %v1266_v50, %v1282_v25  ;;  %v1287_v0 = vadd.s32 127, %v1286_v35 }
 0x24f   : > { %v914_v29 = vsel %vm912_vm6, %v913_v19, %v909_v30  ;;  %vm604_vm12 = vcmp.lt.s32.totalorder %v603_v39, 2  ;;  %vm605_vm13 = vcmp.eq.s32.totalorder %v603_v39, 0  ;;  %vm608_vm14 = vcmp.eq.s32.totalorder %v603_v39, 2 }
 0x250   : > { %v591_v34 = vadd.f32 -0.4999988, %v590_v8  ;;  %v598_v14 = vadd.f32 -0.16666654, %v597_v55  ;;  %v1285_v28 = vor.u32 %v1284_v17, %v1283_v5  ;;  %v1288_v36 = vshll.u32 %v1287_v0, 23 }
 0x251   : > { %v915_v46 = vadd.s32 %v914_v29, %v910_v23  ;;  %vm763_vm15 = vcmp.eq.s32.totalorder %v761_v32, 0  ;;  %vm766_vm1 = vcmp.eq.s32.totalorder %v761_v32, 2  ;;  %vm762_vm2 = vcmp.lt.s32.totalorder %v761_v32, 2 }
 0x252   : > { %v592_v42 = vmul.f32 %v591_v34, %v587_v47  ;;  %v599_v57 = vmul.f32 %v598_v14, %v587_v47  ;;  %v1289_v63 = vor.u32 4788187, %v1288_v36  ;;  %v1292_v16 = vcvt.s32.f32 %v1285_v28  ;;  %v4317_v47 = vld [vmem:[%s5085_s8] sm:$0x3] }
 0x253   : > { %v916_v45 = vadd.s32 536870912, %v915_v46  ;;  %v615_v52 = vsub.f32 0.0, %v4317_v47  ;;  %vm1174_vm3 = vcmp.lt.s32.totalorder %v4040_v41, 0  ;;  %vm4333_vm4 = vcmp.le.f32.partialorder %v1172_v40, 0.7853982 }
 0x254   : > { %v593_v26 = vadd.f32 1.0, %v592_v42  ;;  %v600_v38 = vadd.f32 1.0, %v599_v57  ;;  %v1290_v4 = vand.u32 2147483647, %v1289_v63  ;;  %v1296_v14 = vsub.s32 4, %v4279_v9 }
 0x255   : > { %v4320_v18 = vshrl.u32 %v916_v45, 30  ;;  %v4342_v55 = vperm.slane %v615_v52, 1  ;;  %v911_v29 = vadd.s32 %v4307_v37, %v4303_v24  ;;  %v3906_v37 = vmov 8  }
 0x256   : > { %v601_v20 = vmul.f32 %v600_v38, %v585_v44  ;;  %v609_v21 = vxor.u32 2147483648, %v593_v26  ;;  %v1293_v43 = vmul.f32 %v1292_v16, %v1290_v4  ;;  %v1297_v33 = vsel %vm1174_vm3, %v1296_v14, %v4279_v9  ;;  %3787 = vset.pattern.permute.xlu1 %v3906_v37 }
 0x257   : > { %v918_v3 = vshll.u32 %v4320_v18, 30  ;;  %v1299_v39 = vsel %vm4333_vm4, 0, %v1297_v33  ;;  %vm1315_vm6 = vweird.f32 %v4040_v41 }
 0x258   : > { %v606_v22 = vxor.u32 2147483648, %v601_v20  ;;  %v610_v58 = vsel %vm608_vm14, %v609_v21, %v601_v20  ;;  %v1294_v2 = vxor.u32 2147483648, %v1293_v43  ;;  %v768_v6 = vsel %vm766_vm1, %v609_v21, %v601_v20 }
 0x259   : > { %v919_v10 = vsub.s32 %v915_v46, %v918_v3  ;;  %v1316_v9 = vand.u32 3, %v1299_v39 }
 0x25a   : > { %v607_v44 = vsel %vm605_vm13, %v593_v26, %v606_v22  ;;  %v765_v13 = vsel %vm763_vm15, %v593_v26, %v606_v22  ;;  %v1295_v27 = vsel %vm1174_vm3, %v1294_v2, %v1293_v43 }
 0x25b   : > { %v611_v60 = vsel %vm604_vm12, %v607_v44, %v610_v58  ;;  %v769_v50 = vsel %vm762_vm2, %v765_v13, %v768_v6  ;;  %v1298_v8 = vsel %vm4333_vm4, %v4040_v41, %v1295_v27  ;;  %vm920_vm5 = vcmp.lt.s32.totalorder %v919_v10, 0 }
 0x25c   : > { %v4326_v48 = vsel %vm602_vm8, nan, %v611_v60  ;;  %v1300_v25 = vmul.f32 %v1298_v8, %v1298_v8  ;;  %v921_v35 = vsub.s32 0, %v919_v10  ;;  %v770_v49 = vsel %vm602_vm8, nan, %v769_v50 }
 0x25d   : > { %774 = vrot.lane.b32.xlu0 %v4326_v48, %s5105_s24  ;;  %v4348_v12 = vmul.f32 %v4342_v55, %v770_v49  ;;  %v3905_v58 = vmov 12   ;;  %vm1318_vm10 = vcmp.eq.s32.totalorder %v1316_v9, 0  ;;  %vm1321_vm11 = vcmp.eq.s32.totalorder %v1316_v9, 2 }
 0x25e   : > { %v1301_v40 = vmul.f32 -0.001358992, %v1300_v25  ;;  %v1308_v30 = vmul.f32 -0.00019511016, %v1300_v25  ;;  %v922_v34 = vsel %vm920_vm5, %v921_v35, %v919_v10  ;;  %vm1317_vm7 = vcmp.lt.s32.totalorder %v1316_v9, 2 }
 0x25f   : > { %v923_v17 = vclz %v922_v34  ;;  %v1471_v6 = vadd.s32 3, %v1299_v39  ;;  %v4361_v50 = vperm.slane %v4317_v47, 0  ;;  %vm819_vm8 = vcmp.lt.s32.totalorder %v4062_v15, 0 }
 0x260   : > { %v1302_v5 = vadd.f32 0.041655596, %v1301_v40  ;;  %v1309_v0 = vadd.f32 0.008332121, %v1308_v30  ;;  %vm4374_vm12 = vcmp.le.f32.partialorder %v817_v31, 0.7853982 }
 0x261   : > { %v3672_v19 = vadd.s32 4294967294, %v923_v17  ;;  %v1472_v35 = vand.u32 3, %v1471_v6  ;;  %v941_v40 = vsub.s32 4, %v4320_v18  ;;  %v4384_v14 = vmul.f32 %v4361_v50, %v4326_v48 }
 0x262   : > { %v1303_v42 = vmul.f32 %v1302_v5, %v1300_v25  ;;  %v1310_v57 = vmul.f32 %v1309_v0, %v1300_v25  ;;  %v3908_v48 = vmov 5   ;;  %v5091_v41 = vmov 14  }
 0x263   : > { %vm3673_vm9 = vcmp.lt.s32.totalorder %v3672_v19, 0  ;;  %vm1474_vm13 = vcmp.eq.s32.totalorder %v1472_v35, 0  ;;  %vm1477_vm14 = vcmp.eq.s32.totalorder %v1472_v35, 2  ;;  %v942_v31 = vsel %vm819_vm8, %v941_v40, %v4320_v18 }
 0x264   : > { %v1304_v28 = vadd.f32 -0.4999988, %v1303_v42  ;;  %v1311_v36 = vadd.f32 -0.16666654, %v1310_v57  ;;  %v926_v23 = vsel %vm3673_vm9, 0, %v3672_v19  ;;  %vm1473_vm15 = vcmp.lt.s32.totalorder %v1472_v35, 2 }
 0x265   : > { %1521 = vperm.xlu0 %3786, %v4348_v12   ;;  %v927_v26 = vsub.s32 32, %v926_v23  ;;  %v931_v38 = vsub.s32 4294967266, %v926_v23  ;;  %v928_v46 = vshll.u32 %v919_v10, %v926_v23  ;;  %v3911_v6 = vmov 9  }
 0x266   : > { %v1305_v32 = vmul.f32 %v1304_v28, %v1300_v25  ;;  %v1312_v63 = vmul.f32 %v1311_v36, %v1300_v25  ;;  %v944_v28 = vsel %vm4374_vm12, 0, %v942_v31 }
 0x267   : > { %v929_v20 = vshrl.u32 %v911_v29, %v927_v26  ;;  %v932_v21 = vadd.s32 127, %v931_v38  ;;  %v1116_v38 = vadd.s32 3, %v944_v28 }
 0x268   : > { %v1306_v4 = vadd.f32 1.0, %v1305_v32  ;;  %v1313_v16 = vadd.f32 1.0, %v1312_v63 }
 0x269   : > { %v930_v45 = vor.u32 %v929_v20, %v928_v46  ;;  %v933_v22 = vshll.u32 %v932_v21, 23  ;;  %v961_v21 = vand.u32 3, %v944_v28 }
 0x26a   : > { %v1314_v43 = vmul.f32 %v1313_v16, %v1298_v8  ;;  %v1322_v44 = vxor.u32 2147483648, %v1306_v4 }
 0x26b   : > { %v934_v24 = vor.u32 4788187, %v933_v22  ;;  %v937_v52 = vcvt.s32.f32 %v930_v45  ;;  %vm962_vm1 = vcmp.lt.s32.totalorder %v961_v21, 2  ;;  %vm963_vm2 = vcmp.eq.s32.totalorder %v961_v21, 0 }
 0x26c   : > { %v1319_v13 = vxor.u32 2147483648, %v1314_v43  ;;  %v1323_v3 = vsel %vm1321_vm11, %v1322_v44, %v1314_v43  ;;  %v1479_v19 = vsel %vm1477_vm14, %v1322_v44, %v1314_v43  ;;  %vm966_vm3 = vcmp.eq.s32.totalorder %v961_v21, 2 }
 0x26d   : > { %3790 = vset.pattern.permute.xlu0 %v3905_v58  ;;  %v935_v60 = vand.u32 2147483647, %v934_v24  ;;  %vm1560_vm11 = vcmask 64512  }
 0x26e   : > { %v1320_v2 = vsel %vm1318_vm10, %v1306_v4, %v1319_v13  ;;  %v1476_v17 = vsel %vm1474_vm13, %v1306_v4, %v1319_v13  ;;  %v1117_v4 = vand.u32 3, %v1116_v38  ;;  %vm960_vm10 = vweird.f32 %v4062_v15 }
 0x26f   : > { %v1324_v54 = vsel %vm1317_vm7, %v1320_v2, %v1323_v3  ;;  %v938_v27 = vmul.f32 %v937_v52, %v935_v60  ;;  %v1480_v33 = vsel %vm1473_vm15, %v1476_v17, %v1479_v19  ;;  %vm1759_vm7 = vcmask 130112  }
 0x270   : > { %v1325_v10 = vsel %vm1315_vm6, nan, %v1324_v54  ;;  %v1481_v18 = vsel %vm1315_vm6, nan, %v1480_v33  ;;  %vm1118_vm4 = vcmp.lt.s32.totalorder %v1117_v4, 2  ;;  %vm1119_vm5 = vcmp.eq.s32.totalorder %v1117_v4, 0 }
 0x271   : > { %1484 = vrot.lane.b32.xlu2 %v1325_v10, %s5103_s25  ;;  %v4368_v8 = vmul.f32 %v1325_v10, %v4361_v50  ;;  %v939_v25 = vxor.u32 2147483648, %v938_v27  ;;  %v4395_v63 = vmul.f32 %v1481_v18, %v4342_v55  ;;  %vm1122_vm9 = vcmp.eq.s32.totalorder %v1117_v4, 2 }
 0x272   : > { %v5095_v54 = vmov 7   ;;  %v5090_v10 = vmov 6   ;;  %vm1791_vm6 = vcmask 195712  }
 0x273   : > { %1555 = vperm.xlu0 %3790, %v4368_v8   ;;  %v940_v49 = vsel %vm819_vm8, %v939_v25, %v938_v27  ;;  %v5093_v25 = vmov 15   ;;  %vm1823_vm8 = vcmask 261312  }
 0x274   : > { %v943_v30 = vsel %vm4374_vm12, %v4062_v15, %v940_v49  ;;  %v5089_v15 = vmov 10  }
 0x275   : > { %v945_v34 = vmul.f32 %v943_v30, %v943_v30 }
 0x277   : > { %v946_v5 = vmul.f32 -0.001358992, %v945_v34  ;;  %v953_v0 = vmul.f32 -0.00019511016, %v945_v34 }
 0x279   : > { %1528 = vperm.xlu2 %3788, %v4384_v14   ;;  %v947_v42 = vadd.f32 0.041655596, %v946_v5  ;;  %v954_v57 = vadd.f32 0.008332121, %v953_v0 }
 0x27b   : > { %v948_v36 = vmul.f32 %v947_v42, %v945_v34  ;;  %v955_v23 = vmul.f32 %v954_v57, %v945_v34  ;;  %3795 = vset.pattern.permute.xlu0 %v3908_v48 }
 0x27c   : > { %1569 = vperm.xlu0 %3795, %v4384_v14  }
 0x27d   : > { %v949_v29 = vadd.f32 -0.4999988, %v948_v36  ;;  %v956_v26 = vadd.f32 -0.16666654, %v955_v23 }
 0x27f   : > { %v950_v39 = vmul.f32 %v949_v29, %v945_v34  ;;  %v957_v32 = vmul.f32 %v956_v26, %v945_v34 }
 0x281   : > { %v951_v46 = vadd.f32 1.0, %v950_v39  ;;  %v958_v20 = vadd.f32 1.0, %v957_v32  ;;  %3789 = vset.pattern.permute.xlu2 %v3905_v58 }
 0x282   : > { %1548 = vperm.xlu2 %3789, %v4395_v63  }
 0x283   : > { %v959_v16 = vmul.f32 %v958_v20, %v943_v30  ;;  %v967_v9 = vxor.u32 2147483648, %v951_v46 }
 0x284   : > { %3800 = vset.pattern.permute.xlu0 %v5091_v41 }
 0x285   : > { %v964_v45 = vxor.u32 2147483648, %v959_v16  ;;  %1622 = vperm.xlu0 %3800, %v4395_v63   ;;  %v968_v43 = vsel %vm966_vm3, %v967_v9, %v959_v16  ;;  %v1124_v24 = vsel %vm1122_vm9, %v967_v9, %v959_v16 }
 0x287   : > { %v965_v22 = vsel %vm963_vm2, %v951_v46, %v964_v45  ;;  %v1121_v44 = vsel %vm1119_vm5, %v951_v46, %v964_v45 }
 0x288   : > { %v969_v13 = vsel %vm962_vm1, %v965_v22, %v968_v43  ;;  %v1125_v60 = vsel %vm1118_vm4, %v1121_v44, %v1124_v24  ;;  %vm1929_vm1 = vcmask 523264  }
 0x289   : > { %v970_v52 = vsel %vm960_vm10, nan, %v969_v13  ;;  %v1126_v2 = vsel %vm960_vm10, nan, %v1125_v60 }
 0x28a   : > { %v1127_v3 = vmul.f32 %v1126_v2, %v4342_v55  ;;  %1129 = vrot.lane.b32.xlu1 %v970_v52, %s3910_s26  ;;  %3792 = vset.pattern.permute.xlu2 %v3911_v6  ;;  %v971_v27 = vmul.f32 %v970_v52, %v4361_v50  ;;  %v5098_v55 = vmov 13   ;;  %v5096_v50 = vmov 11  }
 0x28c   : > { %1574 = vperm.xlu2 %3792, %v1127_v3  }
 0x28d   : > { %3805 = vset.pattern.permute.xlu0 %v5095_v54 }
 0x28e   : > { %1641 = vperm.xlu0 %3805, %v4384_v14  }
 0x292   : > { %1534 = vperm.xlu1 %3787, %v1127_v3  }
 0x294   : > { %3794 = vset.pattern.permute.xlu2 %v5089_v15 }
 0x295   : > { %1610 = vperm.xlu2 %3794, %v1127_v3  }
 0x29a   : > { %1541 = vperm.xlu1 %3787, %v971_v27  }
 0x29d   : > { %3797 = vset.pattern.permute.xlu2 %v5098_v55 }
 0x29e   : > { %1586 = vperm.xlu2 %3797, %v4395_v63  }
 0x2a2   : > { %3791 = vset.pattern.permute.xlu1 %v3908_v48 }
 0x2a3   : > { %1563 = vperm.xlu1 %3791, %v4348_v12  }
 0x2a6   : > { %3799 = vset.pattern.permute.xlu2 %v5089_v15 }
 0x2a7   : > { %1616 = vperm.xlu2 %3799, %v971_v27  }
 0x2ab   : > { %3793 = vset.pattern.permute.xlu1 %v5090_v10 }
 0x2ac   : > { %1599 = vperm.xlu1 %3793, %v4348_v12  }
 0x2af   : > { %3802 = vset.pattern.permute.xlu2 %v5091_v41 }
 0x2b0   : > { %1628 = vperm.xlu2 %3802, %v4368_v8  }
 0x2b4   : > { %3796 = vset.pattern.permute.xlu1 %v3911_v6 }
 0x2b5   : > { %1580 = vperm.xlu1 %3796, %v971_v27  }
 0x2b8   : > { %3804 = vset.pattern.permute.xlu2 %v5096_v50 }
 0x2b9   : > { %1646 = vperm.xlu2 %3804, %v1127_v3  }
 0x2bd   : > { %3798 = vset.pattern.permute.xlu1 %v5090_v10 }
 0x2be   : > { %1605 = vperm.xlu1 %3798, %v4384_v14  }
 0x2c1   : > { %3807 = vset.pattern.permute.xlu2 %v5093_v25 }
 0x2c2   : > { %1658 = vperm.xlu2 %3807, %v4395_v63  }
 0x2c6   : > { %3801 = vset.pattern.permute.xlu1 %v5098_v55 }
 0x2c7   : > { %1592 = vperm.xlu1 %3801, %v4368_v8  }
 0x2cb   : > { %v1485_v49 = vpop.permute.xlu2 %1484 }
 0x2cf   : > { %3803 = vset.pattern.permute.xlu1 %v5095_v54  ;;  %v775_v35 = vpop.permute.xlu0 %774 }
 0x2d0   : > { %1635 = vperm.xlu1 %3803, %v4348_v12  }
 0x2d3   : > { %v1529_v30 = vpop.permute.xlu2 %1528 }
 0x2d7   : > { %v1522_v0 = vpop.permute.xlu0 %1521 }
 0x2d8   : > { %3806 = vset.pattern.permute.xlu1 %v5096_v50 }
 0x2d9   : > { %1652 = vperm.xlu1 %3806, %v971_v27  }
 0x2dc   : > { %v1549_v14 = vpop.permute.xlu2 %1548 }
 0x2e1   : > { %3808 = vset.pattern.permute.xlu1 %v5093_v25 }
 0x2e2   : > { %1664 = vperm.xlu1 %3808, %v4368_v8  }
 0x2e5   : > { %v1556_v42 = vpop.permute.xlu0 %1555 }
 0x2e6   : > { %v1575_v17 = vpop.permute.xlu2 %1574 }
 0x2e8   : > { %777 = vxpose.xlu2.b32.start.end [1/1] (short) (narrow) %v775_v35, 8 }
 0x2ee   : > { %v1570_v28 = vpop.permute.xlu0 %1569 }
 0x2ef   : > { %v1611_v8 = vpop.permute.xlu2 %1610 }
 0x2f7   : > { %v1623_v18 = vpop.permute.xlu0 %1622 }
 0x2f8   : > { %v1587_v19 = vpop.permute.xlu2 %1586 }
 0x2fc   : > { %v1130_v47 = vpop.permute.xlu1 %1129 }
 0x2fd   : > { %1132 = vxpose.xlu0.b32.start.end [1/1] (short) (narrow) %v1130_v47, 8 }
 0x300   : > { %v1642_v38 = vpop.permute.xlu0 %1641 }
 0x301   : > { %v1617_v33 = vpop.permute.xlu2 %1616 }
 0x304   : > { %v1535_v40 = vpop.permute.xlu1 %1534 }
 0x30a   : > { %v1629_v23 = vpop.permute.xlu2 %1628 }
 0x30c   : > { %v1542_v34 = vpop.permute.xlu1 %1541 }
 0x313   : > { %v1647_v26 = vpop.permute.xlu2 %1646 }
 0x315   : > { %v1564_v12 = vpop.permute.xlu1 %1563 }
 0x317   : > { %1487 = vxpose.xlu1.b32.start.end [1/1] (short) (narrow) %v1485_v49, 8 }
 0x31c   : > { %v1659_v39 = vpop.permute.xlu2 %1658 }
 0x31e   : > { %v1600_v5 = vpop.permute.xlu1 %1599 }
 0x327   : > { %v1581_v31 = vpop.permute.xlu1 %1580 }
 0x330   : > { %v1606_v57 = vpop.permute.xlu1 %1605 }
 0x339   : > { %v1593_v36 = vpop.permute.xlu1 %1592 }
 0x342   : > { %v1636_v29 = vpop.permute.xlu1 %1635 }
 0x34a   : > { %3809 = vset.pattern.permute.xlu2 %v3903_v11 }
 0x364   : > { %3811 = vset.pattern.permute.xlu0 %v3903_v11  ;;  %v1653_v11 = vpop.permute.xlu1 %1652 }
 0x36a   : > { %3810 = vset.pattern.permute.xlu1 %v3906_v37 }
 0x36c   : > { %v1665_v46 = vpop.permute.xlu1 %1664 }
 0x381   : > { %v793_v63 = vpop.trf.xlu2 }
 0x382   : > { %v1524_v16 = vperm.slane %v793_v63, 0  ;;  %v1566_v9 = vperm.slane %v793_v63, 1  ;;  %v1602_v45 = vperm.slane %v793_v63, 2  ;;  %v1638_v43 = vperm.slane %v793_v63, 3 }
 0x384   : > { %v1525_v60 = vmul.f32 %v1524_v16, %v1522_v0  ;;  %v1567_v52 = vmul.f32 %v1566_v9, %v1564_v12  ;;  %v1603_v2 = vmul.f32 %v1602_v45, %v1600_v5  ;;  %v1639_v27 = vmul.f32 %v1638_v43, %v1636_v29 }
 0x386   : > { %v1531_v50 = vadd.f32 %v1529_v30, %v1525_v60  ;;  %v1572_v55 = vadd.f32 %v1570_v28, %v1567_v52  ;;  %v1644_v12 = vadd.f32 %v1642_v38, %v1639_v27 }
 0x3a1   : > { %v1148_v32 = vpop.trf.xlu0 }
 0x3a2   : > { %v1537_v20 = vperm.slane %v1148_v32, 0  ;;  %v1577_v21 = vperm.slane %v1148_v32, 1  ;;  %v1613_v4 = vperm.slane %v1148_v32, 2  ;;  %v1649_v22 = vperm.slane %v1148_v32, 3 }
 0x3a3   : > { %v1608_v32 = vadd.f32 %v1606_v57, %v1603_v2 }
 0x3a4   : > { %v1538_v44 = vmul.f32 %v1537_v20, %v1535_v40  ;;  %v1578_v24 = vmul.f32 %v1577_v21, %v1575_v17  ;;  %v1614_v13 = vmul.f32 %v1613_v4, %v1611_v8  ;;  %v1650_v3 = vmul.f32 %v1649_v22, %v1647_v26 }
 0x3a6   : > { %v1544_v35 = vadd.f32 %v1542_v34, %v1538_v44  ;;  %v1583_v47 = vadd.f32 %v1581_v31, %v1578_v24  ;;  %v1619_v49 = vadd.f32 %v1617_v33, %v1614_v13  ;;  %v1655_v63 = vadd.f32 %v1653_v11, %v1650_v3 }
 0x3a8   : > { %v1545_v5 = vmul.f32 %v1544_v35, %v1531_v50  ;;  %v1584_v26 = vmul.f32 %v1583_v47, %v1572_v55  ;;  %v1620_v29 = vmul.f32 %v1619_v49, %v1608_v32  ;;  %v1656_v21 = vmul.f32 %v1655_v63, %v1644_v12  ;;  %v1830_v63 = vld [vmem:[%s5080_s3 + $0x18] sm:$0xff] }
 0x3bb   : > { %v1503_v15 = vpop.trf.xlu1 }
 0x3bc   : > { %v1551_v10 = vperm.slane %v1503_v15, 0  ;;  %v1589_v41 = vperm.slane %v1503_v15, 1  ;;  %v1625_v25 = vperm.slane %v1503_v15, 2  ;;  %v1661_v54 = vperm.slane %v1503_v15, 3 }
 0x3be   : > { %v1552_v40 = vmul.f32 %v1551_v10, %v1549_v14  ;;  %v1590_v17 = vmul.f32 %v1589_v41, %v1587_v19  ;;  %v1626_v8 = vmul.f32 %v1625_v25, %v1623_v18  ;;  %v1662_v0 = vmul.f32 %v1661_v54, %v1659_v39 }
 0x3c0   : > { %v1558_v34 = vadd.f32 %v1556_v42, %v1552_v40  ;;  %v1595_v31 = vadd.f32 %v1593_v36, %v1590_v17  ;;  %v1631_v33 = vadd.f32 %v1629_v23, %v1626_v8  ;;  %v1667_v20 = vadd.f32 %v1665_v46, %v1662_v0  ;;  %v1829_v40 = vld [vmem:[%s5080_s3 + $0x10] sm:$0xff]  ;;  %v1828_v17 = vld [vmem:[%s5080_s3 + $0x8] sm:$0xff]  ;;  %v1827_v8 = vld [vmem:[%s5080_s3] sm:$0xff] }
 0x3c2   : > { %v1559_v4 = vmul.f32 %v1558_v34, %v1545_v5  ;;  %v1596_v15 = vmul.f32 %v1595_v31, %v1584_v26  ;;  %v1632_v30 = vmul.f32 %v1631_v33, %v1620_v29  ;;  %v1668_v28 = vmul.f32 %v1667_v20, %v1656_v21  ;;  %v4475_v29 = vld [vmem:[%s5084_s7] sm:$0x3f] }
 0x3c3   : > { %v1831_v34 = vperm.slane %v4475_v29, 0  ;;  %v3881_v20 = vld [vmem:[%s4012_s30] sm:$0xff] }
 0x3c4   : > { %1561 = vst.msk [vmem:[#allocation2] sm:$0xff] %vm1560_vm11, %v1559_v4 }
 0x3c5   : > { %1597 = vst.msk [vmem:[#allocation2 + $0x8] sm:$0xff] %vm1560_vm11, %v1596_v15  ;;  %v3923_v15 = vmov 32.0  }
 0x3c6   : > { %1633 = vst.msk [vmem:[#allocation2 + $0x10] sm:$0xff] %vm1560_vm11, %v1632_v30 }
 0x3c7   : > { %1669 = vst.msk [vmem:[#allocation2 + $0x18] sm:$0xff] %vm1560_vm11, %v1668_v28 }
 0x3cb   : > { %v1670_v41 = vld [vmem:[#allocation2] sm:$0xff] }
 0x3cc   : > { %v1671_v54 = vld [vmem:[#allocation2 + $0x8] sm:$0xff]  ;;  %v1674_v55 = vmul.f32 1.442695, %v1670_v41 }
 0x3cd   : > { %v1672_v10 = vld [vmem:[#allocation2 + $0x10] sm:$0xff]  ;;  %v1676_v50 = vmul.f32 1.442695, %v1671_v54 }
 0x3ce   : > { %v1678_v25 = vmul.f32 1.442695, %v1672_v10  ;;  %3837 = vpow2.f32 %v1674_v55  ;;  %v1673_v14 = vld [vmem:[#allocation2 + $0x18] sm:$0xff] }
 0x3cf   : > { %3839 = vpow2.f32 %v1676_v50  ;;  %v1680_v19 = vmul.f32 1.442695, %v1673_v14 }
 0x3d0   : > { %3841 = vpow2.f32 %v1678_v25 }
 0x3d1   : > { %3843 = vpow2.f32 %v1680_v19 }
 0x3d4   : > { %v3838_v42 = vpop.eup %3837 }
 0x3d5   : > { %v3840_v57 = vpop.eup %3839  ;;  %v1682_v36 = vsel %vm1560_vm11, %v3838_v42, 0.0 }
 0x3d6   : > { %v3842_v23 = vpop.eup %3841  ;;  %v1685_v18 = vsel %vm1560_vm11, %v3840_v57, 0.0  ;;  %1683 = vadd.xlane.f32.xlu2 %v1682_v36  ;;  %v1891_v36 = vld [vmem:[%s5081_s4 + $0x10] sm:$0xff] }
 0x3d7   : > { %v1688_v38 = vsel %vm1560_vm11, %v3842_v23, 0.0  ;;  %1686 = vadd.xlane.f32.xlu0 %v1685_v18  ;;  %v3844_v11 = vpop.eup %3843  ;;  %v1889_v18 = vld [vmem:[%s5081_s4] sm:$0xff] }
 0x3d8   : > { %1689 = vadd.xlane.f32.xlu1 %v1688_v38  ;;  %v1691_v39 = vsel %vm1560_vm11, %v3844_v11, 0.0  ;;  %v1927_v38 = vld [vmem:[%s5083_s6 + $0x38] sm:$0xff] }
 0x3d9   : > { %1941 = vmatpush.msrb.mxu0 %v1927_v38 }
 0x3df   : > { %1692 = vadd.xlane.f32.xlu0 %v1691_v39  ;;  %v1925_v39 = vld [vmem:[%s5083_s6 + $0x28] sm:$0xff] }
 0x3ee   : > { %1793 = vrot.lane.b32.xlu2 %v4019_v7, %s5100_s28 }
 0x3f1   : > { %1729 = vrot.lane.b32.xlu1 %v4019_v7, %s5102_s29 }
 0x3f3   : > { %1761 = vrot.lane.b32.xlu0 %v4019_v7, %s5101_s12 }
 0x449   : > { %v1684_v46 = vpop.xlane.xlu2 %1683 }
 0x44a   : > { %v1687_v16 = vpop.xlane.xlu0 %1686  ;;  %3845 = vrcp.f32 %v1684_v46 }
 0x44b   : > { %v1690_v24 = vpop.xlane.xlu1 %1689 }
 0x450   : > { %v3846_v9 = vpop.eup %3845 }
 0x451   : > { %v1794_v45 = vpop.permute.xlu2 %1793  ;;  %v1698_v22 = vmul.f32 %v3846_v9, %v3838_v42  ;;  %v1924_v9 = vld [vmem:[%s5083_s6 + $0x20] sm:$0xff] }
 0x452   : > { %v1693_v43 = vpop.xlane.xlu0 %1692  ;;  %1814 = vmatpush.msra.mxu1 %v1794_v45 }
 0x453   : > { %3847 = vrcp.f32 %v1693_v43  ;;  %3683 = vmatmul.msk.f32.vlgmr.msra.gmra.mxu3 %vm1560_vm11, %v1698_v22  ;;  %v1923_v22 = vld [vmem:[%s5083_s6 + $0x18] sm:$0xff]  ;;  %v1922_v43 = vld [vmem:[%s5083_s6 + $0x10] sm:$0xff] }
 0x454   : > { %3849 = vrcp.f32 %v1687_v16 }
 0x455   : > { %3851 = vrcp.f32 %v1690_v24 }
 0x456   : > { %3853 = vrcp.f32 %v3923_v15  ;;  %v3693_v15 = vld [vmem:[%s5078_s1 + $0x38] sm:$0xff] }
 0x457   : > { %2005 = vmatpush.msrb.mxu1 %v3693_v15 }
 0x459   : > { %v3848_v44 = vpop.eup %3847 }
 0x45a   : > { %v1701_v13 = vmul.f32 %v3848_v44, %v3844_v11  ;;  %v3850_v60 = vpop.eup %3849  ;;  %v1926_v11 = vld [vmem:[%s5083_s6 + $0x30] sm:$0xff] }
 0x45b   : > { %v3852_v7 = vpop.eup %3851  ;;  %v1699_v2 = vmul.f32 %v3850_v60, %v3840_v57  ;;  %v1892_v57 = vld [vmem:[%s5081_s4 + $0x18] sm:$0xff]  ;;  %1942 = vmatpush.msrb.mxu0 %v1926_v11  ;;  %v1978_v11 = vperm.slane %v4475_v29, 5 }
 0x45c   : > { %3686 = vmatmul.msk.f32.vlgmr.msra.gmra.mxu1 %vm1560_vm11, %v1701_v13  ;;  %v1700_v27 = vmul.f32 %v3852_v7, %v3842_v23  ;;  %v3854_v30 = vpop.eup %3853  ;;  %v1890_v23 = vld [vmem:[%s5081_s4 + $0x8] sm:$0xff] }
 0x45d   : > { %v1860_v28 = vmul.f32 32.0, %v3854_v30  ;;  %vm1864_vm12 = vweird.f32 %v3854_v30  ;;  %1943 = vmatpush.msrb.mxu0 %v1925_v39 }
 0x45f   : > { %v1861_v41 = vsub.f32 1.0, %v1860_v28  ;;  %1944 = vmatpush.msrb.mxu0 %v1924_v9  ;;  %v3691_v28 = vld [vmem:[%s5078_s1 + $0x28] sm:$0xff] }
 0x461   : > { %v1862_v54 = vmul.f32 %v3854_v30, %v1861_v41  ;;  %1945 = vmatpush.msrb.mxu0 %v1923_v22  ;;  %v3690_v41 = vld [vmem:[%s5078_s1 + $0x20] sm:$0xff] }
 0x463   : > { %v1730_v52 = vpop.permute.xlu1 %1729  ;;  %v1863_v55 = vadd.f32 %v3854_v30, %v1862_v54  ;;  %1946 = vmatpush.msrb.mxu0 %v1922_v43 }
 0x464   : > { %1750 = vmatpush.msra.mxu2 %v1730_v52 }
 0x465   : > { %3684 = vmatmul.msk.f32.vlgmr.msra.gmra.mxu2 %vm1560_vm11, %v1699_v2  ;;  %v1762_v3 = vpop.permute.xlu0 %1761  ;;  %v4480_v10 = vsel %vm1864_vm12, %v3854_v30, %v1863_v55  ;;  %v1885_v2 = vperm.slane %v4475_v29, 2  ;;  %v3692_v30 = vld [vmem:[%s5078_s1 + $0x30] sm:$0xff] }
 0x466   : > { %1782 = vmatpush.msrb.mxu3 %v1762_v3  ;;  %1847 = vmatpush.msrb.mxu2 %v1830_v63  ;;  %v1920_v63 = vld [vmem:[%s5083_s6] sm:$0xff] }
 0x467   : > { %3685 = vmatmul.msk.f32.vlgmr.msrb.gmra.mxu3 %vm1560_vm11, %v1700_v27  ;;  %2006 = vmatpush.msrb.mxu1 %v3692_v30 }
 0x468   : > { %1848 = vmatpush.msrb.mxu2 %v1829_v40  ;;  %1912 = vmatpush.msra.mxu3 %v1892_v57  ;;  %v3831_v40 = vld [vmem:[%s5082_s5] ss:$0 sm:$0xff] }
 0x469   : > { %2007 = vmatpush.msrb.mxu1 %v3691_v28 }
 0x46a   : > { %1849 = vmatpush.msrb.mxu2 %v1828_v17  ;;  %1913 = vmatpush.msra.mxu3 %v1891_v36 }
 0x46b   : > { %2008 = vmatpush.msrb.mxu1 %v3690_v41 }
 0x46c   : > { %1850 = vmatpush.msrb.mxu2 %v1827_v8  ;;  %1914 = vmatpush.msra.mxu3 %v1890_v23  ;;  %v1976_v23 = vperm.slane %v4475_v29, 4 }
 0x46e   : > { %1915 = vmatpush.msra.mxu3 %v1889_v18 }
 0x4d6   : > { %v1725_v35 = vpop.f32.mrf.mxu3 }
 0x4d7   : > { %1728 = vst.msk [vmem:[#allocation3] sm:$0xff] %vm1560_vm11, %v1725_v35  ;;  %v1887_v35 = vperm.slane %v4475_v29, 3 }
 0x4d9   : > { %v1816_v47 = vpop.f32.mrf.mxu1 }
 0x4da   : > { %1820 = vrot.lane.b32.xlu2 %v1816_v47, %s5104_s13 }
 0x4e8   : > { %v1752_v49 = vpop.f32.mrf.mxu2 }
 0x4e9   : > { %1756 = vrot.lane.b32.xlu1 %v1752_v49, %s3893_s19 }
 0x4ea   : > { %v1784_v32 = vpop.f32.mrf.mxu3 }
 0x4eb   : > { %1788 = vrot.lane.b32.xlu0 %v1784_v32, %s5106_s22  ;;  %v1921_v32 = vld [vmem:[%s5083_s6 + $0x8] sm:$0xff]  ;;  %s5130_s22 = smov 72  }
 0x4ec   : > { %1947 = vmatpush.msrb.mxu0 %v1921_v32 }
 0x4ee   : > { %1948 = vmatpush.msrb.mxu0 %v1920_v63 }
 0x534   : > { %v1821_v5 = vpop.permute.xlu2 %1820 }
 0x55b   : > { %v1757_v0 = vpop.permute.xlu1 %1756 }
 0x55c   : > { %1760 = vst.msk [vmem:[#allocation3] sm:$0xff] %vm1759_vm7, %v1757_v0  ;;  %v1928_v0 = vperm.slane %v4475_v29, 1 }
 0x55d   : > { %v1789_v12 = vpop.permute.xlu0 %1788 }
 0x55e   : > { %1792 = vst.msk [vmem:[#allocation3] sm:$0xff] %vm1791_vm6, %v1789_v12 }
 0x55f   : > { %1824 = vst.msk [vmem:[#allocation3] sm:$0xff] %vm1823_vm8, %v1821_v5 }
 0x566   : > { %v1826_v26 = vld [vmem:[#allocation3] sm:$0xff] }
 0x567   : > { %3687 = vmatmul.msk.f32.vlgmr.msrb.gmra.mxu2 %vm391_vm0, %v1826_v26 }
 0x5ea   : > { %v1852_v31 = vpop.f32.mrf.mxu2 }
 0x5eb   : > { %v1853_v33 = vadd.f32 %v1852_v31, %v1831_v34 }
 0x5ed   : > { %v1855_v21 = vadd.f32 %v3881_v20, %v1853_v33 }
 0x5ef   : > { %v1856_v4 = vsel %vm391_vm0, %v1855_v21, 0.0 }
 0x5f0   : > { %1857 = vadd.xlane.f32.xlu1 %v1856_v4 }
 0x663   : > { %v1858_v50 = vpop.xlane.xlu1 %1857 }
 0x664   : > { %v1866_v25 = vmul.f32 %v4480_v10, %v1858_v50 }
 0x666   : > { %v1867_v14 = vsub.f32 %v1855_v21, %v1866_v25 }
 0x668   : > { %v1868_v19 = vmul.f32 %v1867_v14, %v1867_v14 }
 0x66a   : > { %v1869_v42 = vsel %vm391_vm0, %v1868_v19, 0.0 }
 0x66b   : > { %1870 = vadd.xlane.f32.xlu0 %v1869_v42 }
 0x6de   : > { %v1871_v46 = vpop.xlane.xlu0 %1870 }
 0x6df   : > { %v1872_v16 = vmul.f32 %v1871_v46, %v4480_v10 }
 0x6e1   : > { %v1873_v45 = vadd.f32 1e-05, %v1872_v16  ;;  %v3832_v16 = vld [vmem:[%s5079_s2 + $0x1] ss:$0 sm:$0xff] }
 0x6e3   : > { %3855 = vrsqrt.f32 %v1873_v45  ;;  %vm1880_vm14 = vweird.f32 %v1873_v45 }
 0x6e9   : > { %v3856_v44 = vpop.eup %3855 }
 0x6ea   : > { %v1875_v24 = vmul.f32 %v3856_v44, %v1873_v45  ;;  %vm1881_vm13 = vweird.f32 %v3856_v44 }
 0x6eb   : > { %vm1882_vm15 = vmor %vm1880_vm14, %vm1881_vm13 }
 0x6ec   : > { %v1876_v13 = vmul.f32 %v3856_v44, %v1875_v24 }
 0x6ee   : > { %v1877_v60 = vmul.f32 0.5, %v1876_v13 }
 0x6f0   : > { %v1878_v7 = vsub.f32 1.5, %v1877_v60 }
 0x6f2   : > { %v1879_v52 = vmul.f32 %v3856_v44, %v1878_v7 }
 0x6f4   : > { %v1883_v3 = vsel %vm1882_vm15, %v3856_v44, %v1879_v52 }
 0x6f5   : > { %v1884_v27 = vmul.f32 %v1883_v3, %v1867_v14 }
 0x6f7   : > { %v1886_v47 = vmul.f32 %v1885_v2, %v1884_v27 }
 0x6f9   : > { %v1888_v49 = vadd.f32 %v1887_v35, %v1886_v47 }
 0x6fb   : > { %3688 = vmatmul.msk.f32.vlgmr.msra.gmra.mxu3 %vm391_vm0, %v1888_v49 }
 0x77e   : > { %v1917_v17 = vpop.f32.mrf.mxu3 }
 0x77f   : > { %v1918_v8 = vadd.f32 %v3831_v40, %v1917_v17 }
 0x781   : > { %3689 = vmatmul.msk.f32.vlgmr.msrb.gmra.mxu0 %vm1929_vm1, %v1918_v8 }
 0x7fe   : > { %v1950_v12 = vpop.f32.mrf.mxu0 }
 0x7ff   : > { %v1951_v5 = vadd.f32 %v1950_v12, %v1928_v0 }
 0x801   : > { %v1953_v26 = vadd.f32 %v1951_v5, %v1888_v49 }
 0x803   : > { %v1954_v34 = vsel %vm391_vm0, %v1953_v26, 0.0 }
 0x804   : > { %1955 = vadd.xlane.f32.xlu2 %v1954_v34 }
 0x877   : > { %v1956_v31 = vpop.xlane.xlu2 %1955 }
 0x878   : > { %v1957_v33 = vmul.f32 %v1956_v31, %v4480_v10 }
 0x87a   : > { %v1958_v20 = vsub.f32 %v1953_v26, %v1957_v33 }
 0x87c   : > { %v1959_v21 = vmul.f32 %v1958_v20, %v1958_v20 }
 0x87e   : > { %v1960_v4 = vsel %vm391_vm0, %v1959_v21, 0.0 }
 0x87f   : > { %1961 = vadd.xlane.f32.xlu1 %v1960_v4 }
 0x8f2   : > { %v1962_v54 = vpop.xlane.xlu1 %1961 }
 0x8f3   : > { %v1963_v55 = vmul.f32 %v1962_v54, %v4480_v10 }
 0x8f5   : > { %v1964_v50 = vadd.f32 1e-05, %v1963_v55 }
 0x8f7   : > { %3857 = vrsqrt.f32 %v1964_v50  ;;  %vm1971_vm3 = vweird.f32 %v1964_v50 }
 0x8fd   : > { %v3858_v25 = vpop.eup %3857 }
 0x8fe   : > { %v1966_v14 = vmul.f32 %v3858_v25, %v1964_v50  ;;  %vm1972_vm2 = vweird.f32 %v3858_v25 }
 0x8ff   : > { %vm1973_vm4 = vmor %vm1971_vm3, %vm1972_vm2 }
 0x900   : > { %v1967_v19 = vmul.f32 %v3858_v25, %v1966_v14 }
 0x902   : > { %v1968_v42 = vmul.f32 0.5, %v1967_v19 }
 0x904   : > { %v1969_v57 = vsub.f32 1.5, %v1968_v42 }
 0x906   : > { %v1970_v36 = vmul.f32 %v3858_v25, %v1969_v57 }
 0x908   : > { %v1974_v18 = vsel %vm1973_vm4, %v3858_v25, %v1970_v36 }
 0x909   : > { %v1975_v38 = vmul.f32 %v1974_v18, %v1958_v20 }
 0x90b   : > { %v1977_v39 = vmul.f32 %v1976_v23, %v1975_v38 }
 0x90d   : > { %v4547_v46 = vadd.f32 %v1978_v11, %v1977_v39 }
 0x90f   : > { %3695 = vmatmul.msk.f32.vlgmr.msrb.gmra.mxu1 %vm391_vm0, %v4547_v46 }
 0x98c   : > { %v2010_v9 = vpop.f32.mrf.mxu1 }
 0x98d   : > { %v4554_v45 = vadd.f32 %v3832_v16, %v2010_v9 }
 0x98f   : > { %2014 = vrot.lane.b32.xlu2 %v4554_v45, %s3891_s15 }
 0x9e9   : > { %v2015_v22 = vpop.permute.xlu2 %2014 }
 0x9ea   : > { %v2017_v43 = vmin.f32 %v4554_v45, %v2015_v22  ;;  %v2023_v29 = vmax.f32 %v4554_v45, %v2015_v22 }
 0x9ec   : > { %2025 = vrot.lane.b32.xlu1 %v2023_v29, %s3892_s16  ;;  %2019 = vrot.lane.b32.xlu0 %v2017_v43, %s3892_s16  ;;  %s5119_s16 = smov 108  }
 0x9f4   : > { %3300 = vrot.lane.b32.xlu1 %v4554_v45, %s3890_s14 }
 0xa5e   : > { %v2026_v44 = vpop.permute.xlu1 %2025  ;;  %v2020_v24 = vpop.permute.xlu0 %2019 }
 0xa5f   : > { %v2028_v13 = vmax.f32 %v2023_v29, %v2026_v44  ;;  %v2022_v60 = vmin.f32 %v2017_v43, %v2020_v24 }
 0xa61   : > { %v2029_v7 = vsub.f32 %v2028_v13, %v2022_v60  ;;  %2763 = vrot.lane.b32.xlu1 %v2022_v60, %s3895_s21  ;;  %2408 = vrot.lane.b32.xlu2 %v2022_v60, %s3893_s19 }
 0xa62   : > { %2049 = vrot.lane.b32.xlu0 %v2022_v60, %s3894_s20 }
 0xa63   : > { %v2030_v52 = vadd.f32 1e-08, %v2029_v7 }
 0xa65   : > { %3859 = vrcp.f32 %v2030_v52  ;;  %v2042_v47 = vand.u32 2147483648, %v2030_v52  ;;  %v2040_v32 = vand.u32 2147483647, %v2030_v52  ;;  %vm2036_vm9 = vweird.f32 %v2030_v52 }
 0xa66   : > { %v3301_v2 = vpop.permute.xlu1 %3300 }
 0xa67   : > { %3321 = vmatpush.msra.mxu2 %v3301_v2  ;;  %v2043_v40 = vor.u32 1.1754944e-38, %v2042_v47  ;;  %vm2041_vm12 = vcmp.eq.f32.partialorder %v2040_v32, 8.507059e+37 }
 0xa6b   : > { %v3860_v3 = vpop.eup %3859 }
 0xa6c   : > { %v2032_v27 = vmul.f32 %v3860_v3, %v2030_v52  ;;  %vm2037_vm5 = vweird.f32 %v3860_v3 }
 0xa6d   : > { %vm2038_vm10 = vmor %vm2036_vm9, %vm2037_vm5 }
 0xa6e   : > { %v2033_v35 = vsub.f32 1.0, %v2032_v27 }
 0xa70   : > { %v2034_v49 = vmul.f32 %v3860_v3, %v2033_v35 }
 0xa72   : > { %v2035_v63 = vadd.f32 %v3860_v3, %v2034_v49 }
 0xa74   : > { %v2039_v17 = vsel %vm2038_vm10, %v3860_v3, %v2035_v63 }
 0xa75   : > { %v2044_v8 = vsel %vm2041_vm12, %v2043_v40, %v2039_v17 }
 0xa76   : > { %v2045_v0 = vmul.f32 3.1415927, %v2044_v8 }
 0xa78   : > { %2412 = vrot.lane.b32.xlu2 %v2045_v0, %s3893_s19  ;;  %2054 = vrot.lane.b32.xlu0 %v2045_v0, %s3894_s20  ;;  %s5120_s20 = smov 100  }
 0xa80   : > { %2767 = vrot.lane.b32.xlu0 %v2045_v0, %s3895_s21  ;;  %s5128_s21 = smov 88  }
 0xabb   : > { %v2409_v12 = vpop.permute.xlu2 %2408 }
 0xabc   : > { %v2411_v5 = vsub.f32 %v4554_v45, %v2409_v12 }
 0xad2   : > { %v2413_v26 = vpop.permute.xlu2 %2412 }
 0xad3   : > { %v4571_v34 = vmul.f32 %v2413_v26, %v2411_v5  ;;  %v2764_v0 = vpop.permute.xlu1 %2763 }
 0xad4   : > { %v2050_v19 = vpop.permute.xlu0 %2049 }
 0xad5   : > { %v2419_v31 = vand.u32 2139095040, %v4571_v34  ;;  %v2416_v4 = vand.u32 2147483647, %v4571_v34  ;;  %v2052_v2 = vsub.f32 %v4554_v45, %v2050_v19 }
 0xad7   : > { %v2420_v33 = vshrl.u32 %v2419_v31, 23  ;;  %v2423_v28 = vand.u32 8388607, %v2416_v4 }
 0xad9   : > { %v3703_v20 = vadd.s32 4294967169, %v2420_v33  ;;  %v2424_v18 = vor.u32 8388608, %v2423_v28 }
 0xadb   : > { %v2426_v21 = vadd.s32 1, %v3703_v20  ;;  %v4602_v7 = vshll.u32 %v2424_v18, 8 }
 0xadd   : > { %vm2427_vm13 = vcmp.gt.s32.totalorder %v2426_v21, 0  ;;  %v2465_v32 = vand.u32 65535, %v4602_v7  ;;  %v2466_v8 = vshrl.u32 %v4602_v7, 16 }
 0xade   : > { %v2428_v15 = vsel %vm2427_vm13, %v2426_v21, 0  ;;  %v2766_v21 = vsub.f32 %v4554_v45, %v2764_v0 }
 0xadf   : > { %v2430_v30 = vand.u32 31, %v2428_v15  ;;  %v4577_v41 = vshrl.u32 %v2428_v15, 5 }
 0xae1   : > { %v2431_v54 = vsub.s32 32, %v2430_v30  ;;  %v2433_v55 = vshll.u32 %v3898_v56, %v2430_v30  ;;  %v2436_v50 = vshll.u32 %v3900_v61, %v2430_v30  ;;  %v2439_v25 = vshll.u32 %v3901_v1, %v2430_v30 }
 0xae2   : > { %v2442_v14 = vshll.u32 %v3896_v51, %v2430_v30  ;;  %v2445_v38 = vshll.u32 %v3897_v53, %v2430_v30  ;;  %vm2448_vm14 = vcmp.lt.s32.totalorder %v4577_v41, 1  ;;  %vm2451_vm15 = vcmp.lt.s32.totalorder %v4577_v41, 4 }
 0xae3   : > { %v2434_v42 = vshrl.u32 %v3900_v61, %v2431_v54  ;;  %v2437_v57 = vshrl.u32 %v3901_v1, %v2431_v54  ;;  %v2440_v36 = vshrl.u32 %v3896_v51, %v2431_v54  ;;  %v2443_v23 = vshrl.u32 %v3897_v53, %v2431_v54 }
 0xae4   : > { %v2446_v11 = vshrl.u32 %v3899_v59, %v2431_v54  ;;  %vm2450_vm2 = vcmp.lt.s32.totalorder %v4577_v41, 3  ;;  %vm2449_vm3 = vcmp.lt.s32.totalorder %v4577_v41, 2 }
 0xae5   : > { %v2435_v39 = vor.u32 %v2434_v42, %v2433_v55  ;;  %v2438_v16 = vor.u32 %v2437_v57, %v2436_v50  ;;  %v2441_v9 = vor.u32 %v2440_v36, %v2439_v25  ;;  %v2444_v22 = vor.u32 %v2443_v23, %v2442_v14 }
 0xae6   : > { %v2447_v43 = vor.u32 %v2446_v11, %v2445_v38  ;;  %v2432_v55 = vshrl.u32 %v3898_v56, %v2431_v54 }
 0xae7   : > { %v2456_v29 = vsel %vm2448_vm14, %v2435_v39, %v2438_v16  ;;  %v2457_v44 = vsel %vm2451_vm15, %v2444_v22, 920167782  ;;  %v2460_v24 = vsel %vm2448_vm14, %v2438_v16, %v2441_v9  ;;  %v2453_v50 = vsel %vm2451_vm15, %v2441_v9, 2102212464 }
 0xae8   : > { %v2458_v13 = vsel %vm2450_vm2, %v2441_v9, %v2457_v44  ;;  %v2461_v60 = vsel %vm2451_vm15, %v2447_v43, 1326507024  ;;  %v2452_v36 = vsel %vm2448_vm14, %v2432_v55, %v2435_v39  ;;  %v2454_v54 = vsel %vm2450_vm2, %v2438_v16, %v2453_v50 }
 0xae9   : > { %v2462_v52 = vsel %vm2450_vm2, %v2444_v22, %v2461_v60  ;;  %v2459_v27 = vsel %vm2449_vm3, %v2456_v29, %v2458_v13  ;;  %v4645_v13 = vsel %vm2449_vm3, %v2452_v36, %v2454_v54 }
 0xaea   : > { %v2055_v3 = vpop.permute.xlu0 %2054  ;;  %v2463_v35 = vsel %vm2449_vm3, %v2460_v24, %v2462_v52  ;;  %v2490_v17 = vshrl.u32 %v2459_v27, 16  ;;  %v2489_v42 = vand.u32 65535, %v2459_v27 }
 0xaeb   : > { %v4612_v47 = vmul.f32 %v2055_v3, %v2052_v2  ;;  %v2468_v49 = vshrl.u32 %v2463_v35, 16  ;;  %v2467_v63 = vand.u32 65535, %v2463_v35 }
 0xaec   : > { %v4624_v30 = vmul.u32 %v2490_v17, %v2465_v32  ;;  %v2491_v29 = vmul.u32 %v2489_v42, %v2465_v32  ;;  %v4641_v44 = vmul.u32 %v2489_v42, %v2466_v8  ;;  %v2494_v35 = vmul.u32 %v2490_v17, %v2466_v8 }
 0xaed   : > { %v2061_v40 = vand.u32 2139095040, %v4612_v47  ;;  %v4617_v12 = vmul.u32 %v2468_v49, %v2465_v32  ;;  %v2058_v26 = vand.u32 2147483647, %v4612_v47  ;;  %v2469_v31 = vmul.u32 %v2467_v63, %v2465_v32 }
 0xaee   : > { %v4620_v33 = vmul.u32 %v2467_v63, %v2466_v8  ;;  %v2495_v38 = vshll.u32 %v4624_v30, 16  ;;  %v2472_v22 = vmul.u32 %v2468_v49, %v2466_v8  ;;  %v2497_v49 = vshll.u32 %v4641_v44, 16 }
 0xaef   : > { %v2062_v5 = vshrl.u32 %v2061_v40, 23  ;;  %v2473_v20 = vshll.u32 %v4617_v12, 16  ;;  %v2065_v57 = vand.u32 8388607, %v2058_v26  ;;  %v2474_v27 = vshrl.u32 %v4617_v12, 16 }
 0xaf0   : > { %v2475_v23 = vshll.u32 %v4620_v33, 16  ;;  %vm2499_vm10 = vc.u32 %v2491_v29, %v2495_v38  ;;  %v2501_v3 = vadd.s32 %v2495_v38, %v2491_v29  ;;  %v2509_v32 = vmul.u32 %v4602_v7, %v4645_v13 }
 0xaf1   : > { %v3697_v15 = vadd.s32 4294967169, %v2062_v5  ;;  %vm2477_vm4 = vc.u32 %v2469_v31, %v2473_v20  ;;  %v2479_v25 = vadd.s32 %v2473_v20, %v2469_v31  ;;  %v2066_v39 = vor.u32 8388608, %v2065_v57 }
 0xaf2   : > { %v2768_v28 = vpop.permute.xlu0 %2767  ;;  %v2478_v18 = vsel %vm2477_vm4, 1, %v3902_v62  ;;  %v2500_v0 = vsel %vm2499_vm10, 1, %v3902_v62  ;;  %vm4668_vm12 = vc.u32 %v2501_v3, %v2497_v49 }
 0xaf3   : > { %v2068_v14 = vadd.s32 1, %v3697_v15  ;;  %v4629_v19 = vmul.f32 %v2768_v28, %v2766_v21  ;;  %vm2481_vm9 = vc.u32 %v2479_v25, %v2475_v23  ;;  %v2480_v16 = vadd.s32 %v2478_v18, %v2472_v22 }
 0xaf4   : > { %v2482_v2 = vsel %vm2481_vm9, 1, %v3902_v62  ;;  %v4655_v41 = vshll.u32 %v2066_v39, 8  ;;  %v2502_v25 = vadd.s32 %v2500_v0, %v2494_v35  ;;  %v2504_v22 = vsel %vm4668_vm12, 1, %v3902_v62 }
 0xaf5   : > { %vm2069_vm5 = vcmp.gt.s32.totalorder %v2068_v14, 0  ;;  %v2774_v9 = vand.u32 2139095040, %v4629_v19  ;;  %v2771_v52 = vand.u32 2147483647, %v4629_v19  ;;  %v2484_v40 = vadd.s32 %v2482_v2, %v2480_v16 }
 0xaf6   : > { %v2070_v11 = vsel %vm2069_vm5, %v2068_v14, 0  ;;  %v2506_v16 = vadd.s32 %v2504_v22, %v2502_v25  ;;  %v2496_v2 = vshrl.u32 %v4624_v30, 16 }
 0xaf7   : > { %v2072_v43 = vand.u32 31, %v2070_v11  ;;  %v2775_v24 = vshrl.u32 %v2774_v9, 23  ;;  %v4658_v5 = vshrl.u32 %v2070_v11, 5  ;;  %v2778_v17 = vand.u32 8388607, %v2771_v52 }
 0xaf8   : > { %v2485_v57 = vadd.s32 %v2484_v40, %v2474_v27  ;;  %v2476_v9 = vshrl.u32 %v4620_v33, 16  ;;  %v2498_v27 = vshrl.u32 %v4641_v44, 16  ;;  %v2108_v40 = vshrl.u32 %v4655_v41, 16 }
 0xaf9   : > { %v4647_v60 = vsub.s32 32, %v2072_v43  ;;  %v3709_v63 = vadd.s32 4294967169, %v2775_v24  ;;  %v2084_v8 = vshll.u32 %v3896_v51, %v2072_v43  ;;  %v2087_v20 = vshll.u32 %v3897_v53, %v2072_v43 }
 0xafa   : > { %v2075_v14 = vshll.u32 %v3898_v56, %v2072_v43  ;;  %v2078_v42 = vshll.u32 %v3900_v61, %v2072_v43  ;;  %v2081_v36 = vshll.u32 %v3901_v1, %v2072_v43  ;;  %v2779_v38 = vor.u32 8388608, %v2778_v17 }
 0xafb   : > { %v2085_v31 = vshrl.u32 %v3897_v53, %v4647_v60  ;;  %v2088_v12 = vshrl.u32 %v3899_v59, %v4647_v60  ;;  %v2781_v21 = vadd.s32 1, %v3709_v63  ;;  %v2076_v28 = vshrl.u32 %v3900_v61, %v4647_v60 }
 0xafc   : > { %v2079_v55 = vshrl.u32 %v3901_v1, %v4647_v60  ;;  %v2082_v50 = vshrl.u32 %v3896_v51, %v4647_v60  ;;  %vm2093_vm14 = vcmp.lt.s32.totalorder %v4658_v5, 4  ;;  %v4690_v43 = vadd.s32 %v2485_v57, %v2476_v9 }
 0xafd   : > { %vm2782_vm13 = vcmp.gt.s32.totalorder %v2781_v21, 0  ;;  %v2086_v23 = vor.u32 %v2085_v31, %v2084_v8  ;;  %v2089_v54 = vor.u32 %v2088_v12, %v2087_v20  ;;  %v4685_v29 = vor.u32 %v2076_v28, %v2075_v14 }
 0xafe   : > { %v2783_v18 = vsel %vm2782_vm13, %v2781_v21, 0  ;;  %v4687_v39 = vor.u32 %v2079_v55, %v2078_v42  ;;  %v2083_v24 = vor.u32 %v2082_v50, %v2081_v36  ;;  %v2107_v63 = vand.u32 65535, %v4655_v41 }
 0xaff   : > { %v2785_v11 = vand.u32 31, %v2783_v18  ;;  %v2099_v33 = vsel %vm2093_vm14, %v2086_v23, 920167782  ;;  %v2103_v35 = vsel %vm2093_vm14, %v2089_v54, 1326507024  ;;  %vm2090_vm15 = vcmp.lt.s32.totalorder %v4658_v5, 1 }
 0xb00   : > { %vm2092_vm2 = vcmp.lt.s32.totalorder %v4658_v5, 3  ;;  %v4704_v31 = vadd.s32 %v2501_v3, %v2497_v49  ;;  %v2098_v30 = vsel %vm2090_vm15, %v4685_v29, %v4687_v39  ;;  %v2102_v44 = vsel %vm2090_vm15, %v4687_v39, %v2083_v24 }
 0xb01   : > { %v4702_v0 = vsub.s32 32, %v2785_v11  ;;  %v4713_v12 = vshll.u32 %v2779_v38, 8  ;;  %v2507_v17 = vadd.s32 %v2506_v16, %v2496_v2  ;;  %v2100_v8 = vsel %vm2092_vm2, %v2083_v24, %v2099_v33 }
 0xb02   : > { %v2104_v20 = vsel %vm2092_vm2, %v2086_v23, %v2103_v35  ;;  %v4719_v3 = vshrl.u32 %v2783_v18, 5  ;;  %vm2511_vm3 = vc.u32 %v4690_v43, %v4704_v31  ;;  %v2788_v49 = vshll.u32 %v3898_v56, %v2785_v11 }
 0xb03   : > { %v2791_v21 = vshll.u32 %v3900_v61, %v2785_v11  ;;  %v2508_v15 = vadd.s32 %v2507_v17, %v2498_v27  ;;  %v2074_v28 = vshrl.u32 %v3898_v56, %v4647_v60  ;;  %v2789_v55 = vshrl.u32 %v3900_v61, %v4702_v0 }
 0xb04   : > { %v2794_v50 = vshll.u32 %v3901_v1, %v2785_v11  ;;  %v2797_v25 = vshll.u32 %v3896_v51, %v2785_v11  ;;  %v2800_v14 = vshll.u32 %v3897_v53, %v2785_v11  ;;  %v2792_v42 = vshrl.u32 %v3901_v1, %v4702_v0 }
 0xb05   : > { %v2795_v57 = vshrl.u32 %v3896_v51, %v4702_v0  ;;  %v2512_v36 = vadd.s32 1, %v2508_v15  ;;  %vm2091_vm4 = vcmp.lt.s32.totalorder %v4658_v5, 2  ;;  %v2798_v60 = vshrl.u32 %v3897_v53, %v4702_v0 }
 0xb06   : > { %v2801_v61 = vshrl.u32 %v3899_v59, %v4702_v0  ;;  %v2101_v23 = vsel %vm2091_vm4, %v2098_v30, %v2100_v8  ;;  %v2105_v54 = vsel %vm2091_vm4, %v2102_v44, %v2104_v20  ;;  %v4748_v11 = vor.u32 %v2789_v55, %v2788_v49 }
 0xb07   : > { %v2513_v1 = vsel %vm2511_vm3, %v2512_v36, %v2508_v15  ;;  %v2109_v51 = vand.u32 65535, %v2105_v54  ;;  %v2110_v18 = vshrl.u32 %v2105_v54, 16  ;;  %v2131_v38 = vand.u32 65535, %v2101_v23 }
 0xb08   : > { %vm2806_vm5 = vcmp.lt.s32.totalorder %v4719_v3, 4  ;;  %v2514_v53 = vadd.s32 %v2513_v1, %v2509_v32  ;;  %v2132_v59 = vshrl.u32 %v2101_v23, 16  ;;  %v4754_v9 = vor.u32 %v2792_v42, %v2791_v21 }
 0xb09   : > { %v4756_v22 = vor.u32 %v2795_v57, %v2794_v50  ;;  %v2112_v16 = vmul.u32 %v2110_v18, %v2107_v63  ;;  %v2113_v2 = vmul.u32 %v2109_v51, %v2108_v40  ;;  %v2799_v27 = vor.u32 %v2798_v60, %v2797_v25 }
 0xb0a   : > { %vm2803_vm9 = vcmp.lt.s32.totalorder %v4719_v3, 1  ;;  %v2515_v33 = vadd.s32 536870912, %v2514_v53  ;;  %v2134_v35 = vmul.u32 %v2132_v59, %v2107_v63  ;;  %v2135_v30 = vmul.u32 %v2131_v38, %v2108_v40 }
 0xb0b   : > { %v2802_v44 = vor.u32 %v2801_v61, %v2800_v14  ;;  %v2095_v17 = vsel %vm2093_vm14, %v2083_v24, 2102212464  ;;  %v2111_v8 = vmul.u32 %v2109_v51, %v2107_v63  ;;  %v2115_v7 = vshll.u32 %v2112_v16, 16 }
 0xb0c   : > { %v4761_v13 = vshrl.u32 %v2515_v33, 30  ;;  %v2114_v32 = vmul.u32 %v2110_v18, %v2108_v40  ;;  %v2133_v20 = vmul.u32 %v2131_v38, %v2107_v63  ;;  %v2137_v49 = vshll.u32 %v2134_v35, 16 }
 0xb0d   : > { %v2117_v21 = vshll.u32 %v2113_v2, 16  ;;  %vm2119_vm10 = vc.u32 %v2111_v8, %v2115_v7  ;;  %v2121_v15 = vadd.s32 %v2115_v7, %v2111_v8  ;;  %v2136_v55 = vmul.u32 %v2132_v59, %v2108_v40 }
 0xb0e   : > { %v2517_v50 = vshll.u32 %v4761_v13, 30  ;;  %v2120_v25 = vsel %vm2119_vm10, 1, %v3902_v62  ;;  %v2139_v42 = vshll.u32 %v2135_v30, 16  ;;  %vm2141_vm12 = vc.u32 %v2133_v20, %v2137_v49 }
 0xb0f   : > { %v2122_v14 = vadd.s32 %v2120_v25, %v2114_v32  ;;  %vm2123_vm13 = vc.u32 %v2121_v15, %v2117_v21  ;;  %v2142_v24 = vsel %vm2141_vm12, 1, %v3902_v62  ;;  %v2143_v57 = vadd.s32 %v2137_v49, %v2133_v20 }
 0xb10   : > { %v2812_v36 = vsel %vm2806_vm5, %v2799_v27, 920167782  ;;  %v2816_v63 = vsel %vm2806_vm5, %v2802_v44, 1326507024  ;;  %v2518_v60 = vsub.s32 %v2514_v53, %v2517_v50  ;;  %v2124_v40 = vsel %vm2123_vm13, 1, %v3902_v62 }
 0xb11   : > { %v2116_v61 = vshrl.u32 %v2112_v16, 16  ;;  %v2126_v23 = vadd.s32 %v2124_v40, %v2122_v14  ;;  %v2144_v54 = vadd.s32 %v2142_v24, %v2136_v55  ;;  %vm2145_vm14 = vc.u32 %v2143_v57, %v2139_v42 }
 0xb12   : > { %vm2805_vm3 = vcmp.lt.s32.totalorder %v4719_v3, 3  ;;  %vm2519_vm10 = vcmp.lt.s32.totalorder %v2518_v60, 0  ;;  %v2520_v1 = vsub.s32 0, %v2518_v60  ;;  %v2094_v51 = vsel %vm2090_vm15, %v2074_v28, %v4685_v29 }
 0xb13   : > { %v2815_v18 = vsel %vm2803_vm9, %v4754_v9, %v4756_v22  ;;  %v2817_v38 = vsel %vm2805_vm3, %v2799_v27, %v2816_v63  ;;  %v2127_v53 = vadd.s32 %v2126_v23, %v2116_v61  ;;  %v2146_v59 = vsel %vm2145_vm14, 1, %v3902_v62 }
 0xb14   : > { %v2811_v16 = vsel %vm2803_vm9, %v4748_v11, %v4754_v9  ;;  %v2813_v29 = vsel %vm2805_vm3, %v4756_v22, %v2812_v36  ;;  %v2521_v28 = vsel %vm2519_vm10, %v2520_v1, %v2518_v60  ;;  %v2096_v33 = vsel %vm2092_vm2, %v4687_v39, %v2095_v17 }
 0xb15   : > { %v2522_v44 = vclz %v2521_v28  ;;  %v2118_v8 = vshrl.u32 %v2113_v2, 16  ;;  %v2148_v27 = vadd.s32 %v2146_v59, %v2144_v54  ;;  %vm2804_vm15 = vcmp.lt.s32.totalorder %v4719_v3, 2 }
 0xb16   : > { %v2138_v7 = vshrl.u32 %v2134_v35, 16  ;;  %v2818_v32 = vsel %vm2804_vm15, %v2815_v18, %v2817_v38  ;;  %v2820_v20 = vand.u32 65535, %v4713_v12  ;;  %v2814_v15 = vsel %vm2804_vm15, %v2811_v16, %v2813_v29 }
 0xb17   : > { %v3704_v49 = vadd.s32 4294967294, %v2522_v44  ;;  %v4796_v21 = vadd.s32 %v2127_v53, %v2118_v8  ;;  %v2821_v55 = vshrl.u32 %v4713_v12, 16  ;;  %v2097_v39 = vsel %vm2091_vm4, %v2094_v51, %v2096_v33 }
 0xb18   : > { %v2140_v2 = vshrl.u32 %v2135_v30, 16  ;;  %v2149_v17 = vadd.s32 %v2148_v27, %v2138_v7  ;;  %v4803_v35 = vadd.s32 %v2143_v57, %v2139_v42  ;;  %v2822_v50 = vand.u32 65535, %v2818_v32 }
 0xb19   : > { %vm3705_vm2 = vcmp.lt.s32.totalorder %v3704_v49, 0  ;;  %v2823_v25 = vshrl.u32 %v2818_v32, 16  ;;  %v2510_v14 = vadd.s32 %v4704_v31, %v4690_v43  ;;  %v2845_v63 = vshrl.u32 %v2814_v15, 16 }
 0xb1a   : > { %v2525_v24 = vsel %vm3705_vm2, 0, %v3704_v49  ;;  %v2150_v36 = vadd.s32 %v2149_v17, %v2140_v2  ;;  %vm2153_vm12 = vc.u32 %v4796_v21, %v4803_v35  ;;  %v2844_v5 = vand.u32 65535, %v2814_v15 }
 0xb1b   : > { %v2526_v40 = vsub.s32 32, %v2525_v24  ;;  %v2530_v61 = vsub.s32 4294967266, %v2525_v24  ;;  %v2151_v30 = vmul.u32 %v4655_v41, %v2097_v39  ;;  %v2825_v54 = vmul.u32 %v2823_v25, %v2820_v20 }
 0xb1c   : > { %v2154_v23 = vadd.s32 1, %v2150_v36  ;;  %v2826_v42 = vmul.u32 %v2822_v50, %v2821_v55  ;;  %v2527_v57 = vshll.u32 %v2518_v60, %v2525_v24  ;;  %v2824_v18 = vmul.u32 %v2822_v50, %v2820_v20 }
 0xb1d   : > { %v2528_v1 = vshrl.u32 %v2510_v14, %v2526_v40  ;;  %v2531_v51 = vadd.s32 127, %v2530_v61  ;;  %v2827_v43 = vmul.u32 %v2823_v25, %v2821_v55  ;;  %v2828_v31 = vshll.u32 %v2825_v54, 16 }
 0xb1e   : > { %v2155_v38 = vsel %vm2153_vm12, %v2154_v23, %v2150_v36  ;;  %v2847_v53 = vmul.u32 %v2845_v63, %v2820_v20  ;;  %v2846_v28 = vmul.u32 %v2844_v5, %v2820_v20  ;;  %vm2418_vm4 = vcmp.lt.s32.totalorder %v4571_v34, 0 }
 0xb1f   : > { %v2529_v59 = vor.u32 %v2528_v1, %v2527_v57  ;;  %v2532_v16 = vshll.u32 %v2531_v51, 23  ;;  %v2156_v29 = vadd.s32 %v2155_v38, %v2151_v30  ;;  %v2830_v33 = vshll.u32 %v2826_v42, 16 }
 0xb20   : > { %vm2832_vm13 = vc.u32 %v2824_v18, %v2828_v31  ;;  %v2834_v41 = vadd.s32 %v2828_v31, %v2824_v18  ;;  %v2848_v44 = vmul.u32 %v2844_v5, %v2821_v55  ;;  %vm4813_vm14 = vcmp.le.f32.partialorder %v2416_v4, 0.7853982 }
 0xb21   : > { %v2533_v8 = vor.u32 4788187, %v2532_v16  ;;  %v2157_v27 = vadd.s32 536870912, %v2156_v29  ;;  %v2829_v7 = vshrl.u32 %v2825_v54, 16  ;;  %v2833_v32 = vsel %vm2832_vm13, 1, %v3902_v62 }
 0xb22   : > { %v2835_v49 = vadd.s32 %v2833_v32, %v2827_v43  ;;  %vm2836_vm10 = vc.u32 %v2834_v41, %v2830_v33  ;;  %v2849_v20 = vmul.u32 %v2845_v63, %v2821_v55  ;;  %v2850_v15 = vshll.u32 %v2847_v53, 16 }
 0xb23   : > { %v2534_v39 = vand.u32 2147483647, %v2533_v8  ;;  %v2536_v2 = vcvt.s32.f32 %v2529_v59  ;;  %v4818_v17 = vshrl.u32 %v2157_v27, 30  ;;  %v2837_v50 = vsel %vm2836_vm10, 1, %v3902_v62 }
 0xb24   : > { %v2839_v25 = vadd.s32 %v2837_v50, %v2835_v49  ;;  %v2852_v4 = vshll.u32 %v2848_v44, 16  ;;  %vm2854_vm2 = vc.u32 %v2846_v28, %v2850_v15  ;;  %v2856_v14 = vadd.s32 %v2850_v15, %v2846_v28 }
 0xb25   : > { %v2537_v24 = vmul.f32 %v2536_v2, %v2534_v39  ;;  %v2159_v36 = vshll.u32 %v4818_v17, 30  ;;  %v2787_v40 = vshrl.u32 %v3898_v56, %v4702_v0  ;;  %v2855_v61 = vsel %vm2854_vm2, 1, %v3902_v62 }
 0xb26   : > { %v2808_v55 = vsel %vm2806_vm5, %v4756_v22, 2102212464  ;;  %v2840_v63 = vadd.s32 %v2839_v25, %v2829_v7  ;;  %v2857_v5 = vadd.s32 %v2855_v61, %v2849_v20  ;;  %vm2858_vm12 = vc.u32 %v2856_v14, %v2852_v4 }
 0xb27   : > { %v2538_v30 = vxor.u32 2147483648, %v2537_v24  ;;  %v2540_v23 = vsub.s32 4, %v4761_v13  ;;  %v2160_v54 = vsub.s32 %v2156_v29, %v2159_v36  ;;  %v2859_v57 = vsel %vm2858_vm12, 1, %v3902_v62 }
 0xb28   : > { %v2807_v1 = vsel %vm2803_vm9, %v2787_v40, %v4748_v11  ;;  %v2831_v56 = vshrl.u32 %v2826_v42, 16  ;;  %v2851_v0 = vshrl.u32 %v2847_v53, 16  ;;  %v2861_v51 = vadd.s32 %v2859_v57, %v2857_v5 }
 0xb29   : > { %v2539_v18 = vsel %vm2418_vm4, %v2538_v30, %v2537_v24  ;;  %vm2161_vm5 = vcmp.lt.s32.totalorder %v2160_v54, 0  ;;  %v2162_v22 = vsub.s32 0, %v2160_v54  ;;  %v2809_v38 = vsel %vm2805_vm3, %v4754_v9, %v2808_v55 }
 0xb2a   : > { %v2542_v62 = vsel %vm4813_vm14, %v4571_v34, %v2539_v18  ;;  %v4841_v43 = vadd.s32 %v2840_v63, %v2831_v56  ;;  %v2853_v31 = vshrl.u32 %v2848_v44, 16  ;;  %v2862_v11 = vadd.s32 %v2861_v51, %v2851_v0 }
 0xb2b   : > { %v2544_v42 = vmul.f32 %v2542_v62, %v2542_v62  ;;  %v2163_v53 = vsel %vm2161_vm5, %v2162_v22, %v2160_v54  ;;  %v4843_v16 = vadd.s32 %v2856_v14, %v2852_v4  ;;  %v2541_v28 = vsel %vm2418_vm4, %v2540_v23, %v4761_v13 }
 0xb2c   : > { %v2164_v59 = vclz %v2163_v53  ;;  %v2863_v29 = vadd.s32 %v2862_v11, %v2853_v31  ;;  %v2810_v41 = vsel %vm2804_vm15, %v2807_v1, %v2809_v38  ;;  %v2543_v32 = vsel %vm4813_vm14, 0, %v2541_v28 }
 0xb2d   : > { %v2545_v33 = vmul.f32 -0.001358992, %v2544_v42  ;;  %v2552_v9 = vmul.f32 -0.00019511016, %v2544_v42  ;;  %vm2866_vm9 = vc.u32 %v4841_v43, %v4843_v16  ;;  %v2864_v49 = vmul.u32 %v4713_v12, %v2810_v41 }
 0xb2e   : > { %v3698_v8 = vadd.s32 4294967294, %v2164_v59  ;;  %v2867_v7 = vadd.s32 1, %v2863_v29  ;;  %v2152_v3 = vadd.s32 %v4803_v35, %v4796_v21  ;;  %v2715_v24 = vadd.s32 3, %v2543_v32  ;;  %v4862_v21 = vld [vmem:[%s5085_s8 + $0x2] sm:$0x3] }
 0xb2f   : > { %v2546_v44 = vadd.f32 0.041655596, %v2545_v33  ;;  %v2553_v27 = vadd.f32 0.008332121, %v2552_v9  ;;  %v2560_v1 = vand.u32 3, %v2543_v32  ;;  %vm2559_vm15 = vweird.f32 %v4571_v34 }
 0xb30   : > { %vm3699_vm3 = vcmp.lt.s32.totalorder %v3698_v8, 0  ;;  %v2868_v39 = vsel %vm2866_vm9, %v2867_v7, %v2863_v29  ;;  %v2716_v35 = vand.u32 3, %v2715_v24  ;;  %vm2060_vm4 = vcmp.lt.s32.totalorder %v4612_v47, 0 }
 0xb31   : > { %v2547_v20 = vmul.f32 %v2546_v44, %v2544_v42  ;;  %v2554_v13 = vmul.f32 %v2553_v27, %v2544_v42  ;;  %v2167_v15 = vsel %vm3699_vm3, 0, %v3698_v8  ;;  %v2869_v25 = vadd.s32 %v2868_v39, %v2864_v49 }
 0xb32   : > { %v2168_v2 = vsub.s32 32, %v2167_v15  ;;  %v2172_v50 = vsub.s32 4294967266, %v2167_v15  ;;  %v2169_v36 = vshll.u32 %v2160_v54, %v2167_v15  ;;  %v2214_v31 = vsub.f32 0.0, %v4862_v21 }
 0xb33   : > { %v2548_v4 = vadd.f32 -0.4999988, %v2547_v20  ;;  %v2555_v14 = vadd.f32 -0.16666654, %v2554_v13  ;;  %v2870_v61 = vadd.s32 536870912, %v2869_v25  ;;  %vm2562_vm13 = vcmp.eq.s32.totalorder %v2560_v1, 0 }
 0xb34   : > { %v2170_v40 = vshrl.u32 %v2152_v3, %v2168_v2  ;;  %v2173_v60 = vadd.s32 127, %v2172_v50  ;;  %vm2565_vm14 = vcmp.eq.s32.totalorder %v2560_v1, 2  ;;  %vm2718_vm10 = vcmp.eq.s32.totalorder %v2716_v35, 0 }
 0xb35   : > { %v2549_v55 = vmul.f32 %v2548_v4, %v2544_v42  ;;  %v2556_v63 = vmul.f32 %v2555_v14, %v2544_v42  ;;  %v4857_v30 = vshrl.u32 %v2870_v61, 30  ;;  %vm2561_vm12 = vcmp.lt.s32.totalorder %v2560_v1, 2 }
 0xb36   : > { %v2171_v12 = vor.u32 %v2170_v40, %v2169_v36  ;;  %v2174_v5 = vshll.u32 %v2173_v60, 23  ;;  %vm2721_vm5 = vcmp.eq.s32.totalorder %v2716_v35, 2  ;;  %vm2717_vm9 = vcmp.lt.s32.totalorder %v2716_v35, 2 }
 0xb37   : > { %v2550_v23 = vadd.f32 1.0, %v2549_v55  ;;  %v2557_v57 = vadd.f32 1.0, %v2556_v63  ;;  %v2872_v54 = vshll.u32 %v4857_v30, 30  ;;  %vm4876_vm3 = vcmp.le.f32.partialorder %v2058_v26, 0.7853982 }
 0xb38   : > { %v2175_v56 = vor.u32 4788187, %v2174_v5  ;;  %v2178_v22 = vcvt.s32.f32 %v2171_v12  ;;  %v2182_v49 = vsub.s32 4, %v4818_v17  ;;  %v4886_v15 = vperm.slane %v2214_v31, 1 }
 0xb39   : > { %v2558_v0 = vmul.f32 %v2557_v57, %v2542_v62  ;;  %v2566_v51 = vxor.u32 2147483648, %v2550_v23  ;;  %v2873_v38 = vsub.s32 %v2869_v25, %v2872_v54  ;;  %v2865_v4 = vadd.s32 %v4843_v16, %v4841_v43 }
 0xb3a   : > { %v2176_v18 = vand.u32 2147483647, %v2175_v56  ;;  %v2183_v25 = vsel %vm2060_vm4, %v2182_v49, %v4818_v17 }
 0xb3b   : > { %v2563_v11 = vxor.u32 2147483648, %v2558_v0  ;;  %vm2874_vm2 = vcmp.lt.s32.totalorder %v2873_v38, 0  ;;  %v2875_v53 = vsub.s32 0, %v2873_v38  ;;  %v2567_v62 = vsel %vm2565_vm14, %v2566_v51, %v2558_v0 }
 0xb3c   : > { %v2179_v42 = vmul.f32 %v2178_v22, %v2176_v18  ;;  %v2723_v8 = vsel %vm2721_vm5, %v2566_v51, %v2558_v0  ;;  %v2185_v63 = vsel %vm4876_vm3, 0, %v2183_v25  ;;  %vm2201_vm5 = vweird.f32 %v4612_v47 }
 0xb3d   : > { %v2564_v59 = vsel %vm2562_vm13, %v2550_v23, %v2563_v11  ;;  %v2720_v29 = vsel %vm2718_vm10, %v2550_v23, %v2563_v11  ;;  %v2876_v9 = vsel %vm2874_vm2, %v2875_v53, %v2873_v38  ;;  %v2359_v57 = vadd.s32 3, %v2185_v63 }
 0xb3e   : > { %v2568_v28 = vsel %vm2561_vm12, %v2564_v59, %v2567_v62  ;;  %v2180_v33 = vxor.u32 2147483648, %v2179_v42  ;;  %v2877_v44 = vclz %v2876_v9  ;;  %v2724_v27 = vsel %vm2717_vm9, %v2720_v29, %v2723_v8 }
 0xb3f   : > { %v4870_v41 = vsel %vm2559_vm15, nan, %v2568_v28  ;;  %v2725_v3 = vsel %vm2559_vm15, nan, %v2724_v27  ;;  %v2202_v22 = vand.u32 3, %v2185_v63  ;;  %vm2773_vm15 = vcmp.lt.s32.totalorder %v4629_v19, 0 }
 0xb40   : > { %2728 = vrot.lane.b32.xlu1 %v4870_v41, %s3910_s26  ;;  %v2181_v32 = vsel %vm2060_vm4, %v2180_v33, %v2179_v42  ;;  %v3710_v13 = vadd.s32 4294967294, %v2877_v44  ;;  %v4896_v36 = vmul.f32 %v2725_v3, %v4886_v15  ;;  %vm4905_vm10 = vcmp.le.f32.partialorder %v2771_v52, 0.7853982  ;;  %s5129_s26 = smov 80  }
 0xb41   : > { %v2184_v20 = vsel %vm4876_vm3, %v4612_v47, %v2181_v32  ;;  %vm2203_vm4 = vcmp.lt.s32.totalorder %v2202_v22, 2  ;;  %vm2204_vm14 = vcmp.eq.s32.totalorder %v2202_v22, 0  ;;  %vm2207_vm2 = vcmp.eq.s32.totalorder %v2202_v22, 2 }
 0xb42   : > { %v2186_v39 = vmul.f32 %v2184_v20, %v2184_v20  ;;  %vm3711_vm13 = vcmp.lt.s32.totalorder %v3710_v13, 0  ;;  %v2895_v28 = vsub.s32 4, %v4857_v30  ;;  %v5127_v22 = vmov 10  }
 0xb43   : > { %v2880_v50 = vsel %vm3711_vm13, 0, %v3710_v13 }
 0xb44   : > { %v2187_v26 = vmul.f32 -0.001358992, %v2186_v39  ;;  %v2194_v2 = vmul.f32 -0.00019511016, %v2186_v39  ;;  %v2881_v14 = vsub.s32 32, %v2880_v50  ;;  %v2885_v24 = vsub.s32 4294967266, %v2880_v50 }
 0xb45   : > { %v2882_v34 = vshll.u32 %v2873_v38, %v2880_v50  ;;  %v2360_v38 = vand.u32 3, %v2359_v57 }
 0xb46   : > { %v2188_v40 = vadd.f32 0.041655596, %v2187_v26  ;;  %v2195_v60 = vadd.f32 0.008332121, %v2194_v2  ;;  %v2883_v61 = vshrl.u32 %v2865_v4, %v2881_v14  ;;  %v2886_v55 = vadd.s32 127, %v2885_v24 }
 0xb47   : > { %vm2362_vm12 = vcmp.eq.s32.totalorder %v2360_v38, 0  ;;  %vm2365_vm9 = vcmp.eq.s32.totalorder %v2360_v38, 2  ;;  %vm2361_vm3 = vcmp.lt.s32.totalorder %v2360_v38, 2 }
 0xb48   : > { %3133 = vperm.xlu1 %3810, %v4896_v36   ;;  %v2189_v12 = vmul.f32 %v2188_v40, %v2186_v39  ;;  %v2196_v17 = vmul.f32 %v2195_v60, %v2186_v39  ;;  %v2884_v5 = vor.u32 %v2883_v61, %v2882_v34  ;;  %v2887_v23 = vshll.u32 %v2886_v55, 23 }
 0xb4a   : > { %v2190_v43 = vadd.f32 -0.4999988, %v2189_v12  ;;  %v2197_v16 = vadd.f32 -0.16666654, %v2196_v17  ;;  %v2888_v1 = vor.u32 4788187, %v2887_v23  ;;  %v2891_v0 = vcvt.s32.f32 %v2884_v5 }
 0xb4c   : > { %v2191_v35 = vmul.f32 %v2190_v43, %v2186_v39  ;;  %v2198_v56 = vmul.f32 %v2197_v16, %v2186_v39  ;;  %v2889_v54 = vand.u32 2147483647, %v2888_v1  ;;  %v2896_v39 = vsel %vm2773_vm15, %v2895_v28, %v4857_v30 }
 0xb4d   : > { %v2898_v47 = vsel %vm4905_vm10, 0, %v2896_v39  ;;  %v2212_v30 = vperm.slane %v4862_v21, 0 }
 0xb4e   : > { %v2192_v51 = vadd.f32 1.0, %v2191_v35  ;;  %v2199_v18 = vadd.f32 1.0, %v2198_v56  ;;  %v2892_v31 = vmul.f32 %v2891_v0, %v2889_v54  ;;  %v3070_v40 = vadd.s32 3, %v2898_v47 }
 0xb4f   : > { %v2915_v63 = vand.u32 3, %v2898_v47  ;;  %v2570_v23 = vmul.f32 %v4870_v41, %v2212_v30 }
 0xb50   : > { %v2200_v11 = vmul.f32 %v2199_v18, %v2184_v20  ;;  %v2208_v42 = vxor.u32 2147483648, %v2192_v51  ;;  %3813 = vset.pattern.permute.xlu1 %v3905_v58  ;;  %v2893_v53 = vxor.u32 2147483648, %v2892_v31  ;;  %v3071_v12 = vand.u32 3, %v3070_v40 }
 0xb51   : > { %vm2916_vm13 = vcmp.lt.s32.totalorder %v2915_v63, 2 }
 0xb52   : > { %v2205_v59 = vxor.u32 2147483648, %v2200_v11  ;;  %v2894_v29 = vsel %vm2773_vm15, %v2893_v53, %v2892_v31  ;;  %v2209_v9 = vsel %vm2207_vm2, %v2208_v42, %v2200_v11  ;;  %v2367_v32 = vsel %vm2365_vm9, %v2208_v42, %v2200_v11 }
 0xb53   : > { %v2897_v44 = vsel %vm4905_vm10, %v4629_v19, %v2894_v29  ;;  %vm2917_vm15 = vcmp.eq.s32.totalorder %v2915_v63, 0  ;;  %vm3073_vm10 = vcmp.eq.s32.totalorder %v3071_v12, 0  ;;  %vm3076_vm2 = vcmp.eq.s32.totalorder %v3071_v12, 2 }
 0xb54   : > { %v2206_v33 = vsel %vm2204_vm14, %v2192_v51, %v2205_v59  ;;  %v2364_v8 = vsel %vm2362_vm12, %v2192_v51, %v2205_v59  ;;  %v2899_v27 = vmul.f32 %v2897_v44, %v2897_v44  ;;  %vm3072_vm14 = vcmp.lt.s32.totalorder %v3071_v12, 2 }
 0xb55   : > { %v2210_v52 = vsel %vm2203_vm4, %v2206_v33, %v2209_v9  ;;  %v2368_v49 = vsel %vm2361_vm3, %v2364_v8, %v2367_v32  ;;  %vm2920_vm4 = vcmp.eq.s32.totalorder %v2915_v63, 2  ;;  %vm2914_vm12 = vweird.f32 %v4629_v19 }
 0xb56   : > { %v2211_v7 = vsel %vm2201_vm5, nan, %v2210_v52  ;;  %v2900_v20 = vmul.f32 -0.001358992, %v2899_v27  ;;  %v2907_v13 = vmul.f32 -0.00019511016, %v2899_v27  ;;  %v2369_v2 = vsel %vm2201_vm5, nan, %v2368_v49 }
 0xb57   : > { %2373 = vrot.lane.b32.xlu2 %v2211_v7, %s5119_s16  ;;  %v4923_v4 = vmul.f32 %v4886_v15, %v2369_v2  ;;  %v2213_v18 = vmul.f32 %v2212_v30, %v2211_v7  ;;  %v5122_v19 = vmov 11  }
 0xb58   : > { %v2901_v3 = vadd.f32 0.041655596, %v2900_v20  ;;  %v2908_v26 = vadd.f32 0.008332121, %v2907_v13 }
 0xb5a   : > { %v2902_v50 = vmul.f32 %v2901_v3, %v2899_v27  ;;  %v2909_v25 = vmul.f32 %v2908_v26, %v2899_v27 }
 0xb5c   : > { %v2903_v14 = vadd.f32 -0.4999988, %v2902_v50  ;;  %v2910_v24 = vadd.f32 -0.16666654, %v2909_v25 }
 0xb5e   : > { %v2904_v60 = vmul.f32 %v2903_v14, %v2899_v27  ;;  %v2911_v34 = vmul.f32 %v2910_v24, %v2899_v27 }
 0xb5f   : > { %3120 = vperm.xlu2 %3809, %v4923_v4  }
 0xb60   : > { %v2905_v61 = vadd.f32 1.0, %v2904_v60  ;;  %v2912_v55 = vadd.f32 1.0, %v2911_v34 }
 0xb62   : > { %v2913_v17 = vmul.f32 %v2912_v55, %v2897_v44  ;;  %v2921_v5 = vxor.u32 2147483648, %v2905_v61 }
 0xb64   : > { %v2918_v43 = vxor.u32 2147483648, %v2913_v17  ;;  %v2922_v57 = vsel %vm2920_vm4, %v2921_v5, %v2913_v17  ;;  %v3078_v35 = vsel %vm3076_vm2, %v2921_v5, %v2913_v17 }
 0xb66   : > { %v2919_v16 = vsel %vm2917_vm15, %v2905_v61, %v2918_v43  ;;  %v3075_v1 = vsel %vm3073_vm10, %v2905_v61, %v2918_v43 }
 0xb67   : > { %3812 = vset.pattern.permute.xlu2 %v3906_v37  ;;  %v2923_v21 = vsel %vm2916_vm13, %v2919_v16, %v2922_v57  ;;  %v3079_v56 = vsel %vm3072_vm14, %v3075_v1, %v3078_v35  ;;  %v5121_v37 = vmov 13  }
 0xb68   : > { %3140 = vperm.xlu2 %3812, %v2570_v23   ;;  %v2924_v54 = vsel %vm2914_vm12, nan, %v2923_v21  ;;  %v3080_v41 = vsel %vm2914_vm12, nan, %v3079_v56 }
 0xb69   : > { %v3081_v0 = vmul.f32 %v3080_v41, %v4886_v15  ;;  %3083 = vrot.lane.b32.xlu0 %v2924_v54, %s5120_s20  ;;  %v2925_v51 = vmul.f32 %v2924_v54, %v2212_v30  ;;  %v5126_v15 = vmov 6  }
 0xb6b   : > { %3147 = vperm.xlu1 %3813, %v3081_v0  }
 0xb70   : > { %3814 = vset.pattern.permute.xlu2 %v3905_v58  ;;  %v5123_v58 = vmov 7  }
 0xb71   : > { %3154 = vperm.xlu2 %3814, %v2925_v51   ;;  %3127 = vperm.xlu0 %3811, %v2213_v18  }
 0xb73   : > { %3815 = vset.pattern.permute.xlu1 %v3908_v48 }
 0xb74   : > { %3161 = vperm.xlu1 %3815, %v4923_v4  }
 0xb79   : > { %3817 = vset.pattern.permute.xlu2 %v3908_v48  ;;  %3816 = vset.pattern.permute.xlu0 %v3911_v6  ;;  %v5124_v48 = vmov 15  }
 0xb7a   : > { %3167 = vperm.xlu2 %3817, %v2213_v18   ;;  %3172 = vperm.xlu0 %3816, %v4896_v36  }
 0xb7c   : > { %3818 = vset.pattern.permute.xlu1 %v3911_v6  ;;  %v5125_v6 = vmov 14  }
 0xb7d   : > { %3178 = vperm.xlu1 %3818, %v2570_v23  }
 0xb82   : > { %3819 = vset.pattern.permute.xlu2 %v5121_v37  ;;  %3821 = vset.pattern.permute.xlu0 %v5122_v19 }
 0xb83   : > { %3184 = vperm.xlu2 %3819, %v3081_v0   ;;  %3244 = vperm.xlu0 %3821, %v4896_v36  }
 0xb85   : > { %3820 = vset.pattern.permute.xlu1 %v5123_v58 }
 0xb86   : > { %3233 = vperm.xlu1 %3820, %v4923_v4  }
 0xb8b   : > { %3190 = vperm.xlu2 %3819, %v2925_v51   ;;  %3824 = vset.pattern.permute.xlu0 %v5124_v48 }
 0xb8c   : > { %3262 = vperm.xlu0 %3824, %v2925_v51  }
 0xb8e   : > { %3239 = vperm.xlu1 %3820, %v2213_v18  }
 0xb93   : > { %3822 = vset.pattern.permute.xlu2 %v5122_v19 }
 0xb94   : > { %3250 = vperm.xlu2 %3822, %v2570_v23   ;;  %3827 = vset.pattern.permute.xlu0 %v5125_v6 }
 0xb95   : > { %3220 = vperm.xlu0 %3827, %v3081_v0  }
 0xb96   : > { %3823 = vset.pattern.permute.xlu1 %v5124_v48 }
 0xb97   : > { %3256 = vperm.xlu1 %3823, %v3081_v0  }
 0xb9c   : > { %3825 = vset.pattern.permute.xlu2 %v5126_v15 }
 0xb9d   : > { %3197 = vperm.xlu2 %3825, %v4923_v4  }
 0xb9f   : > { %3826 = vset.pattern.permute.xlu1 %v5127_v22 }
 0xba0   : > { %3208 = vperm.xlu1 %3826, %v4896_v36  }
 0xba5   : > { %3203 = vperm.xlu2 %3825, %v2213_v18  }
 0xba8   : > { %3214 = vperm.xlu1 %3826, %v2570_v23  }
 0xbad   : > { %3828 = vset.pattern.permute.xlu2 %v5125_v6 }
 0xbae   : > { %3226 = vperm.xlu2 %3828, %v2925_v51  }
 0xbb1   : > { %v2374_v11 = vpop.permute.xlu2 %2373 }
 0xbb2   : > { %v2729_v38 = vpop.permute.xlu1 %2728 }
 0xbb9   : > { %v3121_v42 = vpop.permute.xlu2 %3120 }
 0xbba   : > { %v3134_v62 = vpop.permute.xlu1 %3133 }
 0xbc2   : > { %v3141_v53 = vpop.permute.xlu2 %3140 }
 0xbcb   : > { %v3155_v59 = vpop.permute.xlu2 %3154 }
 0xbd4   : > { %2731 = vxpose.xlu2.b32.start.end [1/1] (short) (narrow) %v2729_v38, 8  ;;  %v3168_v29 = vpop.permute.xlu2 %3167 }
 0xbdb   : > { %v3084_v31 = vpop.permute.xlu0 %3083 }
 0xbdc   : > { %3086 = vxpose.xlu0.b32.start.end [1/1] (short) (narrow) %v3084_v31, 8 }
 0xbdd   : > { %2376 = vxpose.xlu1.b32.start.end [1/1] (short) (narrow) %v2374_v11, 8  ;;  %v3148_v28 = vpop.permute.xlu1 %3147  ;;  %v3185_v33 = vpop.permute.xlu2 %3184 }
 0xbe3   : > { %v3128_v52 = vpop.permute.xlu0 %3127 }
 0xbe5   : > { %v3191_v36 = vpop.permute.xlu2 %3190 }
 0xbe6   : > { %v3162_v9 = vpop.permute.xlu1 %3161 }
 0xbec   : > { %v3173_v32 = vpop.permute.xlu0 %3172 }
 0xbee   : > { %v3251_v44 = vpop.permute.xlu2 %3250 }
 0xbef   : > { %v3179_v8 = vpop.permute.xlu1 %3178 }
 0xbf5   : > { %v3245_v13 = vpop.permute.xlu0 %3244 }
 0xbf7   : > { %v3198_v7 = vpop.permute.xlu2 %3197 }
 0xbf8   : > { %v3234_v27 = vpop.permute.xlu1 %3233 }
 0xbfe   : > { %v3263_v26 = vpop.permute.xlu0 %3262 }
 0xbff   : > { %v3204_v20 = vpop.permute.xlu2 %3203 }
 0xc00   : > { %v3240_v49 = vpop.permute.xlu1 %3239 }
 0xc07   : > { %v3221_v50 = vpop.permute.xlu0 %3220 }
 0xc08   : > { %v3227_v3 = vpop.permute.xlu2 %3226 }
 0xc09   : > { %v3257_v39 = vpop.permute.xlu1 %3256 }
 0xc12   : > { %v3209_v2 = vpop.permute.xlu1 %3208 }
 0xc1a   : > { %v3215_v4 = vpop.permute.xlu1 %3214 }
 0xc43   : > { %3829 = vset.pattern.permute.xlu0 %v5124_v48 }
 0xc6d   : > { %v2747_v47 = vpop.trf.xlu2 }
 0xc6e   : > { %v3136_v25 = vperm.slane %v2747_v47, 0  ;;  %v3175_v14 = vperm.slane %v2747_v47, 1  ;;  %v3211_v40 = vperm.slane %v2747_v47, 2  ;;  %v3247_v60 = vperm.slane %v2747_v47, 3 }
 0xc70   : > { %v3137_v24 = vmul.f32 %v3136_v25, %v3134_v62  ;;  %v3176_v34 = vmul.f32 %v3175_v14, %v3173_v32  ;;  %v3212_v61 = vmul.f32 %v3211_v40, %v3209_v2  ;;  %v3248_v55 = vmul.f32 %v3247_v60, %v3245_v13 }
 0xc72   : > { %v3143_v30 = vadd.f32 %v3141_v53, %v3137_v24  ;;  %v3181_v21 = vadd.f32 %v3179_v8, %v3176_v34  ;;  %v3217_v19 = vadd.f32 %v3215_v4, %v3212_v61  ;;  %v3253_v58 = vadd.f32 %v3251_v44, %v3248_v55 }
 0xc80   : > { %v3102_v63 = vpop.trf.xlu0 }
 0xc81   : > { %v3150_v12 = vperm.slane %v3102_v63, 0  ;;  %v3187_v17 = vperm.slane %v3102_v63, 1  ;;  %v3223_v5 = vperm.slane %v3102_v63, 2  ;;  %v3259_v23 = vperm.slane %v3102_v63, 3  ;;  %v2392_v43 = vpop.trf.xlu1 }
 0xc82   : > { %v3123_v16 = vperm.slane %v2392_v43, 0  ;;  %v3164_v57 = vperm.slane %v2392_v43, 1  ;;  %v3200_v1 = vperm.slane %v2392_v43, 2  ;;  %v3236_v35 = vperm.slane %v2392_v43, 3 }
 0xc83   : > { %v3151_v56 = vmul.f32 %v3150_v12, %v3148_v28  ;;  %v3188_v54 = vmul.f32 %v3187_v17, %v3185_v33  ;;  %v3224_v41 = vmul.f32 %v3223_v5, %v3221_v50  ;;  %v3260_v6 = vmul.f32 %v3259_v23, %v3257_v39 }
 0xc84   : > { %v3124_v0 = vmul.f32 %v3123_v16, %v3121_v42  ;;  %v3165_v51 = vmul.f32 %v3164_v57, %v3162_v9  ;;  %v3201_v18 = vmul.f32 %v3200_v1, %v3198_v7  ;;  %v3237_v37 = vmul.f32 %v3236_v35, %v3234_v27 }
 0xc85   : > { %v3157_v48 = vadd.f32 %v3155_v59, %v3151_v56  ;;  %v3193_v11 = vadd.f32 %v3191_v36, %v3188_v54  ;;  %v3229_v53 = vadd.f32 %v3227_v3, %v3224_v41  ;;  %v3265_v33 = vadd.f32 %v3263_v26, %v3260_v6  ;;  %v3722_v56 = vld [vmem:[%s5080_s3 + $0x30] sm:$0xff]  ;;  %v3721_v54 = vld [vmem:[%s5080_s3 + $0x28] sm:$0xff]  ;;  %v3720_v41 = vld [vmem:[%s5080_s3 + $0x20] sm:$0xff] }
 0xc86   : > { %v3130_v15 = vadd.f32 %v3128_v52, %v3124_v0  ;;  %v3170_v22 = vadd.f32 %v3168_v29, %v3165_v51  ;;  %v3206_v38 = vadd.f32 %v3204_v20, %v3201_v18  ;;  %v3242_v31 = vadd.f32 %v3240_v49, %v3237_v37 }
 0xc88   : > { %v3144_v62 = vmul.f32 %v3143_v30, %v3130_v15  ;;  %v3182_v32 = vmul.f32 %v3181_v21, %v3170_v22  ;;  %v3218_v8 = vmul.f32 %v3217_v19, %v3206_v38  ;;  %v3254_v28 = vmul.f32 %v3253_v58, %v3242_v31  ;;  %v3723_v21 = vld [vmem:[%s5080_s3 + $0x38] sm:$0xff]  ;;  %v4995_v19 = vld [vmem:[%s5084_s7 + $0x8] sm:$0x3f] }
 0xc89   : > { %v3428_v58 = vperm.slane %v4995_v19, 0 }
 0xc8a   : > { %v3158_v13 = vmul.f32 %v3157_v48, %v3144_v62  ;;  %v3194_v42 = vmul.f32 %v3193_v11, %v3182_v32  ;;  %v3230_v9 = vmul.f32 %v3229_v53, %v3218_v8  ;;  %v3266_v7 = vmul.f32 %v3265_v33, %v3254_v28  ;;  %v3728_v32 = vld [vmem:[%s5081_s4 + $0x38] sm:$0xff]  ;;  %v3727_v8 = vld [vmem:[%s5081_s4 + $0x30] sm:$0xff]  ;;  %v3725_v28 = vld [vmem:[%s5081_s4 + $0x20] sm:$0xff] }
 0xc8b   : > { %3504 = vmatpush.msra.mxu0 %v3728_v32  ;;  %v3738_v33 = vld [vmem:[%s5083_s6 + $0x78] sm:$0xff] }
 0xc8c   : > { %3159 = vst.msk [vmem:[#allocation2] sm:$0xff] %vm1560_vm11, %v3158_v13  ;;  %v3737_v13 = vld [vmem:[%s5083_s6 + $0x70] sm:$0xff] }
 0xc8d   : > { %3195 = vst.msk [vmem:[#allocation2 + $0x8] sm:$0xff] %vm1560_vm11, %v3194_v42  ;;  %3505 = vmatpush.msra.mxu0 %v3727_v8  ;;  %v3736_v42 = vld [vmem:[%s5083_s6 + $0x68] sm:$0xff] }
 0xc8e   : > { %3231 = vst.msk [vmem:[#allocation2 + $0x10] sm:$0xff] %vm1560_vm11, %v3230_v9 }
 0xc8f   : > { %3267 = vst.msk [vmem:[#allocation2 + $0x18] sm:$0xff] %vm1560_vm11, %v3266_v7 }
 0xc93   : > { %v3268_v59 = vld [vmem:[#allocation2] sm:$0xff] }
 0xc94   : > { %v3269_v29 = vld [vmem:[#allocation2 + $0x8] sm:$0xff]  ;;  %v3272_v36 = vmul.f32 1.442695, %v3268_v59  ;;  %v3735_v59 = vld [vmem:[%s5083_s6 + $0x60] sm:$0xff] }
 0xc95   : > { %v3274_v44 = vmul.f32 1.442695, %v3269_v29  ;;  %v3270_v52 = vld [vmem:[#allocation2 + $0x10] sm:$0xff] }
 0xc96   : > { %v3271_v27 = vld [vmem:[#allocation2 + $0x18] sm:$0xff]  ;;  %3861 = vpow2.f32 %v3272_v36  ;;  %v3276_v20 = vmul.f32 1.442695, %v3270_v52 }
 0xc97   : > { %v3278_v49 = vmul.f32 1.442695, %v3271_v27  ;;  %3863 = vpow2.f32 %v3274_v44  ;;  %v3734_v36 = vld [vmem:[%s5083_s6 + $0x58] sm:$0xff]  ;;  %v3733_v44 = vld [vmem:[%s5083_s6 + $0x50] sm:$0xff] }
 0xc99   : > { %3865 = vpow2.f32 %v3278_v49 }
 0xc9a   : > { %3867 = vpow2.f32 %v3276_v20 }
 0xc9c   : > { %v3862_v39 = vpop.eup %3861 }
 0xc9d   : > { %v3864_v3 = vpop.eup %3863  ;;  %v3280_v26 = vsel %vm1560_vm11, %v3862_v39, 0.0 }
 0xc9e   : > { %v3283_v2 = vsel %vm1560_vm11, %v3864_v3, 0.0  ;;  %3281 = vadd.xlane.f32.xlu2 %v3280_v26  ;;  %v3475_v26 = vperm.slane %v4995_v19, 2 }
 0xc9f   : > { %v3866_v47 = vpop.eup %3865  ;;  %3284 = vadd.xlane.f32.xlu0 %v3283_v2 }
 0xca0   : > { %v3289_v50 = vsel %vm1560_vm11, %v3866_v47, 0.0  ;;  %v3868_v25 = vpop.eup %3867 }
 0xca1   : > { %3290 = vadd.xlane.f32.xlu1 %v3289_v50  ;;  %v3286_v4 = vsel %vm1560_vm11, %v3868_v25, 0.0  ;;  %v3477_v50 = vperm.slane %v4995_v19, 3 }
 0xca6   : > { %3287 = vadd.xlane.f32.xlu2 %v3286_v4 }
 0xcb3   : > { %3327 = vrot.lane.b32.xlu0 %v4554_v45, %s5128_s21  ;;  %s5133_s21 = sshll.u32 %s5135_s18, 3 }
 0xcba   : > { %3358 = vrot.lane.b32.xlu1 %v4554_v45, %s5129_s26 }
 0xcbe   : > { %3389 = vrot.lane.b32.xlu2 %v4554_v45, %s5130_s22 }
 0xd11   : > { %v3282_v14 = vpop.xlane.xlu2 %3281 }
 0xd12   : > { %3869 = vrcp.f32 %v3282_v14  ;;  %v3285_v60 = vpop.xlane.xlu0 %3284  ;;  %v3732_v14 = vld [vmem:[%s5083_s6 + $0x48] sm:$0xff] }
 0xd14   : > { %v3291_v24 = vpop.xlane.xlu1 %3290 }
 0xd15   : > { %3871 = vrcp.f32 %v3291_v24  ;;  %v3731_v24 = vld [vmem:[%s5083_s6 + $0x40] sm:$0xff] }
 0xd16   : > { %3873 = vrcp.f32 %v3285_v60 }
 0xd18   : > { %v3870_v40 = vpop.eup %3869 }
 0xd19   : > { %v3296_v34 = vmul.f32 %v3870_v40, %v3862_v39  ;;  %v3288_v30 = vpop.xlane.xlu2 %3287  ;;  %v3833_v40 = vld [vmem:[%s5082_s5 + $0x1] ss:$0 sm:$0xff] }
 0xd1a   : > { %3875 = vrcp.f32 %v3288_v30  ;;  %v3521_v30 = vperm.slane %v4995_v19, 1 }
 0xd1b   : > { %3715 = vmatmul.msk.f32.vlgmr.msra.gmra.mxu2 %vm1560_vm11, %v3296_v34  ;;  %v3872_v61 = vpop.eup %3871 }
 0xd1c   : > { %v3299_v55 = vmul.f32 %v3872_v61, %v3866_v47  ;;  %v3874_v12 = vpop.eup %3873 }
 0xd1d   : > { %v3297_v45 = vmul.f32 %v3874_v12, %v3864_v3 }
 0xd20   : > { %v3876_v5 = vpop.eup %3875 }
 0xd21   : > { %v3390_v63 = vpop.permute.xlu2 %3389  ;;  %v3298_v23 = vmul.f32 %v3876_v5, %v3868_v25 }
 0xd22   : > { %3410 = vmatpush.msrb.mxu2 %v3390_v63 }
 0xd23   : > { %3718 = vmatmul.msk.f32.vlgmr.msrb.gmra.mxu2 %vm1560_vm11, %v3299_v55 }
 0xd25   : > { %v3328_v17 = vpop.permute.xlu0 %3327 }
 0xd26   : > { %3348 = vmatpush.msrb.mxu3 %v3328_v17 }
 0xd27   : > { %3716 = vmatmul.msk.f32.vlgmr.msrb.gmra.mxu3 %vm1560_vm11, %v3297_v45 }
 0xd28   : > { %3444 = vmatpush.msra.mxu3 %v3723_v21 }
 0xd2a   : > { %3445 = vmatpush.msra.mxu3 %v3722_v56 }
 0xd2c   : > { %v3359_v43 = vpop.permute.xlu1 %3358  ;;  %3446 = vmatpush.msra.mxu3 %v3721_v54 }
 0xd2d   : > { %3379 = vmatpush.msra.mxu1 %v3359_v43 }
 0xd2e   : > { %3717 = vmatmul.msk.f32.vlgmr.msra.gmra.mxu1 %vm1560_vm11, %v3298_v23  ;;  %3447 = vmatpush.msra.mxu3 %v3720_v41 }
 0xd2f   : > { %3533 = vmatpush.msrb.mxu1 %v3738_v33 }
 0xd31   : > { %3534 = vmatpush.msrb.mxu1 %v3737_v13 }
 0xd33   : > { %3535 = vmatpush.msrb.mxu1 %v3736_v42 }
 0xd35   : > { %3536 = vmatpush.msrb.mxu1 %v3735_v59 }
 0xd37   : > { %3537 = vmatpush.msrb.mxu1 %v3734_v36 }
 0xd39   : > { %3538 = vmatpush.msrb.mxu1 %v3733_v44 }
 0xd3b   : > { %3539 = vmatpush.msrb.mxu1 %v3732_v14 }
 0xd3d   : > { %3540 = vmatpush.msrb.mxu1 %v3731_v24 }
 0xd9e   : > { %v3323_v16 = vpop.f32.mrf.mxu2 }
 0xd9f   : > { %3326 = vst.msk [vmem:[#allocation3] sm:$0xff] %vm1560_vm11, %v3323_v16  ;;  %v3575_v16 = vld [vmem:[%s5086_s9 + $0x18] sm:$0xff] }
 0xda0   : > { %3595 = vmatpush.msra.mxu2 %v3575_v16 }
 0xda6   : > { %v3412_v35 = vpop.f32.mrf.mxu2 }
 0xdaa   : > { %v3350_v57 = vpop.f32.mrf.mxu3 }
 0xdab   : > { %v3381_v1 = vpop.f32.mrf.mxu1  ;;  %3354 = vrot.lane.b32.xlu0 %v3350_v57, %s3893_s19  ;;  %v3574_v57 = vld [vmem:[%s5086_s9 + $0x10] sm:$0xff] }
 0xdac   : > { %3385 = vrot.lane.b32.xlu1 %v3381_v1, %s5131_s23  ;;  %v3573_v1 = vld [vmem:[%s5086_s9 + $0x8] sm:$0xff]  ;;  %3596 = vmatpush.msra.mxu2 %v3574_v57  ;;  %s381_s23 = scalar_lea.vmem %s5088_s11, %s5133_s21 }
 0xdae   : > { %3597 = vmatpush.msra.mxu2 %v3573_v1 }
 0xdb3   : > { %3416 = vrot.lane.b32.xlu0 %v3412_v35, %s5132_s27  ;;  %v3572_v35 = vld [vmem:[%s5086_s9] sm:$0xff] }
 0xdb4   : > { %3598 = vmatpush.msra.mxu2 %v3572_v35 }
 0xe1d   : > { %v3355_v0 = vpop.permute.xlu0 %3354 }
 0xe1e   : > { %v3386_v51 = vpop.permute.xlu1 %3385  ;;  %3357 = vst.msk [vmem:[#allocation3] sm:$0xff] %vm1759_vm7, %v3355_v0 }
 0xe1f   : > { %3388 = vst.msk [vmem:[#allocation3] sm:$0xff] %vm1791_vm6, %v3386_v51 }
 0xe25   : > { %v3417_v18 = vpop.permute.xlu0 %3416 }
 0xe26   : > { %3419 = vst.msk [vmem:[#allocation3] sm:$0xff] %vm1823_vm8, %v3417_v18 }
 0xe2d   : > { %v3422_v37 = vld [vmem:[#allocation3] sm:$0xff] }
 0xe2e   : > { %3724 = vmatmul.msk.f32.vlgmr.msra.gmra.mxu3 %vm391_vm0, %v3422_v37 }
 0xeb1   : > { %v3449_v48 = vpop.f32.mrf.mxu3 }
 0xeb2   : > { %v3450_v6 = vadd.f32 %v3449_v48, %v3428_v58  ;;  %v3568_v48 = vperm.slane %v4995_v19, 4 }
 0xeb4   : > { %v3452_v15 = vadd.f32 %v3450_v6, %v4547_v46  ;;  %v3726_v46 = vld [vmem:[%s5081_s4 + $0x28] sm:$0xff] }
 0xeb5   : > { %3506 = vmatpush.msra.mxu0 %v3726_v46 }
 0xeb6   : > { %v3453_v22 = vsel %vm391_vm0, %v3452_v15, 0.0 }
 0xeb7   : > { %3454 = vadd.xlane.f32.xlu1 %v3453_v22  ;;  %3507 = vmatpush.msra.mxu0 %v3725_v28  ;;  %v3570_v22 = vperm.slane %v4995_v19, 5 }
 0xf2a   : > { %v3455_v38 = vpop.xlane.xlu1 %3454 }
 0xf2b   : > { %v3456_v31 = vmul.f32 %v3455_v38, %v4480_v10 }
 0xf2d   : > { %v3457_v11 = vsub.f32 %v3452_v15, %v3456_v31  ;;  %v3834_v31 = vld [vmem:[%s5087_s10] ss:$0 sm:$0xff] }
 0xf2f   : > { %v3458_v53 = vmul.f32 %v3457_v11, %v3457_v11 }
 0xf31   : > { %v3459_v62 = vsel %vm391_vm0, %v3458_v53, 0.0 }
 0xf32   : > { %3460 = vadd.xlane.f32.xlu2 %v3459_v62 }
 0xfa5   : > { %v3461_v9 = vpop.xlane.xlu2 %3460 }
 0xfa6   : > { %v3462_v7 = vmul.f32 %v3461_v9, %v4480_v10 }
 0xfa8   : > { %v3463_v29 = vadd.f32 1e-05, %v3462_v7 }
 0xfaa   : > { %3877 = vrsqrt.f32 %v3463_v29  ;;  %vm3470_vm7 = vweird.f32 %v3463_v29 }
 0xfb0   : > { %v3878_v52 = vpop.eup %3877 }
 0xfb1   : > { %v3465_v27 = vmul.f32 %v3878_v52, %v3463_v29  ;;  %vm3471_vm11 = vweird.f32 %v3878_v52 }
 0xfb2   : > { %vm3472_vm6 = vmor %vm3470_vm7, %vm3471_vm11 }
 0xfb3   : > { %v3466_v49 = vmul.f32 %v3878_v52, %v3465_v27 }
 0xfb5   : > { %v3467_v20 = vmul.f32 0.5, %v3466_v49 }
 0xfb7   : > { %v3468_v39 = vsub.f32 1.5, %v3467_v20 }
 0xfb9   : > { %v3469_v3 = vmul.f32 %v3878_v52, %v3468_v39 }
 0xfbb   : > { %v3473_v2 = vsel %vm3472_vm6, %v3878_v52, %v3469_v3 }
 0xfbc   : > { %v3474_v47 = vmul.f32 %v3473_v2, %v3457_v11 }
 0xfbe   : > { %v3476_v25 = vmul.f32 %v3475_v26, %v3474_v47 }
 0xfc0   : > { %v3478_v4 = vadd.f32 %v3477_v50, %v3476_v25 }
 0xfc2   : > { %3730 = vmatmul.msk.f32.vlgmr.msra.gmra.mxu0 %vm391_vm0, %v3478_v4 }
0x103f   : > { %v3509_v60 = vpop.f32.mrf.mxu0 }
0x1040   : > { %v3510_v34 = vadd.f32 %v3833_v40, %v3509_v60 }
0x1042   : > { %3739 = vmatmul.msk.f32.vlgmr.msrb.gmra.mxu1 %vm1929_vm1, %v3510_v34 }
0x10bf   : > { %v3542_v61 = vpop.f32.mrf.mxu1 }
0x10c0   : > { %v3543_v55 = vadd.f32 %v3542_v61, %v3521_v30 }
0x10c2   : > { %v3545_v63 = vadd.f32 %v3543_v55, %v3478_v4 }
0x10c4   : > { %v3546_v12 = vsel %vm391_vm0, %v3545_v63, 0.0 }
0x10c5   : > { %3547 = vadd.xlane.f32.xlu0 %v3546_v12 }
0x1138   : > { %v3548_v45 = vpop.xlane.xlu0 %3547 }
0x1139   : > { %v3549_v17 = vmul.f32 %v3548_v45, %v4480_v10 }
0x113b   : > { %v3550_v5 = vsub.f32 %v3545_v63, %v3549_v17 }
0x113d   : > { %v3551_v23 = vmul.f32 %v3550_v5, %v3550_v5 }
0x113f   : > { %v3552_v43 = vsel %vm391_vm0, %v3551_v23, 0.0 }
0x1140   : > { %3553 = vadd.xlane.f32.xlu2 %v3552_v43 }
0x11b3   : > { %v3554_v21 = vpop.xlane.xlu2 %3553 }
0x11b4   : > { %v3555_v56 = vmul.f32 %v3554_v21, %v4480_v10 }
0x11b6   : > { %v3556_v54 = vadd.f32 1e-05, %v3555_v56 }
0x11b8   : > { %3879 = vrsqrt.f32 %v3556_v54  ;;  %vm3563_vm1 = vweird.f32 %v3556_v54 }
0x11be   : > { %v3880_v41 = vpop.eup %3879 }
0x11bf   : > { %v3558_v0 = vmul.f32 %v3880_v41, %v3556_v54  ;;  %vm3564_vm8 = vweird.f32 %v3880_v41 }
0x11c0   : > { %vm3565_vm5 = vmor %vm3563_vm1, %vm3564_vm8 }
0x11c1   : > { %v3559_v51 = vmul.f32 %v3880_v41, %v3558_v0 }
0x11c3   : > { %v3560_v18 = vmul.f32 0.5, %v3559_v51 }
0x11c5   : > { %v3561_v37 = vsub.f32 1.5, %v3560_v18 }
0x11c7   : > { %v3562_v58 = vmul.f32 %v3880_v41, %v3561_v37 }
0x11c9   : > { %v3566_v6 = vsel %vm3565_vm5, %v3880_v41, %v3562_v58 }
0x11ca   : > { %v3567_v15 = vmul.f32 %v3566_v6, %v3550_v5 }
0x11cc   : > { %v3569_v38 = vmul.f32 %v3568_v48, %v3567_v15 }
0x11ce   : > { %v3571_v10 = vadd.f32 %v3570_v22, %v3569_v38 }
0x11d0   : > { %3740 = vmatmul.msk.f32.vlgmr.msra.gmra.mxu2 %vm391_vm0, %v3571_v10 }
0x1253   : > { %v3600_v11 = vpop.f32.mrf.mxu2 }
0x1254   : > { %v3601_v53 = vadd.f32 %v3834_v31, %v3600_v11 }
0x1256   : > { %3603 = vst [vmem:[%s381_s23] sm:$0xff] %v3601_v53 }
0x1257 PF: > { %s21_s17 = sadd.s32 1, %s3888_s17  }
0x1258   : > { %p18_p4 = scmp.ge.s32.totalorder %s21_s17, 4  }
0x125a   :  { %20 = sbr.rel (!%p18_p4) target bundleno = 1 (0x1), region = 102 }

</bundles_post_ra>
